<compile_context>
chip_gen: v7x
topology: tpu7x:2x2x1
jax: 0.10.0
libtpu: 0.0.40
codegen_flags: <defaults>
</compile_context>

<pallas_src>
import functools

import jax
import jax.numpy as jnp
from jax.experimental import pallas as pl
from jax.experimental.pallas import tpu as pltpu


# ------------------------------ fused kernel -------------------------------


def _fgaf_block_kernel(x_ref, wfa_ref, wfb_ref, wqkv_ref, wp_ref, b_ref, o_ref,
                       *, num_heads, key_dim, d):
    f32, bf16 = jnp.float32, jnp.bfloat16
    nb, C, N = x_ref.shape
    H, kd = num_heads, key_dim
    Dq = H * kd
    Dv = H * d

    # (nb, C, N) -> (nb*N, C): tokens on sublanes, channels on lanes, so every
    # 1x1 conv is one MXU matmul with M = nb*N (128 on the collapsed-grid
    # path).  The 64x64 transposes are XLU work (otherwise idle slot).
    cols = [x_ref[b].T for b in range(nb)]
    x = cols[0] if nb == 1 else jnp.concatenate(cols, axis=0)        # (nb*N, C)

    def ffn_residual(x, wa, ba, wb, bb):
        h = jnp.dot(x.astype(bf16), wa, preferred_element_type=f32) + ba
        h = jnp.maximum(h, 0.0)                                       # ReLU f32
        y = jnp.dot(h.astype(bf16), wb, preferred_element_type=f32) + bb
        return x + y                                                  # Residual

    # ---------------- Residual(FFN0) ----------------
    x = ffn_residual(x, wfa_ref[0], b_ref[0:1, :2 * C],
                     wfb_ref[0], b_ref[1:2, :C])

    # ------------- Residual(GroupAttention) ---------
    # One fused block-diagonal grouped-conv matmul producing [q | k | v]
    # (kd^-0.5 already folded into the q columns / bias at init).
    qkv = jnp.dot(x.astype(bf16), wqkv_ref[...],
                  preferred_element_type=f32) + b_ref[2:3, :2 * Dq + Dv]
    y_parts = []
    for b in range(nb):                    # static unroll; softmax per batch
        r0 = b * N
        yb = None
        for h in range(H):                 # static unroll over heads
            qh = qkv[r0:r0 + N, h * kd:(h + 1) * kd].astype(bf16)
            kh = qkv[r0:r0 + N, Dq + h * kd:Dq + (h + 1) * kd].astype(bf16)
            vh = qkv[r0:r0 + N, 2 * Dq + h * d:2 * Dq + (h + 1) * d].astype(bf16)
            # q @ k^T without an explicit transpose (contract last dims).
            logits = jax.lax.dot_general(qh, kh, (((1,), (1,)), ((), ())),
                                         preferred_element_type=f32)  # (N, N)
            m = jnp.max(logits, axis=-1, keepdims=True)
            e = jnp.exp(logits - m)                                    # EUP
            p = e * pl.reciprocal(jnp.sum(e, axis=-1, keepdims=True),
                                  approx=True)
            ho = jnp.dot(p.astype(bf16), vh, preferred_element_type=f32)
            # proj ReLU + bf16 cast fused into the head output; projection
            # accumulated per head (sublane slice of wp is free) instead of a
            # lane-misaligned concat into a scratch buffer.
            ho = jnp.maximum(ho, 0.0).astype(bf16)
            contrib = jnp.dot(ho, wp_ref[h * d:(h + 1) * d, :],
                              preferred_element_type=f32)              # (N, C)
            yb = contrib if yb is None else yb + contrib
        y_parts.append(yb)
    y = y_parts[0] if nb == 1 else jnp.concatenate(y_parts, axis=0)
    x = x + y + b_ref[3:4, :C]                                        # Residual

    # ---------------- Residual(FFN1) ----------------
    x = ffn_residual(x, wfa_ref[1], b_ref[4:5, :2 * C],
                     wfb_ref[1], b_ref[5:6, :C])

    # Back to (nb, C, N).  (A lane-dense (C, nb*N) output slab would avoid the
    # 64-lane masked stores but needs an extra wrapper transpose op whose
    # launch/HBM cost exceeds the saving at this size.)
    for b in range(nb):
        o_ref[b] = x[b * N:(b + 1) * N, :].T.astype(o_ref.dtype)


def _batch_per_step(B):
    """v7x (2 TensorCores): one batch item per grid step so the 'parallel'
    batch axis shards across cores.  v5e/v6e (1 TC): collapse the grid and
    stack the batch so matmuls run with M = B*N."""
    try:
        kind = jax.devices()[0].device_kind.lower()
    except Exception:
        kind = ""
    if B > 1 and ("v7" in kind or "7x" in kind):
        return 1
    return B


def efficientvit_block_fgaf(x_bcn, params):
    """x_bcn: (B, C, N) like the PyTorch module. Returns (B, C, N)."""
    B, C, N = x_bcn.shape
    ops = params["kernel"]
    H, kd, d = params["num_heads"], params["key_dim"], params["d"]

    nb = _batch_per_step(B)
    assert B % nb == 0
    grid = (B // nb,)

    kern = functools.partial(_fgaf_block_kernel, num_heads=H, key_dim=kd, d=d)

    def full_spec(a):                      # whole operand resident every step
        return pl.BlockSpec(a.shape, lambda i, nd=a.ndim: (0,) * nd)

    qkv_out = H * (2 * kd + d)
    macs_per_token = (8 * C * C            # ffn0 + ffn1 (two C<->2C matmuls each)
                      + C * qkv_out        # fused qkv grouped conv
                      + H * N * (kd + d)   # logits + attn@v per head
                      + H * d * C)         # projection
    cost = pl.CostEstimate(
        flops=2 * B * N * macs_per_token,
        transcendentals=B * H * N * N,
        bytes_accessed=2 * int(x_bcn.size) * x_bcn.dtype.itemsize
        + sum(int(a.size) * a.dtype.itemsize for a in ops))

    return pl.pallas_call(
        kern,
        out_shape=jax.ShapeDtypeStruct((B, C, N), x_bcn.dtype),
        grid=grid,
        in_specs=[pl.BlockSpec((nb, C, N), lambda i: (i, 0, 0))]
                 + [full_spec(a) for a in ops],
        out_specs=pl.BlockSpec((nb, C, N), lambda i: (i, 0, 0)),
        compiler_params=pltpu.CompilerParams(
            dimension_semantics=("parallel",)),
        cost_estimate=cost,
    )(x_bcn, *ops)


# ------------------------- parameter construction --------------------------


def _normal(key, shape, std=0.05):
    return std * jax.random.normal(key, shape, jnp.float32)


def _fuse_bn(w_in_out, mean, var, conv_bias=None, eps=1e-5):
    """Fold eval-mode BatchNorm1d (gamma=1, beta=0) into a (Cin, Cout) weight."""
    cout = w_in_out.shape[1]
    gamma = jnp.ones((cout,), jnp.float32)
    beta = jnp.zeros((cout,), jnp.float32)
    s = gamma / jnp.sqrt(var + eps)
    w_eff = w_in_out * s[None, :]
    b_eff = beta - mean * s
    if conv_bias is not None:
        b_eff = b_eff + conv_bias * s
    return w_eff, b_eff


def init_ffn_params(key, embed_dim, hidden_dim):
    ks = jax.random.split(key, 6)
    w1 = _normal(ks[0], (embed_dim, hidden_dim))
    m1 = _normal(ks[1], (hidden_dim,), 0.1)
    v1 = jnp.abs(_normal(ks[2], (hidden_dim,), 0.1)) + 1.0
    w1e, b1e = _fuse_bn(w1, m1, v1)
    w2 = _normal(ks[3], (hidden_dim, embed_dim))
    m2 = _normal(ks[4], (embed_dim,), 0.1)
    v2 = jnp.abs(_normal(ks[5], (embed_dim,), 0.1)) + 1.0
    w2e, b2e = _fuse_bn(w2, m2, v2)
    fused = (w1e, b1e, w2e, b2e)
    ref = (w1e, b1e[None, :], w2e, b2e[None, :])
    return fused, ref


def init_ga_params(key, embed_dim, kd, num_heads, attn_ratio):
    d = int(attn_ratio * kd)
    cg = embed_dim // num_heads
    qkv_dim = 2 * kd + d
    scale = kd ** (-0.5)
    ks = jax.random.split(key, 6)
    wqkv = _normal(ks[0], (num_heads, cg, qkv_dim))        # grouped 1x1 conv
    bqkv = _normal(ks[1], (num_heads, qkv_dim), 0.01)      # conv bias
    wproj = _normal(ks[2], (d * num_heads, embed_dim))
    bproj_conv = _normal(ks[3], (embed_dim,), 0.01)
    mean = _normal(ks[4], (embed_dim,), 0.1)
    var = jnp.abs(_normal(ks[5], (embed_dim,), 0.1)) + 1.0
    wproj_e, bproj_e = _fuse_bn(wproj, mean, var, conv_bias=bproj_conv)

    # Block-diagonal, q/k/v-split grouped-conv weights; the attention scale
    # (kd^-0.5, a power of two) is folded into the q path.  Packed as one
    # (C, H*(2kd+d)) weight with columns [q(head-major) | k | v].
    wq = jnp.zeros((embed_dim, num_heads * kd), jnp.float32)
    wk = jnp.zeros((embed_dim, num_heads * kd), jnp.float32)
    wv = jnp.zeros((embed_dim, num_heads * d), jnp.float32)
    for h in range(num_heads):
        rows = slice(h * cg, (h + 1) * cg)
        wq = wq.at[rows, h * kd:(h + 1) * kd].set(wqkv[h, :, :kd] * scale)
        wk = wk.at[rows, h * kd:(h + 1) * kd].set(wqkv[h, :, kd:2 * kd])
        wv = wv.at[rows, h * d:(h + 1) * d].set(wqkv[h, :, 2 * kd:])
    bq = (bqkv[:, :kd] * scale).reshape(num_heads * kd)
    bk = bqkv[:, kd:2 * kd].reshape(num_heads * kd)
    bv = bqkv[:, 2 * kd:].reshape(num_heads * d)
    w_qkv_packed = jnp.concatenate([wq, wk, wv], axis=1)   # (C, H*(2kd+d))
    b_qkv_packed = jnp.concatenate([bq, bk, bv], axis=0)   # (H*(2kd+d),)

    fused = (w_qkv_packed, b_qkv_packed, wproj_e, bproj_e)
    ref = (wqkv, bqkv, wproj_e, bproj_e[None, :])
    return fused, ref, d, scale


def init_params(key, embed_dim, kd, num_heads, attn_ratio):
    k0, k1, k2 = jax.random.split(key, 3)
    ffn0, ffn0_r = init_ffn_params(k0, embed_dim, 2 * embed_dim)     # FGAF: 2x
    ga, ga_r, d, scale = init_ga_params(k1, embed_dim, kd, num_heads, attn_ratio)
    ffn1, ffn1_r = init_ffn_params(k2, embed_dim, 2 * embed_dim)

    w1, b1, w2, b2 = ffn0
    wqkv_p, bqkv_p, wp, bp = ga
    w3, b3, w4, b4 = ffn1
    C = embed_dim
    qkv_out = num_heads * (2 * kd + d)
    lanes = max(2 * C, qkv_out, C)

    # All six biases packed into one (8, lanes) f32 slab (row = bias, lane-
    # aligned at 0); avoids six (8,128)-padded VMEM tiles and DMA descriptors.
    bias_pack = jnp.zeros((8, lanes), jnp.float32)
    for row, vec in enumerate((b1, b2, bqkv_p, bp, b3, b4)):
        bias_pack = bias_pack.at[row, :vec.shape[0]].set(vec)

    bf16 = jnp.bfloat16
    kernel_ops = (
        jnp.stack([w1, w3]).astype(bf16),     # (2, C, 2C)  ffn first matmuls
        jnp.stack([w2, w4]).astype(bf16),     # (2, 2C, C)  ffn second matmuls
        wqkv_p.astype(bf16),                  # (C, H*(2kd+d)) fused qkv
        wp.astype(bf16),                      # (H*d, C) projection
        bias_pack,                            # (8, lanes) f32 biases
    )
    return {
        "kernel": kernel_ops,
        "ref": {"ffn0": ffn0_r, "ga": ga_r, "ffn1": ffn1_r},
        "num_heads": num_heads,
        "key_dim": kd,
        "d": d,
        "scale": scale,
    }


# --------------------------- pure-JAX reference ----------------------------


def reference_fgaf(x_bcn, ref, *, num_heads, key_dim, d, scale,
                   mm_dtype=jnp.float32):
    """PyTorch eval-mode semantics.  mm_dtype=bfloat16 mirrors the kernel's
    bf16-operand / f32-accumulate matmul numerics (bf16->f32 casts are exact)."""
    def c(a):
        return a.astype(mm_dtype).astype(jnp.float32)

    x = jnp.transpose(x_bcn, (0, 2, 1)).astype(jnp.float32)          # (B, N, C)

    def ffn(x, w1, b1, w2, b2):
        h = jnp.maximum(jnp.einsum("bnc,ch->bnh", c(x), c(w1)) + b1, 0.0)
        return x + jnp.einsum("bnh,hc->bnc", c(h), c(w2)) + b2

    x = ffn(x, *ref["ffn0"])

    wqkv, bqkv, wproj, bproj = ref["ga"]
    B, N, C = x.shape
    cg = C // num_heads
    outs = []
    for h in range(num_heads):
        xh = x[:, :, h * cg:(h + 1) * cg]
        qkv = jnp.einsum("bnc,co->bno", c(xh), c(wqkv[h])) + bqkv[h]
        q, k, v = (qkv[..., :key_dim], qkv[..., key_dim:2 * key_dim],
                   qkv[..., 2 * key_dim:])
        logits = jnp.einsum("bnk,bmk->bnm", c(q * scale), c(k))
        attn = jax.nn.softmax(logits, axis=-1)
        outs.append(jnp.einsum("bnm,bmd->bnd", c(attn), c(v)))
    cat = jnp.maximum(jnp.concatenate(outs, axis=-1), 0.0)
    x = x + jnp.einsum("bnd,dc->bnc", c(cat), c(wproj)) + bproj

    x = ffn(x, *ref["ffn1"])
    return jnp.transpose(x, (0, 2, 1))


# ----------------------------------- main -----------------------------------


if __name__ == "__main__":
    B, embed_dim, N = 2, 64, 64
    kd, num_heads, attn_ratio = 16, 4, 4

    key = jax.random.PRNGKey(0)
    k_x, k_p = jax.random.split(key)
    x = jax.random.normal(k_x, (B, embed_dim, N), jnp.float32)       # (B, C, N)
    params = init_params(k_p, embed_dim, kd, num_heads, attn_ratio)

    ref_kw = dict(num_heads=params["num_heads"], key_dim=params["key_dim"],
                  d=params["d"], scale=params["scale"])
    ref_f32 = reference_fgaf(x, params["ref"], mm_dtype=jnp.float32, **ref_kw)
    ref_bf16 = reference_fgaf(x, params["ref"], mm_dtype=jnp.bfloat16, **ref_kw)

    out = jax.block_until_ready(efficientvit_block_fgaf(x, params))

    assert out.shape == (B, embed_dim, N), out.shape
    # Tight check vs. a reference mirroring the kernel's bf16-matmul numerics.
    assert jnp.allclose(out, ref_bf16, atol=2e-3, rtol=2e-3), float(
        jnp.max(jnp.abs(out - ref_bf16)))
    # Loose semantic check vs. the exact f32 eval-mode PyTorch computation
    # (slack is the expected bf16-operand rounding of the matmuls).
    assert jnp.allclose(out, ref_f32, atol=5e-2, rtol=1e-2), float(
        jnp.max(jnp.abs(out - ref_f32)))
    print("KERNEL_OK")
</pallas_src>

<mosaic_0001>
module attributes {stable_mosaic.version = 11 : i64} {
  func.func @_fgaf_block_kernel(%arg0: i32, %arg1: memref<2x64x64xf32, #tpu.memory_space<vmem>>, %arg2: memref<2x64x128xbf16, #tpu.memory_space<vmem>>, %arg3: memref<2x128x64xbf16, #tpu.memory_space<vmem>>, %arg4: memref<64x384xbf16, #tpu.memory_space<vmem>>, %arg5: memref<256x64xbf16, #tpu.memory_space<vmem>>, %arg6: memref<8x384xf32, #tpu.memory_space<vmem>>, %arg7: memref<2x64x64xf32, #tpu.memory_space<vmem>>) attributes {dimension_semantics = [#tpu.dimension_semantics<parallel>], iteration_bounds = array<i64: 1>, scalar_prefetch = 0 : i64, scratch_operands = 0 : i64, tpu.core_type = #tpu.core_type<tc>, window_params = [{transform_indices = @transform_0, window_bounds = array<i64: 2, 64, 64>}, {pipeline_mode = #tpu.pipeline_mode<synchronous>, transform_indices = @transform_1, window_bounds = array<i64: 2, 64, 128>}, {pipeline_mode = #tpu.pipeline_mode<synchronous>, transform_indices = @transform_2, window_bounds = array<i64: 2, 128, 64>}, {pipeline_mode = #tpu.pipeline_mode<synchronous>, transform_indices = @transform_3, window_bounds = array<i64: 64, 384>}, {pipeline_mode = #tpu.pipeline_mode<synchronous>, transform_indices = @transform_4, window_bounds = array<i64: 256, 64>}, {pipeline_mode = #tpu.pipeline_mode<synchronous>, transform_indices = @transform_5, window_bounds = array<i64: 8, 384>}, {transform_indices = @transform_6, window_bounds = array<i64: 2, 64, 64>}]} {
    %c0 = arith.constant 0 : index
    %c0_0 = arith.constant 0 : index
    %c0_1 = arith.constant 0 : index
    %0 = vector.load %arg1[%c0, %c0_0, %c0_1] : memref<2x64x64xf32, #tpu.memory_space<vmem>>, vector<1x64x64xf32>
    %1 = vector.shape_cast %0 : vector<1x64x64xf32> to vector<64x64xf32>
    %2 = tpu.transpose %1, [1, 0] : vector<64x64xf32> -> vector<64x64xf32>
    %c1 = arith.constant 1 : index
    %c0_2 = arith.constant 0 : index
    %c0_3 = arith.constant 0 : index
    %3 = vector.load %arg1[%c1, %c0_2, %c0_3] : memref<2x64x64xf32, #tpu.memory_space<vmem>>, vector<1x64x64xf32>
    %4 = vector.shape_cast %3 : vector<1x64x64xf32> to vector<64x64xf32>
    %5 = tpu.transpose %4, [1, 0] : vector<64x64xf32> -> vector<64x64xf32>
    %6 = tpu.concatenate %2, %5 in 0 : vector<64x64xf32>, vector<64x64xf32> -> vector<128x64xf32>
    %c0_4 = arith.constant 0 : index
    %c0_5 = arith.constant 0 : index
    %c0_6 = arith.constant 0 : index
    %7 = vector.load %arg2[%c0_4, %c0_5, %c0_6] : memref<2x64x128xbf16, #tpu.memory_space<vmem>>, vector<1x64x128xbf16>
    %8 = vector.shape_cast %7 : vector<1x64x128xbf16> to vector<64x128xbf16>
    %c0_7 = arith.constant 0 : index
    %c0_8 = arith.constant 0 : index
    %9 = vector.load %arg6[%c0_7, %c0_8] : memref<8x384xf32, #tpu.memory_space<vmem>>, vector<1x128xf32>
    %c0_9 = arith.constant 0 : index
    %c0_10 = arith.constant 0 : index
    %c0_11 = arith.constant 0 : index
    %10 = vector.load %arg3[%c0_9, %c0_10, %c0_11] : memref<2x128x64xbf16, #tpu.memory_space<vmem>>, vector<1x128x64xbf16>
    %11 = vector.shape_cast %10 : vector<1x128x64xbf16> to vector<128x64xbf16>
    %c1_12 = arith.constant 1 : index
    %c0_13 = arith.constant 0 : index
    %12 = vector.load %arg6[%c1_12, %c0_13] : memref<8x384xf32, #tpu.memory_space<vmem>>, vector<1x64xf32>
    %13 = arith.truncf %6 : vector<128x64xf32> to vector<128x64xbf16>
    %cst = arith.constant dense<0.000000e+00> : vector<128x128xf32>
    %14 = tpu.matmul %13, %8, %cst {dimension_numbers = #tpu.dot_dimension_numbers<[1], [0], [0], [1], [0, 0, 1, 1], [], []>} : vector<128x64xbf16>, vector<64x128xbf16>, vector<128x128xf32> -> vector<128x128xf32>
    %15 = vector.broadcast %9 : vector<1x128xf32> to vector<128x128xf32>
    %16 = arith.addf %14, %15 : vector<128x128xf32>
    %cst_14 = arith.constant 0.000000e+00 : f32
    %17 = vector.broadcast %cst_14 : f32 to vector<128x128xf32>
    %18 = arith.maximumf %16, %17 : vector<128x128xf32>
    %19 = arith.truncf %18 : vector<128x128xf32> to vector<128x128xbf16>
    %cst_15 = arith.constant dense<0.000000e+00> : vector<128x64xf32>
    %20 = tpu.matmul %19, %11, %cst_15 {dimension_numbers = #tpu.dot_dimension_numbers<[1], [0], [0], [1], [0, 0, 1, 1], [], []>} : vector<128x128xbf16>, vector<128x64xbf16>, vector<128x64xf32> -> vector<128x64xf32>
    %21 = vector.broadcast %12 : vector<1x64xf32> to vector<128x64xf32>
    %22 = arith.addf %20, %21 : vector<128x64xf32>
    %23 = arith.addf %6, %22 : vector<128x64xf32>
    %24 = arith.truncf %23 : vector<128x64xf32> to vector<128x64xbf16>
    %c0_16 = arith.constant 0 : index
    %c0_17 = arith.constant 0 : index
    %25 = vector.load %arg4[%c0_16, %c0_17] : memref<64x384xbf16, #tpu.memory_space<vmem>>, vector<64x384xbf16>
    %cst_18 = arith.constant dense<0.000000e+00> : vector<128x384xf32>
    %26 = tpu.matmul %24, %25, %cst_18 {dimension_numbers = #tpu.dot_dimension_numbers<[1], [0], [0], [1], [0, 0, 1, 1], [], []>} : vector<128x64xbf16>, vector<64x384xbf16>, vector<128x384xf32> -> vector<128x384xf32>
    %c2 = arith.constant 2 : index
    %c0_19 = arith.constant 0 : index
    %27 = vector.load %arg6[%c2, %c0_19] : memref<8x384xf32, #tpu.memory_space<vmem>>, vector<1x384xf32>
    %28 = vector.broadcast %27 : vector<1x384xf32> to vector<128x384xf32>
    %29 = arith.addf %26, %28 : vector<128x384xf32>
    %30 = vector.extract_strided_slice %29 {offsets = [0, 0], sizes = [64, 16], strides = [1, 1]} : vector<128x384xf32> to vector<64x16xf32>
    %31 = arith.truncf %30 : vector<64x16xf32> to vector<64x16xbf16>
    %32 = vector.extract_strided_slice %29 {offsets = [0, 64], sizes = [64, 16], strides = [1, 1]} : vector<128x384xf32> to vector<64x16xf32>
    %33 = arith.truncf %32 : vector<64x16xf32> to vector<64x16xbf16>
    %34 = vector.extract_strided_slice %29 {offsets = [0, 128], sizes = [64, 64], strides = [1, 1]} : vector<128x384xf32> to vector<64x64xf32>
    %35 = arith.truncf %34 : vector<64x64xf32> to vector<64x64xbf16>
    %cst_20 = arith.constant dense<0.000000e+00> : vector<64x64xf32>
    %36 = tpu.matmul %31, %33, %cst_20 {dimension_numbers = #tpu.dot_dimension_numbers<[1], [1], [0], [0], [0, 0, 1, 0], [], []>} : vector<64x16xbf16>, vector<64x16xbf16>, vector<64x64xf32> -> vector<64x64xf32>
    %cst_21 = arith.constant dense<0xFF800000> : vector<64xf32>
    %37 = vector.multi_reduction <maximumf>, %36, %cst_21 [1] : vector<64x64xf32> to vector<64xf32>
    %38 = vector.shape_cast %37 : vector<64xf32> to vector<64x1xf32>
    %39 = vector.broadcast %38 : vector<64x1xf32> to vector<64x64xf32>
    %40 = arith.subf %36, %39 : vector<64x64xf32>
    %41 = math.exp %40 : vector<64x64xf32>
    %cst_22 = arith.constant dense<0.000000e+00> : vector<64xf32>
    %42 = vector.multi_reduction <add>, %41, %cst_22 [1] : vector<64x64xf32> to vector<64xf32>
    %43 = vector.shape_cast %42 : vector<64xf32> to vector<64x1xf32>
    %44 = tpu.reciprocal %43 {approx = true} : vector<64x1xf32> -> vector<64x1xf32>
    %45 = vector.broadcast %44 : vector<64x1xf32> to vector<64x64xf32>
    %46 = arith.mulf %41, %45 : vector<64x64xf32>
    %47 = arith.truncf %46 : vector<64x64xf32> to vector<64x64xbf16>
    %cst_23 = arith.constant dense<0.000000e+00> : vector<64x64xf32>
    %48 = tpu.matmul %47, %35, %cst_23 {dimension_numbers = #tpu.dot_dimension_numbers<[1], [0], [0], [1], [0, 0, 1, 1], [], []>} : vector<64x64xbf16>, vector<64x64xbf16>, vector<64x64xf32> -> vector<64x64xf32>
    %cst_24 = arith.constant 0.000000e+00 : f32
    %49 = vector.broadcast %cst_24 : f32 to vector<64x64xf32>
    %50 = arith.maximumf %48, %49 : vector<64x64xf32>
    %51 = arith.truncf %50 : vector<64x64xf32> to vector<64x64xbf16>
    %c0_25 = arith.constant 0 : index
    %c0_26 = arith.constant 0 : index
    %52 = vector.load %arg5[%c0_25, %c0_26] : memref<256x64xbf16, #tpu.memory_space<vmem>>, vector<64x64xbf16>
    %cst_27 = arith.constant dense<0.000000e+00> : vector<64x64xf32>
    %53 = tpu.matmul %51, %52, %cst_27 {dimension_numbers = #tpu.dot_dimension_numbers<[1], [0], [0], [1], [0, 0, 1, 1], [], []>} : vector<64x64xbf16>, vector<64x64xbf16>, vector<64x64xf32> -> vector<64x64xf32>
    %54 = vector.extract_strided_slice %29 {offsets = [0, 16], sizes = [64, 16], strides = [1, 1]} : vector<128x384xf32> to vector<64x16xf32>
    %55 = arith.truncf %54 : vector<64x16xf32> to vector<64x16xbf16>
    %56 = vector.extract_strided_slice %29 {offsets = [0, 80], sizes = [64, 16], strides = [1, 1]} : vector<128x384xf32> to vector<64x16xf32>
    %57 = arith.truncf %56 : vector<64x16xf32> to vector<64x16xbf16>
    %58 = vector.extract_strided_slice %29 {offsets = [0, 192], sizes = [64, 64], strides = [1, 1]} : vector<128x384xf32> to vector<64x64xf32>
    %59 = arith.truncf %58 : vector<64x64xf32> to vector<64x64xbf16>
    %cst_28 = arith.constant dense<0.000000e+00> : vector<64x64xf32>
    %60 = tpu.matmul %55, %57, %cst_28 {dimension_numbers = #tpu.dot_dimension_numbers<[1], [1], [0], [0], [0, 0, 1, 0], [], []>} : vector<64x16xbf16>, vector<64x16xbf16>, vector<64x64xf32> -> vector<64x64xf32>
    %cst_29 = arith.constant dense<0xFF800000> : vector<64xf32>
    %61 = vector.multi_reduction <maximumf>, %60, %cst_29 [1] : vector<64x64xf32> to vector<64xf32>
    %62 = vector.shape_cast %61 : vector<64xf32> to vector<64x1xf32>
    %63 = vector.broadcast %62 : vector<64x1xf32> to vector<64x64xf32>
    %64 = arith.subf %60, %63 : vector<64x64xf32>
    %65 = math.exp %64 : vector<64x64xf32>
    %cst_30 = arith.constant dense<0.000000e+00> : vector<64xf32>
    %66 = vector.multi_reduction <add>, %65, %cst_30 [1] : vector<64x64xf32> to vector<64xf32>
    %67 = vector.shape_cast %66 : vector<64xf32> to vector<64x1xf32>
    %68 = tpu.reciprocal %67 {approx = true} : vector<64x1xf32> -> vector<64x1xf32>
    %69 = vector.broadcast %68 : vector<64x1xf32> to vector<64x64xf32>
    %70 = arith.mulf %65, %69 : vector<64x64xf32>
    %71 = arith.truncf %70 : vector<64x64xf32> to vector<64x64xbf16>
    %cst_31 = arith.constant dense<0.000000e+00> : vector<64x64xf32>
    %72 = tpu.matmul %71, %59, %cst_31 {dimension_numbers = #tpu.dot_dimension_numbers<[1], [0], [0], [1], [0, 0, 1, 1], [], []>} : vector<64x64xbf16>, vector<64x64xbf16>, vector<64x64xf32> -> vector<64x64xf32>
    %cst_32 = arith.constant 0.000000e+00 : f32
    %73 = vector.broadcast %cst_32 : f32 to vector<64x64xf32>
    %74 = arith.maximumf %72, %73 : vector<64x64xf32>
    %75 = arith.truncf %74 : vector<64x64xf32> to vector<64x64xbf16>
    %c64 = arith.constant 64 : index
    %c0_33 = arith.constant 0 : index
    %76 = vector.load %arg5[%c64, %c0_33] : memref<256x64xbf16, #tpu.memory_space<vmem>>, vector<64x64xbf16>
    %cst_34 = arith.constant dense<0.000000e+00> : vector<64x64xf32>
    %77 = tpu.matmul %75, %76, %cst_34 {dimension_numbers = #tpu.dot_dimension_numbers<[1], [0], [0], [1], [0, 0, 1, 1], [], []>} : vector<64x64xbf16>, vector<64x64xbf16>, vector<64x64xf32> -> vector<64x64xf32>
    %78 = arith.addf %53, %77 : vector<64x64xf32>
    %79 = vector.extract_strided_slice %29 {offsets = [0, 32], sizes = [64, 16], strides = [1, 1]} : vector<128x384xf32> to vector<64x16xf32>
    %80 = arith.truncf %79 : vector<64x16xf32> to vector<64x16xbf16>
    %81 = vector.extract_strided_slice %29 {offsets = [0, 96], sizes = [64, 16], strides = [1, 1]} : vector<128x384xf32> to vector<64x16xf32>
    %82 = arith.truncf %81 : vector<64x16xf32> to vector<64x16xbf16>
    %83 = vector.extract_strided_slice %29 {offsets = [0, 256], sizes = [64, 64], strides = [1, 1]} : vector<128x384xf32> to vector<64x64xf32>
    %84 = arith.truncf %83 : vector<64x64xf32> to vector<64x64xbf16>
    %cst_35 = arith.constant dense<0.000000e+00> : vector<64x64xf32>
    %85 = tpu.matmul %80, %82, %cst_35 {dimension_numbers = #tpu.dot_dimension_numbers<[1], [1], [0], [0], [0, 0, 1, 0], [], []>} : vector<64x16xbf16>, vector<64x16xbf16>, vector<64x64xf32> -> vector<64x64xf32>
    %cst_36 = arith.constant dense<0xFF800000> : vector<64xf32>
    %86 = vector.multi_reduction <maximumf>, %85, %cst_36 [1] : vector<64x64xf32> to vector<64xf32>
    %87 = vector.shape_cast %86 : vector<64xf32> to vector<64x1xf32>
    %88 = vector.broadcast %87 : vector<64x1xf32> to vector<64x64xf32>
    %89 = arith.subf %85, %88 : vector<64x64xf32>
    %90 = math.exp %89 : vector<64x64xf32>
    %cst_37 = arith.constant dense<0.000000e+00> : vector<64xf32>
    %91 = vector.multi_reduction <add>, %90, %cst_37 [1] : vector<64x64xf32> to vector<64xf32>
    %92 = vector.shape_cast %91 : vector<64xf32> to vector<64x1xf32>
    %93 = tpu.reciprocal %92 {approx = true} : vector<64x1xf32> -> vector<64x1xf32>
    %94 = vector.broadcast %93 : vector<64x1xf32> to vector<64x64xf32>
    %95 = arith.mulf %90, %94 : vector<64x64xf32>
    %96 = arith.truncf %95 : vector<64x64xf32> to vector<64x64xbf16>
    %cst_38 = arith.constant dense<0.000000e+00> : vector<64x64xf32>
    %97 = tpu.matmul %96, %84, %cst_38 {dimension_numbers = #tpu.dot_dimension_numbers<[1], [0], [0], [1], [0, 0, 1, 1], [], []>} : vector<64x64xbf16>, vector<64x64xbf16>, vector<64x64xf32> -> vector<64x64xf32>
    %cst_39 = arith.constant 0.000000e+00 : f32
    %98 = vector.broadcast %cst_39 : f32 to vector<64x64xf32>
    %99 = arith.maximumf %97, %98 : vector<64x64xf32>
    %100 = arith.truncf %99 : vector<64x64xf32> to vector<64x64xbf16>
    %c128 = arith.constant 128 : index
    %c0_40 = arith.constant 0 : index
    %101 = vector.load %arg5[%c128, %c0_40] : memref<256x64xbf16, #tpu.memory_space<vmem>>, vector<64x64xbf16>
    %cst_41 = arith.constant dense<0.000000e+00> : vector<64x64xf32>
    %102 = tpu.matmul %100, %101, %cst_41 {dimension_numbers = #tpu.dot_dimension_numbers<[1], [0], [0], [1], [0, 0, 1, 1], [], []>} : vector<64x64xbf16>, vector<64x64xbf16>, vector<64x64xf32> -> vector<64x64xf32>
    %103 = arith.addf %78, %102 : vector<64x64xf32>
    %104 = vector.extract_strided_slice %29 {offsets = [0, 48], sizes = [64, 16], strides = [1, 1]} : vector<128x384xf32> to vector<64x16xf32>
    %105 = arith.truncf %104 : vector<64x16xf32> to vector<64x16xbf16>
    %106 = vector.extract_strided_slice %29 {offsets = [0, 112], sizes = [64, 16], strides = [1, 1]} : vector<128x384xf32> to vector<64x16xf32>
    %107 = arith.truncf %106 : vector<64x16xf32> to vector<64x16xbf16>
    %108 = vector.extract_strided_slice %29 {offsets = [0, 320], sizes = [64, 64], strides = [1, 1]} : vector<128x384xf32> to vector<64x64xf32>
    %109 = arith.truncf %108 : vector<64x64xf32> to vector<64x64xbf16>
    %cst_42 = arith.constant dense<0.000000e+00> : vector<64x64xf32>
    %110 = tpu.matmul %105, %107, %cst_42 {dimension_numbers = #tpu.dot_dimension_numbers<[1], [1], [0], [0], [0, 0, 1, 0], [], []>} : vector<64x16xbf16>, vector<64x16xbf16>, vector<64x64xf32> -> vector<64x64xf32>
    %cst_43 = arith.constant dense<0xFF800000> : vector<64xf32>
    %111 = vector.multi_reduction <maximumf>, %110, %cst_43 [1] : vector<64x64xf32> to vector<64xf32>
    %112 = vector.shape_cast %111 : vector<64xf32> to vector<64x1xf32>
    %113 = vector.broadcast %112 : vector<64x1xf32> to vector<64x64xf32>
    %114 = arith.subf %110, %113 : vector<64x64xf32>
    %115 = math.exp %114 : vector<64x64xf32>
    %cst_44 = arith.constant dense<0.000000e+00> : vector<64xf32>
    %116 = vector.multi_reduction <add>, %115, %cst_44 [1] : vector<64x64xf32> to vector<64xf32>
    %117 = vector.shape_cast %116 : vector<64xf32> to vector<64x1xf32>
    %118 = tpu.reciprocal %117 {approx = true} : vector<64x1xf32> -> vector<64x1xf32>
    %119 = vector.broadcast %118 : vector<64x1xf32> to vector<64x64xf32>
    %120 = arith.mulf %115, %119 : vector<64x64xf32>
    %121 = arith.truncf %120 : vector<64x64xf32> to vector<64x64xbf16>
    %cst_45 = arith.constant dense<0.000000e+00> : vector<64x64xf32>
    %122 = tpu.matmul %121, %109, %cst_45 {dimension_numbers = #tpu.dot_dimension_numbers<[1], [0], [0], [1], [0, 0, 1, 1], [], []>} : vector<64x64xbf16>, vector<64x64xbf16>, vector<64x64xf32> -> vector<64x64xf32>
    %cst_46 = arith.constant 0.000000e+00 : f32
    %123 = vector.broadcast %cst_46 : f32 to vector<64x64xf32>
    %124 = arith.maximumf %122, %123 : vector<64x64xf32>
    %125 = arith.truncf %124 : vector<64x64xf32> to vector<64x64xbf16>
    %c192 = arith.constant 192 : index
    %c0_47 = arith.constant 0 : index
    %126 = vector.load %arg5[%c192, %c0_47] : memref<256x64xbf16, #tpu.memory_space<vmem>>, vector<64x64xbf16>
    %cst_48 = arith.constant dense<0.000000e+00> : vector<64x64xf32>
    %127 = tpu.matmul %125, %126, %cst_48 {dimension_numbers = #tpu.dot_dimension_numbers<[1], [0], [0], [1], [0, 0, 1, 1], [], []>} : vector<64x64xbf16>, vector<64x64xbf16>, vector<64x64xf32> -> vector<64x64xf32>
    %128 = arith.addf %103, %127 : vector<64x64xf32>
    %129 = vector.extract_strided_slice %29 {offsets = [64, 0], sizes = [64, 16], strides = [1, 1]} : vector<128x384xf32> to vector<64x16xf32>
    %130 = arith.truncf %129 : vector<64x16xf32> to vector<64x16xbf16>
    %131 = vector.extract_strided_slice %29 {offsets = [64, 64], sizes = [64, 16], strides = [1, 1]} : vector<128x384xf32> to vector<64x16xf32>
    %132 = arith.truncf %131 : vector<64x16xf32> to vector<64x16xbf16>
    %133 = vector.extract_strided_slice %29 {offsets = [64, 128], sizes = [64, 64], strides = [1, 1]} : vector<128x384xf32> to vector<64x64xf32>
    %134 = arith.truncf %133 : vector<64x64xf32> to vector<64x64xbf16>
    %cst_49 = arith.constant dense<0.000000e+00> : vector<64x64xf32>
    %135 = tpu.matmul %130, %132, %cst_49 {dimension_numbers = #tpu.dot_dimension_numbers<[1], [1], [0], [0], [0, 0, 1, 0], [], []>} : vector<64x16xbf16>, vector<64x16xbf16>, vector<64x64xf32> -> vector<64x64xf32>
    %cst_50 = arith.constant dense<0xFF800000> : vector<64xf32>
    %136 = vector.multi_reduction <maximumf>, %135, %cst_50 [1] : vector<64x64xf32> to vector<64xf32>
    %137 = vector.shape_cast %136 : vector<64xf32> to vector<64x1xf32>
    %138 = vector.broadcast %137 : vector<64x1xf32> to vector<64x64xf32>
    %139 = arith.subf %135, %138 : vector<64x64xf32>
    %140 = math.exp %139 : vector<64x64xf32>
    %cst_51 = arith.constant dense<0.000000e+00> : vector<64xf32>
    %141 = vector.multi_reduction <add>, %140, %cst_51 [1] : vector<64x64xf32> to vector<64xf32>
    %142 = vector.shape_cast %141 : vector<64xf32> to vector<64x1xf32>
    %143 = tpu.reciprocal %142 {approx = true} : vector<64x1xf32> -> vector<64x1xf32>
    %144 = vector.broadcast %143 : vector<64x1xf32> to vector<64x64xf32>
    %145 = arith.mulf %140, %144 : vector<64x64xf32>
    %146 = arith.truncf %145 : vector<64x64xf32> to vector<64x64xbf16>
    %cst_52 = arith.constant dense<0.000000e+00> : vector<64x64xf32>
    %147 = tpu.matmul %146, %134, %cst_52 {dimension_numbers = #tpu.dot_dimension_numbers<[1], [0], [0], [1], [0, 0, 1, 1], [], []>} : vector<64x64xbf16>, vector<64x64xbf16>, vector<64x64xf32> -> vector<64x64xf32>
    %cst_53 = arith.constant 0.000000e+00 : f32
    %148 = vector.broadcast %cst_53 : f32 to vector<64x64xf32>
    %149 = arith.maximumf %147, %148 : vector<64x64xf32>
    %150 = arith.truncf %149 : vector<64x64xf32> to vector<64x64xbf16>
    %c0_54 = arith.constant 0 : index
    %c0_55 = arith.constant 0 : index
    %151 = vector.load %arg5[%c0_54, %c0_55] : memref<256x64xbf16, #tpu.memory_space<vmem>>, vector<64x64xbf16>
    %cst_56 = arith.constant dense<0.000000e+00> : vector<64x64xf32>
    %152 = tpu.matmul %150, %151, %cst_56 {dimension_numbers = #tpu.dot_dimension_numbers<[1], [0], [0], [1], [0, 0, 1, 1], [], []>} : vector<64x64xbf16>, vector<64x64xbf16>, vector<64x64xf32> -> vector<64x64xf32>
    %153 = vector.extract_strided_slice %29 {offsets = [64, 16], sizes = [64, 16], strides = [1, 1]} : vector<128x384xf32> to vector<64x16xf32>
    %154 = arith.truncf %153 : vector<64x16xf32> to vector<64x16xbf16>
    %155 = vector.extract_strided_slice %29 {offsets = [64, 80], sizes = [64, 16], strides = [1, 1]} : vector<128x384xf32> to vector<64x16xf32>
    %156 = arith.truncf %155 : vector<64x16xf32> to vector<64x16xbf16>
    %157 = vector.extract_strided_slice %29 {offsets = [64, 192], sizes = [64, 64], strides = [1, 1]} : vector<128x384xf32> to vector<64x64xf32>
    %158 = arith.truncf %157 : vector<64x64xf32> to vector<64x64xbf16>
    %cst_57 = arith.constant dense<0.000000e+00> : vector<64x64xf32>
    %159 = tpu.matmul %154, %156, %cst_57 {dimension_numbers = #tpu.dot_dimension_numbers<[1], [1], [0], [0], [0, 0, 1, 0], [], []>} : vector<64x16xbf16>, vector<64x16xbf16>, vector<64x64xf32> -> vector<64x64xf32>
    %cst_58 = arith.constant dense<0xFF800000> : vector<64xf32>
    %160 = vector.multi_reduction <maximumf>, %159, %cst_58 [1] : vector<64x64xf32> to vector<64xf32>
    %161 = vector.shape_cast %160 : vector<64xf32> to vector<64x1xf32>
    %162 = vector.broadcast %161 : vector<64x1xf32> to vector<64x64xf32>
    %163 = arith.subf %159, %162 : vector<64x64xf32>
    %164 = math.exp %163 : vector<64x64xf32>
    %cst_59 = arith.constant dense<0.000000e+00> : vector<64xf32>
    %165 = vector.multi_reduction <add>, %164, %cst_59 [1] : vector<64x64xf32> to vector<64xf32>
    %166 = vector.shape_cast %165 : vector<64xf32> to vector<64x1xf32>
    %167 = tpu.reciprocal %166 {approx = true} : vector<64x1xf32> -> vector<64x1xf32>
    %168 = vector.broadcast %167 : vector<64x1xf32> to vector<64x64xf32>
    %169 = arith.mulf %164, %168 : vector<64x64xf32>
    %170 = arith.truncf %169 : vector<64x64xf32> to vector<64x64xbf16>
    %cst_60 = arith.constant dense<0.000000e+00> : vector<64x64xf32>
    %171 = tpu.matmul %170, %158, %cst_60 {dimension_numbers = #tpu.dot_dimension_numbers<[1], [0], [0], [1], [0, 0, 1, 1], [], []>} : vector<64x64xbf16>, vector<64x64xbf16>, vector<64x64xf32> -> vector<64x64xf32>
    %cst_61 = arith.constant 0.000000e+00 : f32
    %172 = vector.broadcast %cst_61 : f32 to vector<64x64xf32>
    %173 = arith.maximumf %171, %172 : vector<64x64xf32>
    %174 = arith.truncf %173 : vector<64x64xf32> to vector<64x64xbf16>
    %c64_62 = arith.constant 64 : index
    %c0_63 = arith.constant 0 : index
    %175 = vector.load %arg5[%c64_62, %c0_63] : memref<256x64xbf16, #tpu.memory_space<vmem>>, vector<64x64xbf16>
    %cst_64 = arith.constant dense<0.000000e+00> : vector<64x64xf32>
    %176 = tpu.matmul %174, %175, %cst_64 {dimension_numbers = #tpu.dot_dimension_numbers<[1], [0], [0], [1], [0, 0, 1, 1], [], []>} : vector<64x64xbf16>, vector<64x64xbf16>, vector<64x64xf32> -> vector<64x64xf32>
    %177 = arith.addf %152, %176 : vector<64x64xf32>
    %178 = vector.extract_strided_slice %29 {offsets = [64, 32], sizes = [64, 16], strides = [1, 1]} : vector<128x384xf32> to vector<64x16xf32>
    %179 = arith.truncf %178 : vector<64x16xf32> to vector<64x16xbf16>
    %180 = vector.extract_strided_slice %29 {offsets = [64, 96], sizes = [64, 16], strides = [1, 1]} : vector<128x384xf32> to vector<64x16xf32>
    %181 = arith.truncf %180 : vector<64x16xf32> to vector<64x16xbf16>
    %182 = vector.extract_strided_slice %29 {offsets = [64, 256], sizes = [64, 64], strides = [1, 1]} : vector<128x384xf32> to vector<64x64xf32>
    %183 = arith.truncf %182 : vector<64x64xf32> to vector<64x64xbf16>
    %cst_65 = arith.constant dense<0.000000e+00> : vector<64x64xf32>
    %184 = tpu.matmul %179, %181, %cst_65 {dimension_numbers = #tpu.dot_dimension_numbers<[1], [1], [0], [0], [0, 0, 1, 0], [], []>} : vector<64x16xbf16>, vector<64x16xbf16>, vector<64x64xf32> -> vector<64x64xf32>
    %cst_66 = arith.constant dense<0xFF800000> : vector<64xf32>
    %185 = vector.multi_reduction <maximumf>, %184, %cst_66 [1] : vector<64x64xf32> to vector<64xf32>
    %186 = vector.shape_cast %185 : vector<64xf32> to vector<64x1xf32>
    %187 = vector.broadcast %186 : vector<64x1xf32> to vector<64x64xf32>
    %188 = arith.subf %184, %187 : vector<64x64xf32>
    %189 = math.exp %188 : vector<64x64xf32>
    %cst_67 = arith.constant dense<0.000000e+00> : vector<64xf32>
    %190 = vector.multi_reduction <add>, %189, %cst_67 [1] : vector<64x64xf32> to vector<64xf32>
    %191 = vector.shape_cast %190 : vector<64xf32> to vector<64x1xf32>
    %192 = tpu.reciprocal %191 {approx = true} : vector<64x1xf32> -> vector<64x1xf32>
    %193 = vector.broadcast %192 : vector<64x1xf32> to vector<64x64xf32>
    %194 = arith.mulf %189, %193 : vector<64x64xf32>
    %195 = arith.truncf %194 : vector<64x64xf32> to vector<64x64xbf16>
    %cst_68 = arith.constant dense<0.000000e+00> : vector<64x64xf32>
    %196 = tpu.matmul %195, %183, %cst_68 {dimension_numbers = #tpu.dot_dimension_numbers<[1], [0], [0], [1], [0, 0, 1, 1], [], []>} : vector<64x64xbf16>, vector<64x64xbf16>, vector<64x64xf32> -> vector<64x64xf32>
    %cst_69 = arith.constant 0.000000e+00 : f32
    %197 = vector.broadcast %cst_69 : f32 to vector<64x64xf32>
    %198 = arith.maximumf %196, %197 : vector<64x64xf32>
    %199 = arith.truncf %198 : vector<64x64xf32> to vector<64x64xbf16>
    %c128_70 = arith.constant 128 : index
    %c0_71 = arith.constant 0 : index
    %200 = vector.load %arg5[%c128_70, %c0_71] : memref<256x64xbf16, #tpu.memory_space<vmem>>, vector<64x64xbf16>
    %cst_72 = arith.constant dense<0.000000e+00> : vector<64x64xf32>
    %201 = tpu.matmul %199, %200, %cst_72 {dimension_numbers = #tpu.dot_dimension_numbers<[1], [0], [0], [1], [0, 0, 1, 1], [], []>} : vector<64x64xbf16>, vector<64x64xbf16>, vector<64x64xf32> -> vector<64x64xf32>
    %202 = arith.addf %177, %201 : vector<64x64xf32>
    %203 = vector.extract_strided_slice %29 {offsets = [64, 48], sizes = [64, 16], strides = [1, 1]} : vector<128x384xf32> to vector<64x16xf32>
    %204 = arith.truncf %203 : vector<64x16xf32> to vector<64x16xbf16>
    %205 = vector.extract_strided_slice %29 {offsets = [64, 112], sizes = [64, 16], strides = [1, 1]} : vector<128x384xf32> to vector<64x16xf32>
    %206 = arith.truncf %205 : vector<64x16xf32> to vector<64x16xbf16>
    %207 = vector.extract_strided_slice %29 {offsets = [64, 320], sizes = [64, 64], strides = [1, 1]} : vector<128x384xf32> to vector<64x64xf32>
    %208 = arith.truncf %207 : vector<64x64xf32> to vector<64x64xbf16>
    %cst_73 = arith.constant dense<0.000000e+00> : vector<64x64xf32>
    %209 = tpu.matmul %204, %206, %cst_73 {dimension_numbers = #tpu.dot_dimension_numbers<[1], [1], [0], [0], [0, 0, 1, 0], [], []>} : vector<64x16xbf16>, vector<64x16xbf16>, vector<64x64xf32> -> vector<64x64xf32>
    %cst_74 = arith.constant dense<0xFF800000> : vector<64xf32>
    %210 = vector.multi_reduction <maximumf>, %209, %cst_74 [1] : vector<64x64xf32> to vector<64xf32>
    %211 = vector.shape_cast %210 : vector<64xf32> to vector<64x1xf32>
    %212 = vector.broadcast %211 : vector<64x1xf32> to vector<64x64xf32>
    %213 = arith.subf %209, %212 : vector<64x64xf32>
    %214 = math.exp %213 : vector<64x64xf32>
    %cst_75 = arith.constant dense<0.000000e+00> : vector<64xf32>
    %215 = vector.multi_reduction <add>, %214, %cst_75 [1] : vector<64x64xf32> to vector<64xf32>
    %216 = vector.shape_cast %215 : vector<64xf32> to vector<64x1xf32>
    %217 = tpu.reciprocal %216 {approx = true} : vector<64x1xf32> -> vector<64x1xf32>
    %218 = vector.broadcast %217 : vector<64x1xf32> to vector<64x64xf32>
    %219 = arith.mulf %214, %218 : vector<64x64xf32>
    %220 = arith.truncf %219 : vector<64x64xf32> to vector<64x64xbf16>
    %cst_76 = arith.constant dense<0.000000e+00> : vector<64x64xf32>
    %221 = tpu.matmul %220, %208, %cst_76 {dimension_numbers = #tpu.dot_dimension_numbers<[1], [0], [0], [1], [0, 0, 1, 1], [], []>} : vector<64x64xbf16>, vector<64x64xbf16>, vector<64x64xf32> -> vector<64x64xf32>
    %cst_77 = arith.constant 0.000000e+00 : f32
    %222 = vector.broadcast %cst_77 : f32 to vector<64x64xf32>
    %223 = arith.maximumf %221, %222 : vector<64x64xf32>
    %224 = arith.truncf %223 : vector<64x64xf32> to vector<64x64xbf16>
    %c192_78 = arith.constant 192 : index
    %c0_79 = arith.constant 0 : index
    %225 = vector.load %arg5[%c192_78, %c0_79] : memref<256x64xbf16, #tpu.memory_space<vmem>>, vector<64x64xbf16>
    %cst_80 = arith.constant dense<0.000000e+00> : vector<64x64xf32>
    %226 = tpu.matmul %224, %225, %cst_80 {dimension_numbers = #tpu.dot_dimension_numbers<[1], [0], [0], [1], [0, 0, 1, 1], [], []>} : vector<64x64xbf16>, vector<64x64xbf16>, vector<64x64xf32> -> vector<64x64xf32>
    %227 = arith.addf %202, %226 : vector<64x64xf32>
    %228 = tpu.concatenate %128, %227 in 0 : vector<64x64xf32>, vector<64x64xf32> -> vector<128x64xf32>
    %229 = arith.addf %23, %228 : vector<128x64xf32>
    %c3 = arith.constant 3 : index
    %c0_81 = arith.constant 0 : index
    %230 = vector.load %arg6[%c3, %c0_81] : memref<8x384xf32, #tpu.memory_space<vmem>>, vector<1x64xf32>
    %231 = vector.broadcast %230 : vector<1x64xf32> to vector<128x64xf32>
    %232 = arith.addf %229, %231 : vector<128x64xf32>
    %c1_82 = arith.constant 1 : index
    %c0_83 = arith.constant 0 : index
    %c0_84 = arith.constant 0 : index
    %233 = vector.load %arg2[%c1_82, %c0_83, %c0_84] : memref<2x64x128xbf16, #tpu.memory_space<vmem>>, vector<1x64x128xbf16>
    %234 = vector.shape_cast %233 : vector<1x64x128xbf16> to vector<64x128xbf16>
    %c4 = arith.constant 4 : index
    %c0_85 = arith.constant 0 : index
    %235 = vector.load %arg6[%c4, %c0_85] : memref<8x384xf32, #tpu.memory_space<vmem>>, vector<1x128xf32>
    %c1_86 = arith.constant 1 : index
    %c0_87 = arith.constant 0 : index
    %c0_88 = arith.constant 0 : index
    %236 = vector.load %arg3[%c1_86, %c0_87, %c0_88] : memref<2x128x64xbf16, #tpu.memory_space<vmem>>, vector<1x128x64xbf16>
    %237 = vector.shape_cast %236 : vector<1x128x64xbf16> to vector<128x64xbf16>
    %c5 = arith.constant 5 : index
    %c0_89 = arith.constant 0 : index
    %238 = vector.load %arg6[%c5, %c0_89] : memref<8x384xf32, #tpu.memory_space<vmem>>, vector<1x64xf32>
    %239 = arith.truncf %232 : vector<128x64xf32> to vector<128x64xbf16>
    %cst_90 = arith.constant dense<0.000000e+00> : vector<128x128xf32>
    %240 = tpu.matmul %239, %234, %cst_90 {dimension_numbers = #tpu.dot_dimension_numbers<[1], [0], [0], [1], [0, 0, 1, 1], [], []>} : vector<128x64xbf16>, vector<64x128xbf16>, vector<128x128xf32> -> vector<128x128xf32>
    %241 = vector.broadcast %235 : vector<1x128xf32> to vector<128x128xf32>
    %242 = arith.addf %240, %241 : vector<128x128xf32>
    %cst_91 = arith.constant 0.000000e+00 : f32
    %243 = vector.broadcast %cst_91 : f32 to vector<128x128xf32>
    %244 = arith.maximumf %242, %243 : vector<128x128xf32>
    %245 = arith.truncf %244 : vector<128x128xf32> to vector<128x128xbf16>
    %cst_92 = arith.constant dense<0.000000e+00> : vector<128x64xf32>
    %246 = tpu.matmul %245, %237, %cst_92 {dimension_numbers = #tpu.dot_dimension_numbers<[1], [0], [0], [1], [0, 0, 1, 1], [], []>} : vector<128x128xbf16>, vector<128x64xbf16>, vector<128x64xf32> -> vector<128x64xf32>
    %247 = vector.broadcast %238 : vector<1x64xf32> to vector<128x64xf32>
    %248 = arith.addf %246, %247 : vector<128x64xf32>
    %249 = arith.addf %232, %248 : vector<128x64xf32>
    %250 = vector.extract_strided_slice %249 {offsets = [0, 0], sizes = [64, 64], strides = [1, 1]} : vector<128x64xf32> to vector<64x64xf32>
    %251 = tpu.transpose %250, [1, 0] : vector<64x64xf32> -> vector<64x64xf32>
    %c0_93 = arith.constant 0 : index
    %c0_94 = arith.constant 0 : index
    %c0_95 = arith.constant 0 : index
    %252 = vector.load %arg7[%c0_93, %c0_94, %c0_95] : memref<2x64x64xf32, #tpu.memory_space<vmem>>, vector<1x64x64xf32>
    %253 = vector.shape_cast %252 : vector<1x64x64xf32> to vector<64x64xf32>
    %254 = vector.shape_cast %251 : vector<64x64xf32> to vector<1x64x64xf32>
    tpu.vector_store %arg7[%c0_93, %c0_94, %c0_95], %254 {strides = array<i32>} : memref<2x64x64xf32, #tpu.memory_space<vmem>>, vector<1x64x64xf32>,
    %255 = vector.extract_strided_slice %249 {offsets = [64, 0], sizes = [64, 64], strides = [1, 1]} : vector<128x64xf32> to vector<64x64xf32>
    %256 = tpu.transpose %255, [1, 0] : vector<64x64xf32> -> vector<64x64xf32>
    %c1_96 = arith.constant 1 : index
    %c0_97 = arith.constant 0 : index
    %c0_98 = arith.constant 0 : index
    %257 = vector.load %arg7[%c1_96, %c0_97, %c0_98] : memref<2x64x64xf32, #tpu.memory_space<vmem>>, vector<1x64x64xf32>
    %258 = vector.shape_cast %257 : vector<1x64x64xf32> to vector<64x64xf32>
    %259 = vector.shape_cast %256 : vector<64x64xf32> to vector<1x64x64xf32>
    tpu.vector_store %arg7[%c1_96, %c0_97, %c0_98], %259 {strides = array<i32>} : memref<2x64x64xf32, #tpu.memory_space<vmem>>, vector<1x64x64xf32>,
    return
  }
  func.func @transform_0(%arg0: i32) -> (i32, i32, i32) {
    %c0_i32 = arith.constant 0 : i32
    %c0_i32_0 = arith.constant 0 : i32
    %c0_i32_1 = arith.constant 0 : i32
    return %arg0, %c0_i32, %c0_i32_0 : i32, i32, i32
  }
  func.func @transform_1(%arg0: i32) -> (i32, i32, i32) {
    %c0_i32 = arith.constant 0 : i32
    %c0_i32_0 = arith.constant 0 : i32
    %c0_i32_1 = arith.constant 0 : i32
    %c0_i32_2 = arith.constant 0 : i32
    return %c0_i32, %c0_i32_0, %c0_i32_1 : i32, i32, i32
  }
  func.func @transform_2(%arg0: i32) -> (i32, i32, i32) {
    %c0_i32 = arith.constant 0 : i32
    %c0_i32_0 = arith.constant 0 : i32
    %c0_i32_1 = arith.constant 0 : i32
    %c0_i32_2 = arith.constant 0 : i32
    return %c0_i32, %c0_i32_0, %c0_i32_1 : i32, i32, i32
  }
  func.func @transform_3(%arg0: i32) -> (i32, i32) {
    %c0_i32 = arith.constant 0 : i32
    %c0_i32_0 = arith.constant 0 : i32
    %c0_i32_1 = arith.constant 0 : i32
    return %c0_i32, %c0_i32_0 : i32, i32
  }
  func.func @transform_4(%arg0: i32) -> (i32, i32) {
    %c0_i32 = arith.constant 0 : i32
    %c0_i32_0 = arith.constant 0 : i32
    %c0_i32_1 = arith.constant 0 : i32
    return %c0_i32, %c0_i32_0 : i32, i32
  }
  func.func @transform_5(%arg0: i32) -> (i32, i32) {
    %c0_i32 = arith.constant 0 : i32
    %c0_i32_0 = arith.constant 0 : i32
    %c0_i32_1 = arith.constant 0 : i32
    return %c0_i32, %c0_i32_0 : i32, i32
  }
  func.func @transform_6(%arg0: i32) -> (i32, i32, i32) {
    %c0_i32 = arith.constant 0 : i32
    %c0_i32_0 = arith.constant 0 : i32
    %c0_i32_1 = arith.constant 0 : i32
    return %arg0, %c0_i32, %c0_i32_0 : i32, i32, i32
  }
}

</mosaic_0001>

<bundles_post_ra>
// kernel: tpu_custom_call.1
= control target key start
LH: loop header
LB: loop body
LE: loop exit
PB: predicated region body
PF: predicated region fallthrough
CT: control target
= control target key end

     0   :  { %s7679_s0 = inlined_call_operand.vmem [shape: f32[2,64,64], index: 0, kind: input, shape index: {}]   ;;  %s7680_s1 = inlined_call_operand.vmem [shape: bf16[2,64,128], index: 1, kind: input, shape index: {}]   ;;  %s7681_s2 = inlined_call_operand.vmem [shape: bf16[2,128,64], index: 2, kind: input, shape index: {}]   ;;  %s7682_s3 = inlined_call_operand.vmem [shape: bf16[64,384], index: 3, kind: input, shape index: {}]   ;;  %s7683_s4 = inlined_call_operand.vmem [shape: bf16[256,64], index: 4, kind: input, shape index: {}]   ;;  %s7684_s5 = inlined_call_operand.vmem [shape: f32[8,384], index: 5, kind: input, shape index: {}]   ;;  %s7685_s6 = inlined_call_operand.hbm [shape: f32[2,64,64], index: 6, kind: output, shape index: {}]  }
   0x1   :  { %v25_v0 = vld [vmem:[%s7679_s0] sm:$0xff]  ;;  %v26_v2 = vld [vmem:[%s7679_s0 + $0x8] sm:$0xff]  ;;  %v27_v4 = vld [vmem:[%s7679_s0 + $0x10] sm:$0xff] }
   0x2   :  { %33 = vxpose.xlu0.b32.start [1/8] (short) (narrow) %v25_v0, 64  ;;  %v4452_v1 = vld [vmem:[%s7679_s0 + $0x40] sm:$0xff]  ;;  %v4453_v3 = vld [vmem:[%s7679_s0 + $0x48] sm:$0xff]  ;;  %v4454_v5 = vld [vmem:[%s7679_s0 + $0x50] sm:$0xff] }
   0x3   :  { %74 = vxpose.xlu1.b32.start [1/8] (short) (narrow) %v4452_v1, 64  ;;  %v5553_v6 = vld [vmem:[%s7680_s1] sm:$0xff]   ;;  %v5554_v7 = vld [vmem:[%s7680_s1 + $0x8] sm:$0xff]   ;;  %v28_v8 = vld [vmem:[%s7679_s0 + $0x18] sm:$0xff] }
   0x4   :  { %4925 = vmatprep.subr.bf16.mxu0 %v5553_v6  ;;  %v4455_v9 = vld [vmem:[%s7679_s0 + $0x58] sm:$0xff]  ;;  %v5555_v10 = vld [vmem:[%s7680_s1 + $0x10] sm:$0xff]   ;;  %v29_v11 = vld [vmem:[%s7679_s0 + $0x20] sm:$0xff] }
   0x5   :  { %4926 = vmatpush3.bf16.msra.mxu0 %v5553_v6  ;;  %v5556_v12 = vld [vmem:[%s7680_s1 + $0x18] sm:$0xff]   ;;  %v4456_v13 = vld [vmem:[%s7679_s0 + $0x60] sm:$0xff]  ;;  %v30_v14 = vld [vmem:[%s7679_s0 + $0x28] sm:$0xff] }
   0x6   :  { %34 = vxpose.xlu0.b32.cont [2/8] (short) (narrow) %v26_v2, 64  ;;  %4927 = vmatprep.subr.bf16.mxu0 %v5554_v7  ;;  %v4457_v15 = vld [vmem:[%s7679_s0 + $0x68] sm:$0xff]  ;;  %v31_v16 = vld [vmem:[%s7679_s0 + $0x30] sm:$0xff]  ;;  %v32_v18 = vld [vmem:[%s7679_s0 + $0x38] sm:$0xff] }
   0x7   :  { %75 = vxpose.xlu1.b32.cont [2/8] (short) (narrow) %v4453_v3, 64  ;;  %v4458_v17 = vld [vmem:[%s7679_s0 + $0x70] sm:$0xff]  ;;  %v4459_v19 = vld [vmem:[%s7679_s0 + $0x78] sm:$0xff] }
   0x9   :  { %4928 = vmatpush3.bf16.msra.mxu0 %v5554_v7 }
   0xa   :  { %35 = vxpose.xlu0.b32.cont [3/8] (short) (narrow) %v27_v4, 64  ;;  %4929 = vmatprep.subr.bf16.mxu0 %v5555_v10 }
   0xb   :  { %76 = vxpose.xlu1.b32.cont [3/8] (short) (narrow) %v4454_v5, 64 }
   0xd   :  { %4930 = vmatpush3.bf16.msra.mxu0 %v5555_v10 }
   0xe   :  { %36 = vxpose.xlu0.b32.cont [4/8] (short) (narrow) %v28_v8, 64  ;;  %4931 = vmatprep.subr.bf16.mxu0 %v5556_v12 }
   0xf   :  { %77 = vxpose.xlu1.b32.cont [4/8] (short) (narrow) %v4455_v9, 64 }
  0x11   :  { %4932 = vmatpush3.bf16.msra.mxu0 %v5556_v12 }
  0x12   :  { %37 = vxpose.xlu0.b32.cont [5/8] (short) (narrow) %v29_v11, 64 }
  0x13   :  { %78 = vxpose.xlu1.b32.cont [5/8] (short) (narrow) %v4456_v13, 64 }
  0x16   :  { %38 = vxpose.xlu0.b32.cont [6/8] (short) (narrow) %v30_v14, 64 }
  0x17   :  { %79 = vxpose.xlu1.b32.cont [6/8] (short) (narrow) %v4457_v15, 64 }
  0x1a   :  { %39 = vxpose.xlu0.b32.cont [7/8] (short) (narrow) %v31_v16, 64 }
  0x1b   :  { %80 = vxpose.xlu1.b32.cont [7/8] (short) (narrow) %v4458_v17, 64 }
  0x1e   :  { %40 = vxpose.xlu0.b32.end [8/8] (short) (narrow) %v32_v18, 64 }
  0x1f   :  { %81 = vxpose.xlu1.b32.end [8/8] (short) (narrow) %v4459_v19, 64 }
  0x20   :  { %11 = vsyncpa [#allocation3], 0  ;;  %v5557_v20 = vld [vmem:[%s7681_s2] sm:$0xff]   ;;  %v5558_v21 = vld [vmem:[%s7681_s2 + $0x8] sm:$0xff]   ;;  %vm164_vm0 = vcmask 523264   ;;  %vm831_vm1 = vcmask 130048  }
  0x21   :  { %4949 = vmatprep.subr.bf16.mxu0 %v5557_v20  ;;  %5445 = vmatprep.subr.bf16.mxu1 %v5557_v20  ;;  %v5559_v22 = vld [vmem:[%s7681_s2 + $0x10] sm:$0xff]   ;;  %v5560_v23 = vld [vmem:[%s7681_s2 + $0x18] sm:$0xff]   ;;  %v5561_v24 = vld [vmem:[%s7681_s2 + $0x20] sm:$0xff]   ;;  %s5906_s8 = smov 64   ;;  %s5907_s9 = smov 48  }
  0x22   :  { %5453 = vmatpush3.bf16.msra.mxu1 %v5557_v20  ;;  %v5562_v25 = vld [vmem:[%s7681_s2 + $0x28] sm:$0xff]   ;;  %v5563_v50 = vld [vmem:[%s7681_s2 + $0x30] sm:$0xff]   ;;  %v5564_v51 = vld [vmem:[%s7681_s2 + $0x38] sm:$0xff]   ;;  %s5908_s10 = smov 112   ;;  %s5909_s11 = smov 32  }
  0x23   :  { %5446 = vmatprep.subr.bf16.mxu1 %v5558_v21  ;;  %v5567_v52 = vld [vmem:[%s7682_s3 + $0x4] ss:$12 sps:$4 sm:$0xff]   ;;  %v6097_v53 = vld [vmem:[%s7682_s3 + $0x8] ss:$12 sps:$4 sm:$0xff]   ;;  %v6103_v54 = vld [vmem:[%s7684_s5] ss:$0 sm:$0xff] }
  0x24   :  { %v5565_v5 = vld [vmem:[%s7682_s3] ss:$12 sps:$4 sm:$0xff]   ;;  %v5571_v6 = vld [vmem:[%s7682_s3 + $0x1c] ss:$12 sps:$4 sm:$0xff]   ;;  %v5569_v7 = vld [vmem:[%s7682_s3 + $0x18] ss:$12 sps:$4 sm:$0xff]  }
  0x25   :  { %s5910_s12 = smov 96   ;;  %s5911_s13 = smov 16  }
  0x26   :  { %5454 = vmatpush3.bf16.msra.mxu1 %v5558_v21  ;;  %s5912_s14 = smov 80  }
  0x27   :  { %5447 = vmatprep.subr.bf16.mxu1 %v5559_v22 }
  0x2a   :  { %5455 = vmatpush3.bf16.msra.mxu1 %v5559_v22 }
  0x2b   :  { %5448 = vmatprep.subr.bf16.mxu1 %v5560_v23 }
  0x2e   :  { %5456 = vmatpush3.bf16.msra.mxu1 %v5560_v23 }
  0x2f   :  { %5449 = vmatprep.subr.bf16.mxu1 %v5561_v24 }
  0x32   :  { %5457 = vmatpush3.bf16.msra.mxu1 %v5561_v24 }
  0x33   :  { %5450 = vmatprep.subr.bf16.mxu1 %v5562_v25 }
  0x36   :  { %5458 = vmatpush3.bf16.msra.mxu1 %v5562_v25 }
  0x37   :  { %5451 = vmatprep.subr.bf16.mxu1 %v5563_v50 }
  0x3a   :  { %5459 = vmatpush3.bf16.msra.mxu1 %v5563_v50 }
  0x3b   :  { %5452 = vmatprep.subr.bf16.mxu1 %v5564_v51 }
  0x3e   :  { %5460 = vmatpush3.bf16.msra.mxu1 %v5564_v51 }
  0x3f   :  { %4981 = vmatprep.subr.bf16.mxu1 %v6097_v53 }
  0x82   :  { %v6029_v26 = vpop.trf.xlu0 }
  0x83   :  { %v6031_v27 = vpop.trf.xlu1 }
  0x86   :  { %v6033_v28 = vpop.trf.xlu0 }
  0x87   :  { %v132_v29 = vpack.c.bf16 %v6033_v28, %v6029_v26  ;;  %v6037_v30 = vpop.trf.xlu1 }
  0x88   :  { %v136_v41 = vpack.c.bf16 %v6037_v30, %v6031_v27 }
  0x89   :  { %4933 = vmatprep.mubr.msk.bf16.mxu0 %vm164_vm0, %v132_v29 }
  0x8a   :  { %v6040_v31 = vpop.trf.xlu0 }
  0x8b   :  { %v6042_v32 = vpop.trf.xlu1 }
  0x8e   :  { %v6044_v33 = vpop.trf.xlu0 }
  0x8f   :  { %v133_v34 = vpack.c.bf16 %v6044_v33, %v6040_v31  ;;  %v6051_v36 = vpop.trf.xlu1 }
  0x90   :  { %v137_v46 = vpack.c.bf16 %v6051_v36, %v6042_v32 }
  0x91   :  { %4934 = vmatmul.mubr.msk.bf16.vlgmr.msra.gmra.mrb[0].mxu0 %vm164_vm0, %v133_v34 }
  0x92   :  { %v6049_v35 = vpop.trf.xlu0  ;;  %4950 = vmatpush3.bf16.msra.mxu0 %v5557_v20 }
  0x93   :  { %4951 = vmatprep.subr.bf16.mxu0 %v5558_v21  ;;  %v6057_v39 = vpop.trf.xlu1 }
  0x96   :  { %v6053_v37 = vpop.trf.xlu0  ;;  %4952 = vmatpush3.bf16.msra.mxu0 %v5558_v21 }
  0x97   :  { %v134_v38 = vpack.c.bf16 %v6053_v37, %v6049_v35  ;;  %4953 = vmatprep.subr.bf16.mxu0 %v5559_v22  ;;  %v6066_v43 = vpop.trf.xlu1 }
  0x98   :  { %v138_v47 = vpack.c.bf16 %v6066_v43, %v6057_v39 }
  0x99   :  { %4937 = vmatprep.mubr.msk.bf16.mxu0 %vm164_vm0, %v134_v38 }
  0x9a   :  { %v6060_v40 = vpop.trf.xlu0  ;;  %4954 = vmatpush3.bf16.msra.mxu0 %v5559_v22 }
  0x9b   :  { %4955 = vmatprep.subr.bf16.mxu0 %v5560_v23  ;;  %v6072_v45 = vpop.trf.xlu1 }
  0x9e   :  { %v6064_v42 = vpop.trf.xlu0  ;;  %4956 = vmatpush3.bf16.msra.mxu0 %v5560_v23 }
  0x9f   :  { %v135_v44 = vpack.c.bf16 %v6064_v42, %v6060_v40  ;;  %4957 = vmatprep.subr.bf16.mxu0 %v5561_v24  ;;  %v6079_v48 = vpop.trf.xlu1 }
  0xa0   :  { %v139_v49 = vpack.c.bf16 %v6079_v48, %v6072_v45 }
  0xa1   :  { %4938 = vmatmul.mubr.msk.bf16.gmra.mrb[4].mxu0 %vm164_vm0, %v135_v44 }
  0xa2   :  { %4941 = vmatprep.mubr.msk.bf16.mxu0 %vm164_vm0, %v136_v41  ;;  %4958 = vmatpush3.bf16.msra.mxu0 %v5561_v24 }
  0xa3   :  { %4959 = vmatprep.subr.bf16.mxu0 %v5562_v25 }
  0xa6   :  { %4960 = vmatpush3.bf16.msra.mxu0 %v5562_v25 }
  0xa7   :  { %4961 = vmatprep.subr.bf16.mxu0 %v5563_v50 }
  0xa9   :  { %4942 = vmatmul.mubr.msk.bf16.gmra.mrb[8].mxu0 %vm164_vm0, %v137_v46 }
  0xaa   :  { %4945 = vmatprep.mubr.msk.bf16.mxu0 %vm164_vm0, %v138_v47  ;;  %4962 = vmatpush3.bf16.msra.mxu0 %v5563_v50 }
  0xab   :  { %4963 = vmatprep.subr.bf16.mxu0 %v5564_v51 }
  0xae   :  { %4964 = vmatpush3.bf16.msra.mxu0 %v5564_v51 }
  0xaf   :  { %601 = vmatprep.subr.bf16.mxu0 %v5567_v52 }
  0xb1   :  { %4946 = vmatmul.mubr.msk.bf16.gmra.mrb[12].mxu0 %vm164_vm0, %v139_v49 }
 0x164   :  { %v4935_v55 = vpop.f32.mrb[0].mxu0 }
 0x165   :  { %v232_v56 = vadd.f32 %v4935_v55, %v6103_v54  ;;  %v223_v57 = vpop.f32.mrb[1].mxu0 }
 0x166   :  { %v224_v58 = vadd.f32 %v223_v57, %v6103_v54  ;;  %v4936_v59 = vpop.f32.mrb[2].mxu0  ;;  %v5572_v57 = vld [vmem:[%s7682_s3 + $0x20] ss:$12 sps:$4 sm:$0xff]  }
 0x167   :  { %v235_v60 = vadd.f32 %v4936_v59, %v6103_v54  ;;  %v226_v61 = vpop.f32.mrb[3].mxu0  ;;  %v288_v63 = vmax.f32 %v232_v56, 0.0 }
 0x168   :  { %v227_v62 = vadd.f32 %v226_v61, %v6103_v54  ;;  %v286_v1 = vmax.f32 %v224_v58, 0.0 }
 0x169   :  { %v289_v0 = vmax.f32 %v235_v60, 0.0 }
 0x16a   :  { %v287_v2 = vmax.f32 %v227_v62, 0.0 }
 0x16b   :  { %v303_v3 = vpack.c.bf16 %v289_v0, %v288_v63 }
 0x16c   :  { %v302_v4 = vpack.c.bf16 %v287_v2, %v286_v1 }
 0x16e   :  { %4965 = vmatprep.mubr.bf16.mxu0 %v302_v4 }
 0x16f   :  { %4966 = vmatmul.mubr.bf16.vlgmr.msra.gmra.mrb[16].mxu0 %v303_v3 }
 0x170   :  { %602 = vmatpush1.bf16.msra.mxu0 %v5565_v5  ;;  %v5575_v5 = vld [vmem:[%s7682_s3 + $0x34] ss:$12 sps:$4 sm:$0xff]  }
 0x171   :  { %603 = vmatprep.subr.bf16.mxu0 %v5571_v6  ;;  %v5573_v6 = vld [vmem:[%s7682_s3 + $0x30] ss:$12 sps:$4 sm:$0xff]  }
 0x174   :  { %v4939_v8 = vpop.f32.mrb[4].mxu0  ;;  %604 = vmatpush1.bf16.msra.mxu0 %v5569_v7  ;;  %v5577_v7 = vld [vmem:[%s7682_s3 + $0x48] ss:$12 sps:$4 sm:$0xff]  }
 0x175   :  { %v248_v9 = vadd.f32 %v4939_v8, %v6103_v54  ;;  %v239_v10 = vpop.f32.mrb[5].mxu0  ;;  %605 = vmatprep.subr.bf16.mxu0 %v5575_v5  ;;  %v5580_v8 = vld [vmem:[%s7682_s3 + $0x50] ss:$12 sps:$4 sm:$0xff]  }
 0x176   :  { %v240_v11 = vadd.f32 %v239_v10, %v6103_v54  ;;  %v4940_v12 = vpop.f32.mrb[6].mxu0  ;;  %v6156_v10 = vld [vmem:[%s7684_s5 + $0x1] ss:$0 sm:$0xff] }
 0x177   :  { %v251_v13 = vadd.f32 %v4940_v12, %v6103_v54  ;;  %v242_v14 = vpop.f32.mrb[7].mxu0  ;;  %v292_v16 = vmax.f32 %v248_v9, 0.0  ;;  %v5905_v9 = vmov 0  }
 0x178   :  { %v243_v15 = vadd.f32 %v242_v14, %v6103_v54  ;;  %v290_v18 = vmax.f32 %v240_v11, 0.0  ;;  %606 = vmatpush1.bf16.msra.mxu0 %v5573_v6 }
 0x179   :  { %v293_v17 = vmax.f32 %v251_v13, 0.0 }
 0x17a   :  { %v291_v19 = vmax.f32 %v243_v15, 0.0 }
 0x17b   :  { %v305_v20 = vpack.c.bf16 %v293_v17, %v292_v16 }
 0x17c   :  { %v304_v21 = vpack.c.bf16 %v291_v19, %v290_v18  ;;  %v4943_v22 = vpop.f32.mrb[8].mxu0 }
 0x17d   :  { %v264_v23 = vadd.f32 %v4943_v22, %v6103_v54  ;;  %v255_v24 = vpop.f32.mrb[9].mxu0 }
 0x17e   :  { %v256_v25 = vadd.f32 %v255_v24, %v6103_v54  ;;  %v4944_v29 = vpop.f32.mrb[10].mxu0  ;;  %4969 = vmatprep.mubr.bf16.mxu0 %v304_v21 }
 0x17f   :  { %v296_v34 = vmax.f32 %v264_v23, 0.0  ;;  %v267_v38 = vadd.f32 %v4944_v29, %v6103_v54  ;;  %v258_v41 = vpop.f32.mrb[11].mxu0  ;;  %4970 = vmatmul.mubr.bf16.gmra.mrb[20].mxu0 %v305_v20 }
 0x180   :  { %v294_v44 = vmax.f32 %v256_v25, 0.0  ;;  %v259_v46 = vadd.f32 %v258_v41, %v6103_v54  ;;  %633 = vmatprep.mubr.bf16.mxu0 %v5905_v9 }
 0x181   :  { %v297_v47 = vmax.f32 %v267_v38, 0.0 }
 0x182   :  { %v295_v49 = vmax.f32 %v259_v46, 0.0 }
 0x183   :  { %v307_v50 = vpack.c.bf16 %v297_v47, %v296_v34 }
 0x184   :  { %v4947_v51 = vpop.f32.mrb[12].mxu0  ;;  %v306_v52 = vpack.c.bf16 %v295_v49, %v294_v44 }
 0x185   :  { %v280_v55 = vadd.f32 %v4947_v51, %v6103_v54  ;;  %v271_v56 = vpop.f32.mrb[13].mxu0 }
 0x186   :  { %v272_v58 = vadd.f32 %v271_v56, %v6103_v54  ;;  %v4948_v59 = vpop.f32.mrb[14].mxu0  ;;  %4973 = vmatprep.mubr.bf16.mxu1 %v306_v52 }
 0x187   :  { %v300_v60 = vmax.f32 %v280_v55, 0.0  ;;  %v283_v61 = vadd.f32 %v4948_v59, %v6103_v54  ;;  %v274_v62 = vpop.f32.mrb[15].mxu0  ;;  %4974 = vmatmul.mubr.bf16.vlgmr.msra.gmra.mrb[0].mxu1 %v307_v50 }
 0x188   :  { %v298_v63 = vmax.f32 %v272_v58, 0.0  ;;  %v275_v0 = vadd.f32 %v274_v62, %v6103_v54  ;;  %4982 = vmatpush3.bf16.msra.mxu1 %v6097_v53  ;;  %v5576_v53 = vld [vmem:[%s7682_s3 + $0x38] ss:$12 sps:$4 sm:$0xff]  }
 0x189   :  { %v301_v1 = vmax.f32 %v283_v61, 0.0  ;;  %4983 = vmatprep.subr.bf16.mxu1 %v5572_v57  ;;  %v5579_v54 = vld [vmem:[%s7682_s3 + $0x4c] ss:$12 sps:$4 sm:$0xff]  }
 0x18a   :  { %v299_v2 = vmax.f32 %v275_v0, 0.0  ;;  %607 = vmatprep.subr.bf16.mxu0 %v5579_v54 }
 0x18b   :  { %v309_v3 = vpack.c.bf16 %v301_v1, %v300_v60  ;;  %608 = vmatpush1.bf16.msra.mxu0 %v5577_v7 }
 0x18c   :  { %v308_v4 = vpack.c.bf16 %v299_v2, %v298_v63  ;;  %4984 = vmatpush3.bf16.msra.mxu1 %v5572_v57 }
 0x18d   :  { %4985 = vmatprep.subr.bf16.mxu1 %v5576_v53 }
 0x18e   :  { %4977 = vmatprep.mubr.bf16.mxu1 %v308_v4 }
 0x18f   :  { %4978 = vmatmul.mubr.bf16.gmra.mrb[4].mxu1 %v309_v3 }
 0x190   :  { %4986 = vmatpush3.bf16.msra.mxu1 %v5576_v53 }
 0x191   :  { %4987 = vmatprep.subr.bf16.mxu1 %v5580_v8 }
 0x194   :  { %4988 = vmatpush3.bf16.msra.mxu1 %v5580_v8 }
 0x242   :  { %v4967_v11 = vpop.f32.mrb[16].mxu0 }
 0x243   :  { %v392_v12 = vpop.f32.mrb[17].mxu0  ;;  %v401_v15 = vadd.f32 %v4967_v11, %v6156_v10 }
 0x244   :  { %v393_v13 = vadd.f32 %v392_v12, %v6156_v10  ;;  %v4968_v14 = vpop.f32.mrb[18].mxu0 }
 0x245   :  { %v404_v16 = vadd.f32 %v4968_v14, %v6156_v10  ;;  %v395_v17 = vpop.f32.mrb[19].mxu0  ;;  %v6172_v22 = vadd.f32 %v401_v15, %v6040_v31 }
 0x246   :  { %v396_v18 = vadd.f32 %v395_v17, %v6156_v10  ;;  %v6166_v20 = vadd.f32 %v393_v13, %v6029_v26 }
 0x247   :  { %v6163_v19 = vadd.f32 %v404_v16, %v6044_v33 }
 0x248   :  { %v6169_v21 = vadd.f32 %v396_v18, %v6033_v28 }
 0x249   :  { %v472_v24 = vpack.c.bf16 %v6163_v19, %v6172_v22 }
 0x24a   :  { %v471_v23 = vpack.c.bf16 %v6169_v21, %v6166_v20 }
 0x24c   :  { %4493 = vmatmul.mubr.msk.bf16.vlgmr.msra.gmra.mrb[24].mxu0 %vm164_vm0, %v471_v23  ;;  %4989 = vmatprep.mubr.msk.bf16.mxu1 %vm164_vm0, %v471_v23 }
 0x24d   :  { %4990 = vmatmul.mubr.msk.bf16.vlgmr.msra.gmra.mrb[8].mxu1 %vm164_vm0, %v472_v24  ;;  %643 = vmatprep.mubr.bf16.mxu0 %v5905_v9 }
 0x252   :  { %v4971_v26 = vpop.f32.mrb[20].mxu0 }
 0x253   :  { %v408_v28 = vpop.f32.mrb[21].mxu0  ;;  %v417_v25 = vadd.f32 %v4971_v26, %v6156_v10 }
 0x254   :  { %v409_v33 = vadd.f32 %v408_v28, %v6156_v10  ;;  %v4972_v31 = vpop.f32.mrb[22].mxu0  ;;  %4494 = vmatmul.mubr.msk.bf16.gmra.mrb[28].mxu0 %vm164_vm0, %v472_v24 }
 0x255   :  { %v420_v29 = vadd.f32 %v4972_v31, %v6156_v10  ;;  %v411_v34 = vpop.f32.mrb[23].mxu0  ;;  %653 = vmatprep.mubr.bf16.mxu0 %v5905_v9  ;;  %v6198_v47 = vadd.f32 %v417_v25, %v6060_v40 }
 0x256   :  { %v412_v38 = vadd.f32 %v411_v34, %v6156_v10  ;;  %v6192_v44 = vadd.f32 %v409_v33, %v6049_v35 }
 0x257   :  { %v6189_v41 = vadd.f32 %v420_v29, %v6064_v42 }
 0x258   :  { %v6195_v46 = vadd.f32 %v412_v38, %v6053_v37 }
 0x259   :  { %v474_v51 = vpack.c.bf16 %v6189_v41, %v6198_v47 }
 0x25a   :  { %7699 = vst [vmem:[#allocation5_spill] sm:$0xff] %v6195_v46  ;;  %v473_v49 = vpack.c.bf16 %v6195_v46, %v6192_v44  ;;  %v4975_v50 = vpop.f32.mrb[0].mxu1 }
 0x25b   :  { %v424_v52 = vpop.f32.mrb[1].mxu1  ;;  %v433_v35 = vadd.f32 %v4975_v50, %v6156_v10 }
 0x25c   :  { %v425_v42 = vadd.f32 %v424_v52, %v6156_v10  ;;  %v4976_v55 = vpop.f32.mrb[2].mxu1  ;;  %4495 = vmatmul.mubr.msk.bf16.gmra.mrb[32].mxu0 %vm164_vm0, %v473_v49  ;;  %4993 = vmatprep.mubr.msk.bf16.mxu1 %vm164_vm0, %v473_v49 }
 0x25d   :  { %v436_v37 = vadd.f32 %v4976_v55, %v6156_v10  ;;  %v427_v40 = vpop.f32.mrb[3].mxu1  ;;  %4994 = vmatmul.mubr.msk.bf16.gmra.mrb[12].mxu1 %vm164_vm0, %v474_v51  ;;  %663 = vmatprep.mubr.bf16.mxu0 %v5905_v9  ;;  %v6222_v60 = vadd.f32 %v433_v35, %v6042_v32 }
 0x25e   :  { %v428_v56 = vadd.f32 %v427_v40, %v6156_v10  ;;  %v6216_v58 = vadd.f32 %v425_v42, %v6031_v27 }
 0x25f   :  { %v6213_v57 = vadd.f32 %v436_v37, %v6051_v36  ;;  %7703 = vst [vmem:[#allocation9_spill] sm:$0xff] %v6222_v60 }
 0x260   :  { %7701 = vst [vmem:[#allocation7_spill] sm:$0xff] %v6216_v58  ;;  %v6219_v59 = vadd.f32 %v428_v56, %v6037_v30 }
 0x261   :  { %7700 = vst [vmem:[#allocation6_spill] sm:$0xff] %v6213_v57  ;;  %v476_v63 = vpack.c.bf16 %v6213_v57, %v6222_v60 }
 0x262   :  { %7702 = vst [vmem:[#allocation8_spill] sm:$0xff] %v6219_v59  ;;  %v475_v61 = vpack.c.bf16 %v6219_v59, %v6216_v58  ;;  %v4979_v62 = vpop.f32.mrb[4].mxu1 }
 0x263   :  { %v440_v0 = vpop.f32.mrb[5].mxu1  ;;  %v449_v27 = vadd.f32 %v4979_v62, %v6156_v10 }
 0x264   :  { %v441_v36 = vadd.f32 %v440_v0, %v6156_v10  ;;  %v4980_v1 = vpop.f32.mrb[6].mxu1  ;;  %4496 = vmatmul.mubr.msk.bf16.gmra.mrb[36].mxu0 %vm164_vm0, %v474_v51  ;;  %4997 = vmatprep.mubr.msk.bf16.mxu1 %vm164_vm0, %v475_v61 }
 0x265   :  { %v452_v30 = vadd.f32 %v4980_v1, %v6156_v10  ;;  %v443_v32 = vpop.f32.mrb[7].mxu1  ;;  %4998 = vmatmul.mubr.msk.bf16.gmra.mrb[16].mxu1 %vm164_vm0, %v476_v63  ;;  %673 = vmatprep.mubr.bf16.mxu0 %v5905_v9  ;;  %v6246_v6 = vadd.f32 %v449_v27, %v6072_v45 }
 0x266   :  { %v444_v2 = vadd.f32 %v443_v32, %v6156_v10  ;;  %v6240_v4 = vadd.f32 %v441_v36, %v6057_v39  ;;  %v498_v39 = vlaneseq }
 0x267   :  { %v6237_v3 = vadd.f32 %v452_v30, %v6079_v48  ;;  %7707 = vst [vmem:[#allocation13_spill] sm:$0xff] %v6246_v6  ;;  %v4480_v48 = vld [vmem:[%s7684_s5 + $0x2] ss:$8 sm:$0x7] }
 0x268   :  { %7705 = vst [vmem:[#allocation11_spill] sm:$0xff] %v6240_v4  ;;  %v6243_v5 = vadd.f32 %v444_v2, %v6066_v43  ;;  %v499_v43 = vshrl.u32 %v498_v39, 7 }
 0x269   :  { %7704 = vst [vmem:[#allocation10_spill] sm:$0xff] %v6237_v3  ;;  %v478_v54 = vpack.c.bf16 %v6237_v3, %v6246_v6 }
 0x26a   :  { %7706 = vst [vmem:[#allocation12_spill] sm:$0xff] %v6243_v5  ;;  %v477_v53 = vpack.c.bf16 %v6243_v5, %v6240_v4  ;;  %v500_v45 = vsub.s32 0, %v499_v43  ;;  %v504_v7 = vsub.s32 1, %v499_v43  ;;  %v508_v8 = vsub.s32 2, %v499_v43 }
 0x26c   :  { %4497 = vmatmul.mubr.msk.bf16.gmra.mrb[40].mxu0 %vm164_vm0, %v475_v61  ;;  %5001 = vmatprep.mubr.msk.bf16.mxu1 %vm164_vm0, %v477_v53  ;;  %v6264_v10 = vrot.slane %v4480_v48, %v500_v45  ;;  %v6266_v12 = vrot.slane %v4480_v48, %v504_v7  ;;  %v6268_v13 = vrot.slane %v4480_v48, %v508_v8 }
 0x26d   :  { %5002 = vmatmul.mubr.msk.bf16.gmra.mrb[20].mxu1 %vm164_vm0, %v478_v54  ;;  %683 = vmatprep.mubr.bf16.mxu0 %v5905_v9 }
 0x274   :  { %4498 = vmatmul.mubr.msk.bf16.gmra.mrb[44].mxu0 %vm164_vm0, %v476_v63 }
 0x275   :  { %693 = vmatprep.mubr.bf16.mxu0 %v5905_v9 }
 0x27c   :  { %4499 = vmatmul.mubr.msk.bf16.gmra.mrb[48].mxu0 %vm164_vm0, %v477_v53 }
 0x27d   :  { %703 = vmatprep.mubr.bf16.mxu0 %v5905_v9 }
 0x284   :  { %4500 = vmatmul.mubr.msk.bf16.gmra.mrb[52].mxu0 %vm164_vm0, %v478_v54 }
 0x31f   :  { %v635_v11 = vpop.f32.mrb[24].mxu0 }
 0x320   :  { %v637_v14 = vpop.f32.mrb[25].mxu0  ;;  %v4991_v9 = vpop.f32.mrb[8].mxu1  ;;  %v636_v17 = vadd.f32 %v635_v11, %v6264_v10 }
 0x321   :  { %v639_v15 = vpop.f32.mrb[26].mxu0  ;;  %v748_v16 = vpop.f32.mrb[9].mxu1  ;;  %v638_v26 = vadd.f32 %v637_v14, %v6266_v12  ;;  %v757_v28 = vadd.f32 %v4991_v9, %v6268_v13 }
 0x322   :  { %v640_v18 = vadd.f32 %v639_v15, %v6264_v10  ;;  %v641_v23 = vpop.f32.mrb[27].mxu0  ;;  %v4992_v24 = vpop.f32.mrb[10].mxu1  ;;  %v749_v34 = vadd.f32 %v748_v16, %v6268_v13 }
 0x323   :  { %v642_v33 = vadd.f32 %v641_v23, %v6266_v12  ;;  %v760_v31 = vadd.f32 %v4992_v24, %v6268_v13  ;;  %v751_v25 = vpop.f32.mrb[11].mxu1 }
 0x324   :  { %v6276_v29 = vpack.c.bf16 %v640_v18, %v636_v17  ;;  %v752_v38 = vadd.f32 %v751_v25, %v6268_v13 }
 0x325   :  { %v6280_v49 = vpack.c.bf16 %v642_v33, %v638_v26  ;;  %v6282_v50 = vpack.c.bf16 %v760_v31, %v757_v28 }
 0x326   :  { %v6284_v51 = vpack.c.bf16 %v752_v38, %v749_v34  ;;  %823 = vrot.lane.b32.xlu0 %v6276_v29, %s5906_s8  ;;  %5013 = vmatprep.mubr.msk.bf16.mxu1 %vm831_vm1, %v6276_v29 }
 0x327   :  { %v645_v52 = vpop.f32.mrb[28].mxu0  ;;  %5021 = vmatprep.subr.bf16.mxu0 %v6280_v49 }
 0x328   :  { %v647_v42 = vpop.f32.mrb[29].mxu0  ;;  %5022 = vmatpush3.bf16.msra.mxu0 %v6280_v49  ;;  %v646_v35 = vadd.f32 %v645_v52, %v6264_v10 }
 0x329   :  { %v649_v55 = vpop.f32.mrb[30].mxu0  ;;  %v648_v56 = vadd.f32 %v647_v42, %v6266_v12 }
 0x32a   :  { %v650_v37 = vadd.f32 %v649_v55, %v6264_v10  ;;  %v651_v40 = vpop.f32.mrb[31].mxu0 }
 0x32b   :  { %v652_v61 = vadd.f32 %v651_v40, %v6266_v12 }
 0x32c   :  { %v6296_v62 = vpack.c.bf16 %v650_v37, %v646_v35 }
 0x32d   :  { %v6298_v63 = vpack.c.bf16 %v652_v61, %v648_v56 }
 0x32e   :  { %825 = vrot.lane.b32.xlu1 %v6296_v62, %s5906_s8  ;;  %1120 = vrot.lane.b32.xlu0 %v6296_v62, %s5907_s9 }
 0x32f   :  { %v655_v0 = vpop.f32.mrb[32].mxu0  ;;  %5023 = vmatprep.subr.bf16.mxu0 %v6298_v63 }
 0x330   :  { %v657_v36 = vpop.f32.mrb[33].mxu0  ;;  %v4995_v1 = vpop.f32.mrb[12].mxu1  ;;  %5024 = vmatpush3.bf16.msra.mxu0 %v6298_v63  ;;  %v656_v32 = vadd.f32 %v655_v0, %v6264_v10 }
 0x331   :  { %v659_v27 = vpop.f32.mrb[34].mxu0  ;;  %v764_v30 = vpop.f32.mrb[13].mxu1  ;;  %v658_v39 = vadd.f32 %v657_v36, %v6266_v12  ;;  %v773_v43 = vadd.f32 %v4995_v1, %v6268_v13 }
 0x332   :  { %v660_v2 = vadd.f32 %v659_v27, %v6264_v10  ;;  %v661_v53 = vpop.f32.mrb[35].mxu0  ;;  %v4996_v54 = vpop.f32.mrb[14].mxu1  ;;  %v765_v11 = vadd.f32 %v764_v30, %v6268_v13 }
 0x333   :  { %v662_v45 = vadd.f32 %v661_v53, %v6266_v12  ;;  %v776_v48 = vadd.f32 %v4996_v54, %v6268_v13  ;;  %v767_v7 = vpop.f32.mrb[15].mxu1 }
 0x334   :  { %v6312_v8 = vpack.c.bf16 %v660_v2, %v656_v32  ;;  %v768_v14 = vadd.f32 %v767_v7, %v6268_v13 }
 0x335   :  { %v6316_v9 = vpack.c.bf16 %v662_v45, %v658_v39  ;;  %v6318_v15 = vpack.c.bf16 %v776_v48, %v773_v43 }
 0x336   :  { %v6320_v16 = vpack.c.bf16 %v768_v14, %v765_v11  ;;  %827 = vrot.lane.b32.xlu1 %v6312_v8, %s5906_s8 }
 0x337   :  { %v665_v17 = vpop.f32.mrb[36].mxu0  ;;  %5025 = vmatprep.subr.bf16.mxu0 %v6316_v9 }
 0x338   :  { %v667_v18 = vpop.f32.mrb[37].mxu0  ;;  %v4999_v23 = vpop.f32.mrb[16].mxu1  ;;  %5026 = vmatpush3.bf16.msra.mxu0 %v6316_v9  ;;  %v666_v33 = vadd.f32 %v665_v17, %v6264_v10 }
 0x339   :  { %v789_v24 = vadd.f32 %v4999_v23, %v6268_v13  ;;  %v669_v26 = vpop.f32.mrb[38].mxu0  ;;  %v780_v28 = vpop.f32.mrb[17].mxu1  ;;  %v668_v52 = vadd.f32 %v667_v18, %v6266_v12 }
 0x33a   :  { %v670_v31 = vadd.f32 %v669_v26, %v6264_v10  ;;  %v781_v25 = vadd.f32 %v780_v28, %v6268_v13  ;;  %v671_v34 = vpop.f32.mrb[39].mxu0  ;;  %v5000_v38 = vpop.f32.mrb[18].mxu1 }
 0x33b   :  { %v672_v42 = vadd.f32 %v671_v34, %v6266_v12  ;;  %v792_v55 = vadd.f32 %v5000_v38, %v6268_v13  ;;  %v783_v35 = vpop.f32.mrb[19].mxu1 }
 0x33c   :  { %v6333_v37 = vpack.c.bf16 %v670_v31, %v666_v33  ;;  %v784_v40 = vadd.f32 %v783_v35, %v6268_v13 }
 0x33d   :  { %v6336_v56 = vpack.c.bf16 %v672_v42, %v668_v52  ;;  %v6338_v61 = vpack.c.bf16 %v792_v55, %v789_v24 }
 0x33e   :  { %v6340_v0 = vpack.c.bf16 %v784_v40, %v781_v25  ;;  %1124 = vrot.lane.b32.xlu0 %v6333_v37, %s5907_s9  ;;  %829 = vrot.lane.b32.xlu1 %v6333_v37, %s5906_s8 }
 0x33f   :  { %7708 = vst [vmem:[#allocation14_spill] sm:$0xff] %v6338_v61  ;;  %v675_v36 = vpop.f32.mrb[40].mxu0  ;;  %5027 = vmatprep.subr.bf16.mxu0 %v6336_v56 }
 0x340   :  { %7709 = vst [vmem:[#allocation15_spill] sm:$0xff] %v6340_v0  ;;  %v676_v1 = vadd.f32 %v675_v36, %v6264_v10  ;;  %v677_v27 = vpop.f32.mrb[41].mxu0  ;;  %v5003_v30 = vpop.f32.mrb[20].mxu1  ;;  %5028 = vmatpush3.bf16.msra.mxu0 %v6336_v56 }
 0x341   :  { %v678_v32 = vadd.f32 %v677_v27, %v6266_v12  ;;  %v805_v2 = vadd.f32 %v5003_v30, %v6268_v13  ;;  %v679_v53 = vpop.f32.mrb[42].mxu0  ;;  %v796_v54 = vpop.f32.mrb[21].mxu1 }
 0x342   :  { %v680_v39 = vadd.f32 %v679_v53, %v6264_v10  ;;  %v797_v43 = vadd.f32 %v796_v54, %v6268_v13  ;;  %v681_v45 = vpop.f32.mrb[43].mxu0  ;;  %v5004_v48 = vpop.f32.mrb[22].mxu1  ;;  %1112 = vrot.lane.b32.xlu0 %v6296_v62, %s5908_s10  ;;  %1118 = vrot.lane.b32.xlu1 %v6276_v29, %s5907_s9 }
 0x343   :  { %v682_v7 = vadd.f32 %v681_v45, %v6266_v12  ;;  %v808_v11 = vadd.f32 %v5004_v48, %v6268_v13  ;;  %v799_v14 = vpop.f32.mrb[23].mxu1 }
 0x344   :  { %v6359_v17 = vpack.c.bf16 %v680_v39, %v676_v1  ;;  %v800_v18 = vadd.f32 %v799_v14, %v6268_v13 }
 0x345   :  { %v6362_v23 = vpack.c.bf16 %v682_v7, %v678_v32  ;;  %v6364_v24 = vpack.c.bf16 %v808_v11, %v805_v2 }
 0x346   :  { %v6366_v26 = vpack.c.bf16 %v800_v18, %v797_v43  ;;  %1116 = vrot.lane.b32.xlu0 %v6333_v37, %s5908_s10  ;;  %1122 = vrot.lane.b32.xlu1 %v6312_v8, %s5907_s9 }
 0x347   :  { %7710 = vst [vmem:[#allocation16_spill] sm:$0xff] %v6364_v24  ;;  %v685_v28 = vpop.f32.mrb[44].mxu0 }
 0x348   :  { %7711 = vst [vmem:[#allocation17_spill] sm:$0xff] %v6366_v26  ;;  %v686_v33 = vadd.f32 %v685_v28, %v6264_v10  ;;  %v687_v31 = vpop.f32.mrb[45].mxu0 }
 0x349   :  { %v688_v25 = vadd.f32 %v687_v31, %v6266_v12  ;;  %v689_v34 = vpop.f32.mrb[46].mxu0 }
 0x34a   :  { %v690_v13 = vadd.f32 %v689_v34, %v6264_v10  ;;  %v691_v38 = vpop.f32.mrb[47].mxu0  ;;  %1636 = vrot.lane.b32.xlu0 %v6296_v62, %s5909_s11  ;;  %1110 = vrot.lane.b32.xlu1 %v6276_v29, %s5908_s10 }
 0x34b   :  { %v692_v52 = vadd.f32 %v691_v38, %v6266_v12 }
 0x34c   :  { %v6380_v42 = vpack.c.bf16 %v690_v13, %v686_v33 }
 0x34d   :  { %v6382_v55 = vpack.c.bf16 %v692_v52, %v688_v25 }
 0x34e   :  { %1628 = vrot.lane.b32.xlu0 %v6296_v62, %s5910_s12  ;;  %1114 = vrot.lane.b32.xlu1 %v6312_v8, %s5908_s10 }
 0x34f   :  { %v695_v35 = vpop.f32.mrb[48].mxu0 }
 0x350   :  { %v696_v40 = vadd.f32 %v695_v35, %v6264_v10  ;;  %v697_v36 = vpop.f32.mrb[49].mxu0 }
 0x351   :  { %v698_v1 = vadd.f32 %v697_v36, %v6266_v12  ;;  %v699_v27 = vpop.f32.mrb[50].mxu0 }
 0x352   :  { %v700_v30 = vadd.f32 %v699_v27, %v6264_v10  ;;  %v701_v32 = vpop.f32.mrb[51].mxu0  ;;  %1630 = vrot.lane.b32.xlu0 %v6312_v8, %s5910_s12  ;;  %1634 = vrot.lane.b32.xlu1 %v6276_v29, %s5909_s11 }
 0x353   :  { %v702_v2 = vadd.f32 %v701_v32, %v6266_v12 }
 0x354   :  { %v6396_v53 = vpack.c.bf16 %v700_v30, %v696_v40 }
 0x355   :  { %v6398_v54 = vpack.c.bf16 %v702_v2, %v698_v1 }
 0x356   :  { %1640 = vrot.lane.b32.xlu0 %v6333_v37, %s5909_s11  ;;  %1638 = vrot.lane.b32.xlu1 %v6312_v8, %s5909_s11 }
 0x357   :  { %v705_v39 = vpop.f32.mrb[52].mxu0 }
 0x358   :  { %v706_v43 = vadd.f32 %v705_v39, %v6264_v10  ;;  %v707_v45 = vpop.f32.mrb[53].mxu0 }
 0x359   :  { %v708_v48 = vadd.f32 %v707_v45, %v6266_v12  ;;  %v709_v7 = vpop.f32.mrb[54].mxu0 }
 0x35a   :  { %v710_v11 = vadd.f32 %v709_v7, %v6264_v10  ;;  %v711_v14 = vpop.f32.mrb[55].mxu0  ;;  %1626 = vrot.lane.b32.xlu1 %v6276_v29, %s5910_s12 }
 0x35b   :  { %v712_v18 = vadd.f32 %v711_v14, %v6266_v12 }
 0x35c   :  { %v6410_v28 = vpack.c.bf16 %v710_v11, %v706_v43 }
 0x35d   :  { %v6412_v33 = vpack.c.bf16 %v712_v18, %v708_v48 }
 0x35e   :  { %1632 = vrot.lane.b32.xlu1 %v6333_v37, %s5910_s12 }
 0x398   :  { %v824_v31 = vpop.permute.xlu0 %823 }
 0x399   :  { %5509 = vmatprep.subr.msk.bf16.mxu1 %vm831_vm1, %v824_v31  ;;  %v845_v25 = vsel %vm831_vm1, %v824_v31, 0 }
 0x39a   :  { %5006 = vmatpush3.bf16.xpose.msra.mxu1 %v845_v25 }
 0x3a0   :  { %v826_v10 = vpop.permute.xlu1 %825  ;;  %v1121_v36 = vpop.permute.xlu0 %1120 }
 0x3a1   :  { %5510 = vmatprep.subr.msk.bf16.mxu1 %vm831_vm1, %v826_v10  ;;  %v848_v34 = vsel %vm831_vm1, %v826_v10, 0  ;;  %v1142_v30 = vsel %vm831_vm1, %v1121_v36, 0 }
 0x3a2   :  { %5008 = vmatpush3.bf16.xpose.msra.mxu1 %v848_v34 }
 0x3a8   :  { %v828_v12 = vpop.permute.xlu1 %827 }
 0x3a9   :  { %5511 = vmatprep.subr.msk.bf16.mxu1 %vm831_vm1, %v828_v12  ;;  %v851_v13 = vsel %vm831_vm1, %v828_v12, 0 }
 0x3aa   :  { %5010 = vmatpush3.bf16.xpose.msra.mxu1 %v851_v13 }
 0x3b0   :  { %v830_v38 = vpop.permute.xlu1 %829  ;;  %v1125_v32 = vpop.permute.xlu0 %1124 }
 0x3b1   :  { %5512 = vmatprep.subr.msk.bf16.mxu1 %vm831_vm1, %v830_v38  ;;  %v854_v52 = vsel %vm831_vm1, %v830_v38, 0  ;;  %v1148_v45 = vsel %vm831_vm1, %v1125_v32, 0 }
 0x3b2   :  { %5012 = vmatpush3.bf16.xpose.msra.mxu1 %v854_v52 }
 0x3b4   :  { %v1119_v35 = vpop.permute.xlu1 %1118  ;;  %v1113_v39 = vpop.permute.xlu0 %1112 }
 0x3b5   :  { %5513 = vmatprep.subr.msk.bf16.mxu1 %vm831_vm1, %v1119_v35  ;;  %v1139_v40 = vsel %vm831_vm1, %v1119_v35, 0 }
 0x3b8   :  { %v1123_v1 = vpop.permute.xlu1 %1122  ;;  %v1117_v48 = vpop.permute.xlu0 %1116 }
 0x3b9   :  { %5014 = vmatmul.mubr.msk.bf16.vlgmr.msra.gmra.mrb[24].mxu1 %vm831_vm1, %v6296_v62  ;;  %v1145_v2 = vsel %vm831_vm1, %v1123_v1, 0 }
 0x3ba   :  { %5017 = vmatprep.mubr.msk.bf16.mxu1 %vm831_vm1, %v6312_v8  ;;  %5038 = vmatpush3.bf16.xpose.msra.mxu1 %v1139_v40 }
 0x3bb   :  { %5514 = vmatprep.subr.msk.bf16.mxu1 %vm831_vm1, %v1121_v36 }
 0x3bc   :  { %v1111_v27 = vpop.permute.xlu1 %1110  ;;  %v1637_v11 = vpop.permute.xlu0 %1636 }
 0x3bd   :  { %v1658_v10 = vsel %vm831_vm1, %v1637_v11, 0 }
 0x3c0   :  { %v1115_v43 = vpop.permute.xlu1 %1114  ;;  %v1629_v31 = vpop.permute.xlu0 %1628 }
 0x3c1   :  { %5018 = vmatmul.mubr.msk.bf16.gmra.mrb[28].mxu1 %vm831_vm1, %v6333_v37 }
 0x3c2   :  { %5040 = vmatpush3.bf16.xpose.msra.mxu1 %v1142_v30  ;;  %5045 = vmatprep.mubr.msk.bf16.mxu1 %vm831_vm1, %v1111_v27 }
 0x3c3   :  { %5515 = vmatprep.subr.msk.bf16.mxu1 %vm831_vm1, %v1123_v1 }
 0x3c4   :  { %v1635_v7 = vpop.permute.xlu1 %1634  ;;  %v1631_v34 = vpop.permute.xlu0 %1630 }
 0x3c5   :  { %v1655_v14 = vsel %vm831_vm1, %v1635_v7, 0 }
 0x3c8   :  { %v1639_v18 = vpop.permute.xlu1 %1638  ;;  %v1641_v13 = vpop.permute.xlu0 %1640 }
 0x3c9   :  { %v1661_v12 = vsel %vm831_vm1, %v1639_v18, 0  ;;  %v1664_v38 = vsel %vm831_vm1, %v1641_v13, 0 }
 0x3ca   :  { %5042 = vmatpush3.bf16.xpose.msra.mxu1 %v1145_v2 }
 0x3cb   :  { %5516 = vmatprep.subr.msk.bf16.mxu1 %vm831_vm1, %v1125_v32 }
 0x3cc   :  { %v1627_v25 = vpop.permute.xlu1 %1626 }
 0x3d0   :  { %v1633_v52 = vpop.permute.xlu1 %1632 }
 0x3d2   :  { %5044 = vmatpush3.bf16.xpose.msra.mxu1 %v1148_v45 }
 0x3d3   :  { %5517 = vmatprep.subr.msk.bf16.mxu1 %vm831_vm1, %v1635_v7 }
 0x3d9   :  { %5046 = vmatmul.mubr.msk.bf16.vlgmr.msra.gmra.mrb[32].mxu1 %vm831_vm1, %v1113_v39 }
 0x3da   :  { %5049 = vmatprep.mubr.msk.bf16.mxu1 %vm831_vm1, %v1115_v43  ;;  %5102 = vmatpush3.bf16.xpose.msra.mxu1 %v1655_v14 }
 0x3db   :  { %5518 = vmatprep.subr.msk.bf16.mxu1 %vm831_vm1, %v1637_v11 }
 0x3e1   :  { %5050 = vmatmul.mubr.msk.bf16.gmra.mrb[36].mxu1 %vm831_vm1, %v1117_v48 }
 0x3e2   :  { %5104 = vmatpush3.bf16.xpose.msra.mxu1 %v1658_v10  ;;  %5109 = vmatprep.mubr.msk.bf16.mxu1 %vm831_vm1, %v1627_v25 }
 0x3e3   :  { %5519 = vmatprep.subr.msk.bf16.mxu1 %vm831_vm1, %v1639_v18 }
 0x3ea   :  { %5106 = vmatpush3.bf16.xpose.msra.mxu1 %v1661_v12 }
 0x3eb   :  { %5520 = vmatprep.subr.msk.bf16.mxu1 %vm831_vm1, %v1641_v13 }
 0x3f2   :  { %5108 = vmatpush3.bf16.xpose.msra.mxu1 %v1664_v38 }
 0x3f9   :  { %5110 = vmatmul.mubr.msk.bf16.vlgmr.msra.gmra.mrb[40].mxu1 %vm831_vm1, %v1629_v31 }
 0x3fa   :  { %5113 = vmatprep.mubr.msk.bf16.mxu1 %vm831_vm1, %v1631_v34 }
 0x401   :  { %5114 = vmatmul.mubr.msk.bf16.gmra.mrb[44].mxu1 %vm831_vm1, %v1633_v52 }
 0x48c   :  { %v5015_v35 = vpop.f32.mrb[24].mxu1 }
 0x48d   :  { %v890_v40 = vpop.f32.mrb[25].mxu1  ;;  %v927_v36 = vsel %vm164_vm0, %v5015_v35, -inf }
 0x48e   :  { %928 = vmax.xlane.f32.xlu0 %v927_v36  ;;  %v6455_v1 = vpop.f32.mrb[26].mxu1  ;;  %v921_v27 = vsel %vm164_vm0, %v890_v40, -inf }
 0x48f   :  { %922 = vmax.xlane.f32.xlu1 %v921_v27  ;;  %v6458_v30 = vpop.f32.mrb[27].mxu1  ;;  %v930_v2 = vsel %vm164_vm0, %v6455_v1, -inf }
 0x490   :  { %v924_v32 = vsel %vm164_vm0, %v6458_v30, -inf }
 0x492   :  { %925 = vmax.xlane.f32.xlu0 %v924_v32 }
 0x493   :  { %931 = vmax.xlane.f32.xlu1 %v930_v2 }
 0x494   :  { %v6464_v39 = vpop.f32.mrb[28].mxu1 }
 0x495   :  { %v6466_v43 = vpop.f32.mrb[29].mxu1  ;;  %v939_v45 = vsel %vm164_vm0, %v6464_v39, -inf }
 0x496   :  { %940 = vmax.xlane.f32.xlu0 %v939_v45  ;;  %v6470_v48 = vpop.f32.mrb[30].mxu1  ;;  %v933_v7 = vsel %vm164_vm0, %v6466_v43, -inf }
 0x497   :  { %934 = vmax.xlane.f32.xlu1 %v933_v7  ;;  %v6474_v11 = vpop.f32.mrb[31].mxu1  ;;  %v942_v18 = vsel %vm164_vm0, %v6470_v48, -inf }
 0x498   :  { %v936_v14 = vsel %vm164_vm0, %v6474_v11, -inf }
 0x49a   :  { %937 = vmax.xlane.f32.xlu0 %v936_v14 }
 0x49b   :  { %943 = vmax.xlane.f32.xlu1 %v942_v18 }
 0x4ac   :  { %v6480_v31 = vpop.f32.mrb[32].mxu1 }
 0x4ad   :  { %v6482_v25 = vpop.f32.mrb[33].mxu1  ;;  %v1221_v10 = vsel %vm164_vm0, %v6480_v31, -inf }
 0x4ae   :  { %1222 = vmax.xlane.f32.xlu0 %v1221_v10  ;;  %v6486_v34 = vpop.f32.mrb[34].mxu1  ;;  %v1215_v38 = vsel %vm164_vm0, %v6482_v25, -inf }
 0x4af   :  { %v6488_v12 = vpop.f32.mrb[35].mxu1  ;;  %v1224_v13 = vsel %vm164_vm0, %v6486_v34, -inf }
 0x4b0   :  { %1225 = vmax.xlane.f32.xlu1 %v1224_v13  ;;  %v1218_v52 = vsel %vm164_vm0, %v6488_v12, -inf }
 0x4b2   :  { %1216 = vmax.xlane.f32.xlu0 %v1215_v38 }
 0x4b4   :  { %1219 = vmax.xlane.f32.xlu1 %v1218_v52  ;;  %v6496_v36 = vpop.f32.mrb[36].mxu1 }
 0x4b5   :  { %v6498_v27 = vpop.f32.mrb[37].mxu1  ;;  %v1233_v32 = vsel %vm164_vm0, %v6496_v36, -inf }
 0x4b6   :  { %1234 = vmax.xlane.f32.xlu0 %v1233_v32  ;;  %v6502_v2 = vpop.f32.mrb[38].mxu1  ;;  %v1227_v14 = vsel %vm164_vm0, %v6498_v27, -inf }
 0x4b7   :  { %v6504_v45 = vpop.f32.mrb[39].mxu1  ;;  %v1236_v7 = vsel %vm164_vm0, %v6502_v2, -inf }
 0x4b8   :  { %1237 = vmax.xlane.f32.xlu1 %v1236_v7  ;;  %v1230_v18 = vsel %vm164_vm0, %v6504_v45, -inf }
 0x4ba   :  { %1228 = vmax.xlane.f32.xlu0 %v1227_v14 }
 0x4bc   :  { %1231 = vmax.xlane.f32.xlu1 %v1230_v18 }
 0x4cc   :  { %v6512_v10 = vpop.f32.mrb[40].mxu1 }
 0x4cd   :  { %1313 = vrot.lane.b32.xlu1 %v6298_v63, %s5906_s8  ;;  %v6516_v13 = vpop.f32.mrb[41].mxu1 }
 0x4ce   :  { %v6518_v38 = vpop.f32.mrb[42].mxu1 }
 0x4cf   :  { %v6520_v52 = vpop.f32.mrb[43].mxu1 }
 0x4d0   :  { %1311 = vrot.lane.b32.xlu0 %v6280_v49, %s5906_s8 }
 0x4d4   :  { %v6524_v32 = vpop.f32.mrb[44].mxu1 }
 0x4d5   :  { %v6526_v7 = vpop.f32.mrb[45].mxu1 }
 0x4d6   :  { %v6528_v14 = vpop.f32.mrb[46].mxu1 }
 0x4d7   :  { %v6530_v18 = vpop.f32.mrb[47].mxu1 }
 0x51b   :  { %v929_v5 = vpop.xlane.xlu0 %928 }
 0x51c   :  { %v947_v3 = vsub.f32 %v5015_v35, %v929_v5  ;;  %v923_v63 = vpop.xlane.xlu1 %922 }
 0x51d   :  { %v945_v6 = vsub.f32 %v890_v40, %v923_v63 }
 0x51e   :  { %v957_v4 = vmul.f32 1.442695, %v947_v3 }
 0x51f   :  { %v953_v59 = vmul.f32 1.442695, %v945_v6  ;;  %v926_v57 = vpop.xlane.xlu0 %925 }
 0x520   :  { %5609 = vpow2.f32 %v957_v4  ;;  %v946_v60 = vsub.f32 %v6458_v30, %v926_v57  ;;  %v932_v58 = vpop.xlane.xlu1 %931 }
 0x521   :  { %v948_v49 = vsub.f32 %v6455_v1, %v932_v58  ;;  %5611 = vpow2.f32 %v953_v59 }
 0x522   :  { %v955_v24 = vmul.f32 1.442695, %v946_v60 }
 0x523   :  { %v959_v26 = vmul.f32 1.442695, %v948_v49  ;;  %v941_v61 = vpop.xlane.xlu0 %940 }
 0x524   :  { %v951_v0 = vsub.f32 %v6464_v39, %v941_v61  ;;  %v935_v46 = vpop.xlane.xlu1 %934 }
 0x525   :  { %5613 = vpow2.f32 %v959_v26  ;;  %v949_v5 = vsub.f32 %v6466_v43, %v935_v46 }
 0x526   :  { %v965_v35 = vmul.f32 1.442695, %v951_v0  ;;  %5615 = vpow2.f32 %v955_v24 }
 0x527   :  { %v961_v3 = vmul.f32 1.442695, %v949_v5  ;;  %v938_v6 = vpop.xlane.xlu0 %937 }
 0x528   :  { %5617 = vpow2.f32 %v965_v35  ;;  %v950_v57 = vsub.f32 %v6474_v11, %v938_v6  ;;  %v944_v4 = vpop.xlane.xlu1 %943 }
 0x529   :  { %v952_v58 = vsub.f32 %v6470_v48, %v944_v4  ;;  %5619 = vpow2.f32 %v961_v3 }
 0x52a   :  { %v6538_v59 = vpop.eup %5609  ;;  %v963_v60 = vmul.f32 1.442695, %v950_v57 }
 0x52b   :  { %v967_v40 = vmul.f32 1.442695, %v952_v58  ;;  %v975_v61 = vsel %vm164_vm0, %v6538_v59, 0.0  ;;  %v6542_v26 = vpop.eup %5611 }
 0x52c   :  { %976 = vadd.xlane.f32.xlu0 %v975_v61  ;;  %v969_v0 = vsel %vm164_vm0, %v6542_v26, 0.0 }
 0x52d   :  { %5621 = vpow2.f32 %v967_v40 }
 0x52e   :  { %5623 = vpow2.f32 %v963_v60 }
 0x52f   :  { %v6544_v46 = vpop.eup %5613 }
 0x530   :  { %970 = vadd.xlane.f32.xlu0 %v969_v0  ;;  %v978_v24 = vsel %vm164_vm0, %v6544_v46, 0.0  ;;  %v6550_v1 = vpop.eup %5615 }
 0x531   :  { %979 = vadd.xlane.f32.xlu1 %v978_v24  ;;  %v972_v48 = vsel %vm164_vm0, %v6550_v1, 0.0 }
 0x532   :  { %v6552_v30 = vpop.eup %5617 }
 0x533   :  { %v987_v39 = vsel %vm164_vm0, %v6552_v30, 0.0  ;;  %v6556_v43 = vpop.eup %5619 }
 0x534   :  { %988 = vadd.xlane.f32.xlu0 %v987_v39  ;;  %v981_v63 = vsel %vm164_vm0, %v6556_v43, 0.0 }
 0x535   :  { %973 = vadd.xlane.f32.xlu1 %v972_v48 }
 0x537   :  { %v6560_v11 = vpop.eup %5621 }
 0x538   :  { %982 = vadd.xlane.f32.xlu0 %v981_v63  ;;  %v990_v49 = vsel %vm164_vm0, %v6560_v11, 0.0  ;;  %v6566_v5 = vpop.eup %5623 }
 0x539   :  { %991 = vadd.xlane.f32.xlu1 %v990_v49  ;;  %v984_v6 = vsel %vm164_vm0, %v6566_v5, 0.0 }
 0x53b   :  { %v1223_v35 = vpop.xlane.xlu0 %1222 }
 0x53c   :  { %v1241_v3 = vsub.f32 %v6480_v31, %v1223_v35 }
 0x53d   :  { %985 = vadd.xlane.f32.xlu1 %v984_v6  ;;  %v1226_v57 = vpop.xlane.xlu1 %1225 }
 0x53e   :  { %v1251_v4 = vmul.f32 1.442695, %v1241_v3  ;;  %v1242_v58 = vsub.f32 %v6486_v34, %v1226_v57 }
 0x53f   :  { %v1217_v60 = vpop.xlane.xlu0 %1216 }
 0x540   :  { %5625 = vpow2.f32 %v1251_v4  ;;  %v1253_v40 = vmul.f32 1.442695, %v1242_v58  ;;  %v1239_v61 = vsub.f32 %v6482_v25, %v1217_v60 }
 0x541   :  { %v1220_v0 = vpop.xlane.xlu1 %1219 }
 0x542   :  { %5627 = vpow2.f32 %v1253_v40  ;;  %v1247_v24 = vmul.f32 1.442695, %v1239_v61  ;;  %v1240_v39 = vsub.f32 %v6488_v12, %v1220_v0 }
 0x543   :  { %v1235_v48 = vpop.xlane.xlu0 %1234 }
 0x544   :  { %5629 = vpow2.f32 %v1247_v24  ;;  %v1249_v31 = vmul.f32 1.442695, %v1240_v39  ;;  %v1245_v63 = vsub.f32 %v6496_v36, %v1235_v48 }
 0x545   :  { %v1238_v49 = vpop.xlane.xlu1 %1237 }
 0x546   :  { %5631 = vpow2.f32 %v1249_v31  ;;  %v1259_v35 = vmul.f32 1.442695, %v1245_v63  ;;  %v1246_v34 = vsub.f32 %v6502_v2, %v1238_v49 }
 0x547   :  { %v1229_v3 = vpop.xlane.xlu0 %1228 }
 0x548   :  { %5633 = vpow2.f32 %v1259_v35  ;;  %v1261_v6 = vmul.f32 1.442695, %v1246_v34  ;;  %v1243_v25 = vsub.f32 %v6498_v27, %v1229_v3 }
 0x549   :  { %v1232_v57 = vpop.xlane.xlu1 %1231 }
 0x54a   :  { %v6577_v4 = vpop.eup %5625  ;;  %5635 = vpow2.f32 %v1261_v6  ;;  %v1255_v12 = vmul.f32 1.442695, %v1243_v25  ;;  %v1244_v58 = vsub.f32 %v6504_v45, %v1232_v57  ;;  %v1749_v6 = vsel %vm164_vm0, %v6524_v32, -inf }
 0x54b   :  { %v6580_v60 = vpop.permute.xlu0 %1311  ;;  %v1269_v36 = vsel %vm164_vm0, %v6577_v4, 0.0  ;;  %v1752_v25 = vsel %vm164_vm0, %v6528_v14, -inf }
 0x54c   :  { %v6584_v40 = vpop.eup %5627  ;;  %5637 = vpow2.f32 %v1255_v12  ;;  %v1257_v2 = vmul.f32 1.442695, %v1244_v58  ;;  %5053 = vmatprep.subr.bf16.mxu0 %v6580_v60  ;;  %1270 = vadd.xlane.f32.xlu0 %v1269_v36 }
 0x54d   :  { %v1272_v27 = vsel %vm164_vm0, %v6584_v40, 0.0  ;;  %v1314_v12 = vpop.permute.xlu1 %1313 }
 0x54e   :  { %v6589_v61 = vpop.eup %5629  ;;  %5639 = vpow2.f32 %v1257_v2  ;;  %1273 = vadd.xlane.f32.xlu1 %v1272_v27 }
 0x54f   :  { %v1263_v45 = vsel %vm164_vm0, %v6589_v61, 0.0 }
 0x550   :  { %v6593_v0 = vpop.eup %5631  ;;  %1264 = vadd.xlane.f32.xlu0 %v1263_v45 }
 0x551   :  { %v1266_v24 = vsel %vm164_vm0, %v6593_v0, 0.0 }
 0x552   :  { %v6597_v39 = vpop.eup %5633  ;;  %1267 = vadd.xlane.f32.xlu1 %v1266_v24 }
 0x553   :  { %v1281_v48 = vsel %vm164_vm0, %v6597_v39, 0.0 }
 0x554   :  { %v6601_v31 = vpop.eup %5635  ;;  %1282 = vadd.xlane.f32.xlu0 %v1281_v48 }
 0x555   :  { %v1284_v63 = vsel %vm164_vm0, %v6601_v31, 0.0 }
 0x556   :  { %v6605_v49 = vpop.eup %5637  ;;  %1285 = vadd.xlane.f32.xlu1 %v1284_v63 }
 0x557   :  { %v1275_v35 = vsel %vm164_vm0, %v6605_v49, 0.0 }
 0x558   :  { %v6609_v34 = vpop.eup %5639  ;;  %1276 = vadd.xlane.f32.xlu0 %v1275_v35 }
 0x559   :  { %v1278_v3 = vsel %vm164_vm0, %v6609_v34, 0.0 }
 0x55a   :  { %1279 = vadd.xlane.f32.xlu1 %v1278_v3 }
 0x56b   :  { %1315 = vrot.lane.b32.xlu1 %v6316_v9, %s5906_s8  ;;  %v1734_v9 = vsel %vm164_vm0, %v6520_v52, -inf }
 0x56e   :  { %1317 = vrot.lane.b32.xlu0 %v6336_v56, %s5906_s8  ;;  %v1731_v56 = vsel %vm164_vm0, %v6516_v13, -inf }
 0x56f   :  { %2037 = vrot.lane.b32.xlu1 %v6276_v29, %s5911_s13 }
 0x572   :  { %2039 = vrot.lane.b32.xlu0 %v6296_v62, %s5911_s13 }
 0x573   :  { %2041 = vrot.lane.b32.xlu1 %v6312_v8, %s5911_s13 }
 0x576   :  { %2043 = vrot.lane.b32.xlu0 %v6333_v37, %s5911_s13 }
 0x577   :  { %2029 = vrot.lane.b32.xlu1 %v6276_v29, %s5912_s14  ;;  %v1737_v29 = vsel %vm164_vm0, %v6512_v10, -inf }
 0x57a   :  { %2031 = vrot.lane.b32.xlu0 %v6296_v62, %s5912_s14  ;;  %v1740_v62 = vsel %vm164_vm0, %v6518_v38, -inf }
 0x57b   :  { %2033 = vrot.lane.b32.xlu1 %v6312_v8, %s5912_s14  ;;  %v1743_v8 = vsel %vm164_vm0, %v6526_v7, -inf }
 0x57e   :  { %2035 = vrot.lane.b32.xlu0 %v6333_v37, %s5912_s14  ;;  %v1746_v37 = vsel %vm164_vm0, %v6530_v18, -inf }
 0x59d   :  { %1735 = vmax.xlane.f32.xlu0 %v1734_v9 }
 0x59f   :  { %1732 = vmax.xlane.f32.xlu1 %v1731_v56 }
 0x5a1   :  { %1738 = vmax.xlane.f32.xlu0 %v1737_v29 }
 0x5a3   :  { %1741 = vmax.xlane.f32.xlu1 %v1740_v62 }
 0x5a5   :  { %1744 = vmax.xlane.f32.xlu0 %v1743_v8 }
 0x5a7   :  { %1747 = vmax.xlane.f32.xlu1 %v1746_v37 }
 0x5a9   :  { %1750 = vmax.xlane.f32.xlu0 %v1749_v6 }
 0x5ab   :  { %1753 = vmax.xlane.f32.xlu1 %v1752_v25 }
 0x5b9   :  { %v977_v57 = vpop.xlane.xlu0 %976 }
 0x5bd   :  { %v971_v58 = vpop.xlane.xlu0 %970 }
 0x5be   :  { %v980_v36 = vpop.xlane.xlu1 %979 }
 0x5bf   :  { %5641 = vrcp.f32 %v980_v36 }
 0x5c0   :  { %5643 = vrcp.f32 %v971_v58 }
 0x5c1   :  { %v989_v2 = vpop.xlane.xlu0 %988  ;;  %5645 = vrcp.f32 %v977_v57 }
 0x5c2   :  { %v974_v27 = vpop.xlane.xlu1 %973 }
 0x5c3   :  { %5647 = vrcp.f32 %v974_v27 }
 0x5c5   :  { %v983_v45 = vpop.xlane.xlu0 %982 }
 0x5c6   :  { %v992_v24 = vpop.xlane.xlu1 %991 }
 0x5c7   :  { %5649 = vrcp.f32 %v992_v24 }
 0x5c8   :  { %5651 = vrcp.f32 %v983_v45 }
 0x5c9   :  { %v5642_v48 = vpop.eup %5641  ;;  %5653 = vrcp.f32 %v989_v2 }
 0x5ca   :  { %v986_v63 = vpop.xlane.xlu1 %985  ;;  %v5644_v35 = vpop.eup %5643  ;;  %v1004_v56 = vmul.f32 %v5642_v48, %v6544_v46 }
 0x5cb   :  { %5655 = vrcp.f32 %v986_v63  ;;  %v5646_v3 = vpop.eup %5645  ;;  %v1001_v29 = vmul.f32 %v5644_v35, %v6542_v26 }
 0x5cc   :  { %v1003_v8 = vmul.f32 %v5646_v3, %v6538_v59 }
 0x5cd   :  { %v5648_v9 = vpop.eup %5647 }
 0x5ce   :  { %v1002_v62 = vmul.f32 %v5648_v9, %v6550_v1  ;;  %v1010_v6 = vpack.c.bf16 %v1004_v56, %v1003_v8 }
 0x5d0   :  { %v1009_v37 = vpack.c.bf16 %v1002_v62, %v1001_v29 }
 0x5d1   :  { %v5650_v25 = vpop.eup %5649 }
 0x5d2   :  { %5029 = vmatprep.mubr.msk.bf16.mxu0 %vm164_vm0, %v1009_v37  ;;  %v5652_v57 = vpop.eup %5651  ;;  %v1008_v46 = vmul.f32 %v5650_v25, %v6560_v11 }
 0x5d3   :  { %5030 = vmatmul.mubr.msk.bf16.vlgmr.msra.gmra.mrb[56].mxu0 %vm164_vm0, %v1010_v6  ;;  %v5654_v58 = vpop.eup %5653  ;;  %v1005_v26 = vmul.f32 %v5652_v57, %v6556_v43 }
 0x5d4   :  { %5054 = vmatpush3.bf16.msra.mxu0 %v6580_v60  ;;  %v1007_v59 = vmul.f32 %v5654_v58, %v6552_v30 }
 0x5d5   :  { %v5656_v36 = vpop.eup %5655  ;;  %5055 = vmatprep.subr.bf16.mxu0 %v1314_v12 }
 0x5d6   :  { %v1006_v1 = vmul.f32 %v5656_v36, %v6566_v5  ;;  %v1012_v45 = vpack.c.bf16 %v1008_v46, %v1007_v59 }
 0x5d8   :  { %5056 = vmatpush3.bf16.msra.mxu0 %v1314_v12  ;;  %v1011_v2 = vpack.c.bf16 %v1006_v1, %v1005_v26 }
 0x5d9   :  { %v1271_v27 = vpop.xlane.xlu0 %1270 }
 0x5da   :  { %5033 = vmatprep.mubr.msk.bf16.mxu0 %vm164_vm0, %v1011_v2 }
 0x5db   :  { %5034 = vmatmul.mubr.msk.bf16.gmra.mrb[60].mxu0 %vm164_vm0, %v1012_v45  ;;  %v1274_v24 = vpop.xlane.xlu1 %1273 }
 0x5dd   :  { %v1265_v60 = vpop.xlane.xlu0 %1264 }
 0x5de   :  { %5657 = vrcp.f32 %v1265_v60 }
 0x5df   :  { %v1268_v48 = vpop.xlane.xlu1 %1267 }
 0x5e0   :  { %5659 = vrcp.f32 %v1268_v48 }
 0x5e1   :  { %5661 = vrcp.f32 %v1274_v24  ;;  %v1283_v11 = vpop.xlane.xlu0 %1282 }
 0x5e2   :  { %5663 = vrcp.f32 %v1271_v27 }
 0x5e3   :  { %v1286_v43 = vpop.xlane.xlu1 %1285 }
 0x5e5   :  { %v1277_v5 = vpop.xlane.xlu0 %1276 }
 0x5e6   :  { %5665 = vrcp.f32 %v1277_v5 }
 0x5e7   :  { %v1280_v30 = vpop.xlane.xlu1 %1279 }
 0x5e8   :  { %v5658_v12 = vpop.eup %5657  ;;  %5667 = vrcp.f32 %v1280_v30 }
 0x5e9   :  { %5669 = vrcp.f32 %v1286_v43  ;;  %v1318_v3 = vpop.permute.xlu0 %1317  ;;  %v1295_v56 = vmul.f32 %v5658_v12, %v6589_v61 }
 0x5ea   :  { %v5660_v63 = vpop.eup %5659  ;;  %5671 = vrcp.f32 %v1283_v11 }
 0x5eb   :  { %v5662_v35 = vpop.eup %5661  ;;  %v1316_v9 = vpop.permute.xlu1 %1315  ;;  %v1296_v29 = vmul.f32 %v5660_v63, %v6593_v0 }
 0x5ec   :  { %5057 = vmatprep.subr.bf16.mxu0 %v1316_v9  ;;  %v5664_v62 = vpop.eup %5663  ;;  %v1298_v37 = vmul.f32 %v5662_v35, %v6584_v40 }
 0x5ed   :  { %5058 = vmatpush3.bf16.msra.mxu0 %v1316_v9  ;;  %v1303_v8 = vpack.c.bf16 %v1296_v29, %v1295_v56  ;;  %v1297_v57 = vmul.f32 %v5664_v62, %v6577_v4  ;;  %v2040_v61 = vpop.permute.xlu0 %2039 }
 0x5ee   :  { %5059 = vmatprep.subr.bf16.mxu0 %v1318_v3  ;;  %v2061_v45 = vsel %vm831_vm1, %v2040_v61, 0 }
 0x5ef   :  { %5061 = vmatprep.mubr.msk.bf16.mxu0 %vm164_vm0, %v1303_v8  ;;  %v2038_v6 = vpop.permute.xlu1 %2037  ;;  %v1304_v36 = vpack.c.bf16 %v1298_v37, %v1297_v57 }
 0x5f0   :  { %v5666_v25 = vpop.eup %5665  ;;  %5521 = vmatprep.subr.msk.bf16.mxu1 %vm831_vm1, %v2038_v6  ;;  %v2058_v58 = vsel %vm831_vm1, %v2038_v6, 0 }
 0x5f1   :  { %5060 = vmatpush3.bf16.msra.mxu0 %v1318_v3  ;;  %5150 = vmatpush3.bf16.xpose.msra.mxu1 %v2058_v58  ;;  %v1299_v26 = vmul.f32 %v5666_v25, %v6605_v49  ;;  %v2044_v60 = vpop.permute.xlu0 %2043  ;;  %v5582_v25 = vld [vmem:[%s7683_s4 + $0x28] sm:$0xff]  }
 0x5f2   :  { %v5668_v0 = vpop.eup %5667  ;;  %5522 = vmatprep.subr.msk.bf16.mxu1 %vm831_vm1, %v2040_v61 }
 0x5f3   :  { %v5670_v46 = vpop.eup %5669  ;;  %v2042_v40 = vpop.permute.xlu1 %2041  ;;  %v1300_v1 = vmul.f32 %v5668_v0, %v6609_v34 }
 0x5f4   :  { %5062 = vmatmul.mubr.msk.bf16.vlgmr.msra.gmra.mrb[64].mxu0 %vm164_vm0, %v1304_v36  ;;  %v5672_v4 = vpop.eup %5671  ;;  %v1302_v2 = vmul.f32 %v5670_v46, %v6601_v31  ;;  %v2064_v34 = vsel %vm831_vm1, %v2042_v40, 0  ;;  %v2067_v31 = vsel %vm831_vm1, %v2044_v60, 0 }
 0x5f5   :  { %v1305_v59 = vpack.c.bf16 %v1300_v1, %v1299_v26  ;;  %v1301_v24 = vmul.f32 %v5672_v4, %v6597_v39  ;;  %v2032_v48 = vpop.permute.xlu0 %2031 }
 0x5f7   :  { %5065 = vmatprep.mubr.msk.bf16.mxu0 %vm164_vm0, %v1305_v59  ;;  %v2030_v27 = vpop.permute.xlu1 %2029  ;;  %v1306_v49 = vpack.c.bf16 %v1302_v2, %v1301_v24 }
 0x5f8   :  { %5157 = vmatprep.mubr.msk.bf16.mxu1 %vm831_vm1, %v2030_v27 }
 0x5f9   :  { %5152 = vmatpush3.bf16.xpose.msra.mxu1 %v2061_v45  ;;  %v2036_v39 = vpop.permute.xlu0 %2035 }
 0x5fa   :  { %5523 = vmatprep.subr.msk.bf16.mxu1 %vm831_vm1, %v2042_v40 }
 0x5fb   :  { %v2034_v11 = vpop.permute.xlu1 %2033 }
 0x5fc   :  { %5066 = vmatmul.mubr.msk.bf16.gmra.mrb[68].mxu0 %vm164_vm0, %v1306_v49 }
 0x601   :  { %5154 = vmatpush3.bf16.xpose.msra.mxu1 %v2064_v34  ;;  %v5583_v34 = vld [vmem:[%s7683_s4 + $0x30] sm:$0xff]  }
 0x602   :  { %5524 = vmatprep.subr.msk.bf16.mxu1 %vm831_vm1, %v2044_v60 }
 0x609   :  { %5156 = vmatpush3.bf16.xpose.msra.mxu1 %v2067_v31 }
 0x610   :  { %5158 = vmatmul.mubr.msk.bf16.vlgmr.msra.gmra.mrb[48].mxu1 %vm831_vm1, %v2032_v48 }
 0x611   :  { %5161 = vmatprep.mubr.msk.bf16.mxu1 %vm831_vm1, %v2034_v11  ;;  %v5584_v11 = vld [vmem:[%s7683_s4 + $0x38] sm:$0xff]  }
 0x618   :  { %5162 = vmatmul.mubr.msk.bf16.gmra.mrb[52].mxu1 %vm831_vm1, %v2036_v39  ;;  %v5585_v39 = vld [vmem:[%s7683_s4] sm:$0xff]  }
 0x619   :  { %5205 = vmatprep.mubr.msk.bf16.mxu1 %vm831_vm1, %v6359_v17 }
 0x62a   :  { %v1736_v43 = vpop.xlane.xlu0 %1735 }
 0x62b   :  { %v1756_v5 = vsub.f32 %v6520_v52, %v1736_v43 }
 0x62c   :  { %v1733_v30 = vpop.xlane.xlu1 %1732 }
 0x62d   :  { %v1765_v12 = vmul.f32 1.442695, %v1756_v5  ;;  %v1755_v63 = vsub.f32 %v6516_v13, %v1733_v30  ;;  %v5581_v13 = vld [vmem:[%s7683_s4 + $0x20] sm:$0xff]  }
 0x62e   :  { %v1739_v35 = vpop.xlane.xlu0 %1738  ;;  %5069 = vmatprep.subr.bf16.mxu0 %v5581_v13 }
 0x62f   :  { %5673 = vpow2.f32 %v1765_v12  ;;  %v1763_v3 = vmul.f32 1.442695, %v1755_v63  ;;  %v1757_v9 = vsub.f32 %v6512_v10, %v1739_v35  ;;  %5070 = vmatpush3.bf16.msra.mxu0 %v5581_v13 }
 0x630   :  { %v1742_v56 = vpop.xlane.xlu1 %1741  ;;  %5071 = vmatprep.subr.bf16.mxu0 %v5582_v25 }
 0x631   :  { %5675 = vpow2.f32 %v1763_v3  ;;  %v1767_v29 = vmul.f32 1.442695, %v1757_v9  ;;  %v1758_v62 = vsub.f32 %v6518_v38, %v1742_v56 }
 0x632   :  { %v1745_v8 = vpop.xlane.xlu0 %1744 }
 0x633   :  { %5677 = vpow2.f32 %v1767_v29  ;;  %v1769_v37 = vmul.f32 1.442695, %v1758_v62  ;;  %v1759_v6 = vsub.f32 %v6526_v7, %v1745_v8  ;;  %5072 = vmatpush3.bf16.msra.mxu0 %v5582_v25 }
 0x634   :  { %v1748_v52 = vpop.xlane.xlu1 %1747  ;;  %5073 = vmatprep.subr.bf16.mxu0 %v5583_v34 }
 0x635   :  { %5679 = vpow2.f32 %v1769_v37  ;;  %v1771_v10 = vmul.f32 1.442695, %v1759_v6  ;;  %v1760_v57 = vsub.f32 %v6530_v18, %v1748_v52 }
 0x636   :  { %v1751_v58 = vpop.xlane.xlu0 %1750 }
 0x637   :  { %5681 = vpow2.f32 %v1771_v10  ;;  %v1773_v38 = vmul.f32 1.442695, %v1760_v57  ;;  %v1761_v61 = vsub.f32 %v6524_v32, %v1751_v58  ;;  %5074 = vmatpush3.bf16.msra.mxu0 %v5583_v34 }
 0x638   :  { %v1754_v7 = vpop.xlane.xlu1 %1753  ;;  %5075 = vmatprep.subr.bf16.mxu0 %v5584_v11 }
 0x639   :  { %v6701_v0 = vpop.eup %5673  ;;  %5683 = vpow2.f32 %v1773_v38  ;;  %v1775_v36 = vmul.f32 1.442695, %v1761_v61  ;;  %v1762_v46 = vsub.f32 %v6528_v14, %v1754_v7 }
 0x63a   :  { %v1782_v40 = vsel %vm164_vm0, %v6701_v0, 0.0 }
 0x63b   :  { %v6706_v26 = vpop.eup %5675  ;;  %5685 = vpow2.f32 %v1775_v36  ;;  %v1777_v18 = vmul.f32 1.442695, %v1762_v46  ;;  %1783 = vadd.xlane.f32.xlu1 %v1782_v40  ;;  %5076 = vmatpush3.bf16.msra.mxu0 %v5584_v11 }
 0x63c   :  { %v1779_v32 = vsel %vm164_vm0, %v6706_v26, 0.0  ;;  %5085 = vmatprep.subr.bf16.mxu0 %v5585_v39 }
 0x63d   :  { %v6710_v1 = vpop.eup %5677  ;;  %5687 = vpow2.f32 %v1777_v18  ;;  %1780 = vadd.xlane.f32.xlu0 %v1779_v32 }
 0x63e   :  { %v1785_v14 = vsel %vm164_vm0, %v6710_v1, 0.0 }
 0x63f   :  { %v6712_v4 = vpop.eup %5679 }
 0x640   :  { %v1788_v59 = vsel %vm164_vm0, %v6712_v4, 0.0 }
 0x641   :  { %v6718_v2 = vpop.eup %5681  ;;  %1786 = vadd.xlane.f32.xlu0 %v1785_v14  ;;  %1789 = vadd.xlane.f32.xlu1 %v1788_v59 }
 0x642   :  { %v1791_v45 = vsel %vm164_vm0, %v6718_v2, 0.0 }
 0x643   :  { %v6720_v27 = vpop.eup %5683 }
 0x644   :  { %v1794_v24 = vsel %vm164_vm0, %v6720_v27, 0.0 }
 0x645   :  { %v6726_v49 = vpop.eup %5685  ;;  %1792 = vadd.xlane.f32.xlu0 %v1791_v45  ;;  %1795 = vadd.xlane.f32.xlu1 %v1794_v24 }
 0x646   :  { %v1797_v31 = vsel %vm164_vm0, %v6726_v49, 0.0 }
 0x647   :  { %v6731_v60 = vpop.eup %5687 }
 0x648   :  { %v1800_v48 = vsel %vm164_vm0, %v6731_v60, 0.0 }
 0x649   :  { %1798 = vadd.xlane.f32.xlu0 %v1797_v31  ;;  %1801 = vadd.xlane.f32.xlu1 %v1800_v48  ;;  %v5586_v48 = vld [vmem:[%s7683_s4 + $0x8] sm:$0xff]  }
 0x65a   :  { %2462 = vrot.lane.b32.xlu1 %v6380_v42, %s5906_s8 }
 0x65e   :  { %2464 = vrot.lane.b32.xlu1 %v6396_v53, %s5906_s8 }
 0x65f   :  { %2460 = vrot.lane.b32.xlu0 %v6359_v17, %s5906_s8 }
 0x662   :  { %2746 = vrot.lane.b32.xlu1 %v6359_v17, %s5907_s9 }
 0x663   :  { %2466 = vrot.lane.b32.xlu0 %v6410_v28, %s5906_s8 }
 0x666   :  { %2750 = vrot.lane.b32.xlu1 %v6396_v53, %s5907_s9 }
 0x667   :  { %2748 = vrot.lane.b32.xlu0 %v6380_v42, %s5907_s9 }
 0x66a   :  { %2738 = vrot.lane.b32.xlu1 %v6359_v17, %s5908_s10 }
 0x66b   :  { %2752 = vrot.lane.b32.xlu0 %v6410_v28, %s5907_s9 }
 0x66e   :  { %2742 = vrot.lane.b32.xlu1 %v6396_v53, %s5908_s10 }
 0x66f   :  { %2740 = vrot.lane.b32.xlu0 %v6380_v42, %s5908_s10 }
 0x673   :  { %2744 = vrot.lane.b32.xlu0 %v6410_v28, %s5908_s10 }
 0x6a6   :  { %v5031_v43 = vpop.f32.mrb[56].mxu0 }
 0x6a7   :  { %v1059_v5 = vpop.f32.mrb[57].mxu0  ;;  %v1092_v12 = vmax.f32 %v5031_v43, 0.0 }
 0x6a8   :  { %v5032_v30 = vpop.f32.mrb[58].mxu0  ;;  %v1090_v3 = vmax.f32 %v1059_v5, 0.0 }
 0x6a9   :  { %v1093_v63 = vmax.f32 %v5032_v30, 0.0  ;;  %v1062_v35 = vpop.f32.mrb[59].mxu0 }
 0x6aa   :  { %v1091_v9 = vmax.f32 %v1062_v35, 0.0 }
 0x6ab   :  { %v6767_v56 = vpack.c.bf16 %v1093_v63, %v1092_v12 }
 0x6ac   :  { %v1098_v29 = vpack.c.bf16 %v1091_v9, %v1090_v3  ;;  %v5587_v3 = vld [vmem:[%s7683_s4 + $0x10] sm:$0xff]  }
 0x6ae   :  { %v5035_v62 = vpop.f32.mrb[60].mxu0 }
 0x6af   :  { %v1075_v8 = vpop.f32.mrb[61].mxu0  ;;  %v1096_v6 = vmax.f32 %v5035_v62, 0.0 }
 0x6b0   :  { %v5036_v37 = vpop.f32.mrb[62].mxu0  ;;  %v1094_v25 = vmax.f32 %v1075_v8, 0.0 }
 0x6b1   :  { %v1097_v52 = vmax.f32 %v5036_v37, 0.0  ;;  %v1078_v13 = vpop.f32.mrb[63].mxu0 }
 0x6b2   :  { %v1095_v10 = vmax.f32 %v1078_v13, 0.0 }
 0x6b3   :  { %v6769_v57 = vpack.c.bf16 %v1097_v52, %v1096_v6 }
 0x6b4   :  { %v1100_v58 = vpack.c.bf16 %v1095_v10, %v1094_v25 }
 0x6c7   :  { %v5063_v38 = vpop.f32.mrb[64].mxu0 }
 0x6c8   :  { %v1369_v61 = vpop.f32.mrb[65].mxu0  ;;  %v1784_v7 = vpop.xlane.xlu1 %1783  ;;  %v1402_v46 = vmax.f32 %v5063_v38, 0.0 }
 0x6c9   :  { %v5064_v36 = vpop.f32.mrb[66].mxu0  ;;  %v1400_v14 = vmax.f32 %v1369_v61, 0.0 }
 0x6ca   :  { %v1403_v40 = vmax.f32 %v5064_v36, 0.0  ;;  %v1372_v18 = vpop.f32.mrb[67].mxu0  ;;  %v1781_v32 = vpop.xlane.xlu0 %1780 }
 0x6cb   :  { %v1401_v59 = vmax.f32 %v1372_v18, 0.0  ;;  %5689 = vrcp.f32 %v1781_v32 }
 0x6cc   :  { %v1409_v45 = vpack.c.bf16 %v1403_v40, %v1402_v46  ;;  %5691 = vrcp.f32 %v1784_v7 }
 0x6cd   :  { %v1408_v24 = vpack.c.bf16 %v1401_v59, %v1400_v14 }
 0x6ce   :  { %v1787_v34 = vpop.xlane.xlu0 %1786  ;;  %v1790_v31 = vpop.xlane.xlu1 %1789 }
 0x6cf   :  { %v5067_v11 = vpop.f32.mrb[68].mxu0  ;;  %5077 = vmatprep.mubr.msk.bf16.mxu0 %vm164_vm0, %v1408_v24  ;;  %5693 = vrcp.f32 %v1787_v34 }
 0x6d0   :  { %v1385_v43 = vpop.f32.mrb[69].mxu0  ;;  %5078 = vmatmul.mubr.msk.bf16.vlgmr.msra.gmra.mrb[72].mxu0 %vm164_vm0, %v1409_v45  ;;  %v1406_v30 = vmax.f32 %v5067_v11, 0.0  ;;  %5695 = vrcp.f32 %v1790_v31 }
 0x6d1   :  { %5086 = vmatpush3.bf16.msra.mxu0 %v5585_v39  ;;  %v5068_v5 = vpop.f32.mrb[70].mxu0  ;;  %v1404_v9 = vmax.f32 %v1385_v43, 0.0  ;;  %v5588_v39 = vld [vmem:[%s7683_s4 + $0x18] sm:$0xff]  }
 0x6d2   :  { %v1407_v12 = vmax.f32 %v5068_v5, 0.0  ;;  %v1388_v63 = vpop.f32.mrb[71].mxu0  ;;  %v1793_v35 = vpop.xlane.xlu0 %1792  ;;  %5087 = vmatprep.subr.bf16.mxu0 %v5586_v48 }
 0x6d3   :  { %v1405_v62 = vmax.f32 %v1388_v63, 0.0  ;;  %v1796_v8 = vpop.xlane.xlu1 %1795  ;;  %5697 = vrcp.f32 %v1793_v35 }
 0x6d4   :  { %v1411_v37 = vpack.c.bf16 %v1407_v12, %v1406_v30  ;;  %5699 = vrcp.f32 %v1796_v8 }
 0x6d5   :  { %v1410_v6 = vpack.c.bf16 %v1405_v62, %v1404_v9  ;;  %5088 = vmatpush3.bf16.msra.mxu0 %v5586_v48  ;;  %v5690_v61 = vpop.eup %5689 }
 0x6d6   :  { %v1799_v52 = vpop.xlane.xlu0 %1798  ;;  %5089 = vmatprep.subr.bf16.mxu0 %v5587_v3  ;;  %v1811_v46 = vmul.f32 %v5690_v61, %v6706_v26 }
 0x6d7   :  { %v1802_v13 = vpop.xlane.xlu1 %1801  ;;  %5081 = vmatprep.mubr.msk.bf16.mxu0 %vm164_vm0, %v1410_v6  ;;  %5701 = vrcp.f32 %v1799_v52 }
 0x6d8   :  { %5082 = vmatmul.mubr.msk.bf16.gmra.mrb[76].mxu0 %vm164_vm0, %v1411_v37  ;;  %5703 = vrcp.f32 %v1802_v13 }
 0x6d9   :  { %5090 = vmatpush3.bf16.msra.mxu0 %v5587_v3  ;;  %5093 = vmatprep.mubr.msk.bf16.mxu0 %vm164_vm0, %v1098_v29  ;;  %v5692_v29 = vpop.eup %5691 }
 0x6da   :  { %v2461_v25 = vpop.permute.xlu0 %2460  ;;  %5091 = vmatprep.subr.bf16.mxu0 %v5588_v39  ;;  %v1812_v32 = vmul.f32 %v5692_v29, %v6701_v0  ;;  %v5694_v14 = vpop.eup %5693 }
 0x6db   :  { %5525 = vmatprep.subr.msk.bf16.mxu1 %vm831_vm1, %v2461_v25  ;;  %v2481_v10 = vsel %vm831_vm1, %v2461_v25, 0  ;;  %v2463_v38 = vpop.permute.xlu1 %2462  ;;  %v5696_v59 = vpop.eup %5695  ;;  %v1813_v48 = vmul.f32 %v5694_v14, %v6710_v1 }
 0x6dc   :  { %5198 = vmatpush3.bf16.xpose.msra.mxu1 %v2481_v10  ;;  %v2484_v36 = vsel %vm831_vm1, %v2463_v38, 0  ;;  %v1819_v24 = vpack.c.bf16 %v1812_v32, %v1811_v46  ;;  %v1814_v11 = vmul.f32 %v5696_v59, %v6712_v4  ;;  %v5592_v46 = vld [vmem:[%s7683_s4 + $0x58] sm:$0xff]  }
 0x6dd   :  { %5092 = vmatpush3.bf16.msra.mxu0 %v5588_v39  ;;  %5526 = vmatprep.subr.msk.bf16.mxu1 %vm831_vm1, %v2463_v38  ;;  %v5698_v34 = vpop.eup %5697  ;;  %v5589_v38 = vld [vmem:[%s7683_s4 + $0x40] sm:$0xff]  }
 0x6de   :  { %5117 = vmatprep.subr.bf16.mxu0 %v6284_v51  ;;  %v5700_v31 = vpop.eup %5699  ;;  %v2467_v30 = vpop.permute.xlu0 %2466  ;;  %v1815_v63 = vmul.f32 %v5698_v34, %v6718_v2  ;;  %v1820_v9 = vpack.c.bf16 %v1814_v11, %v1813_v48 }
 0x6df   :  { %v2465_v40 = vpop.permute.xlu1 %2464  ;;  %v1816_v35 = vmul.f32 %v5700_v31, %v6720_v27  ;;  %v2490_v13 = vsel %vm831_vm1, %v2467_v30, 0 }
 0x6e0   :  { %5094 = vmatmul.mubr.msk.bf16.vlgmr.msra.gmra.mrb[72].mxu0 %vm164_vm0, %v6767_v56  ;;  %v2487_v5 = vsel %vm831_vm1, %v2465_v40, 0 }
 0x6e1   :  { %5118 = vmatpush3.bf16.msra.mxu0 %v6284_v51  ;;  %5097 = vmatprep.mubr.msk.bf16.mxu0 %vm164_vm0, %v1100_v58  ;;  %v5702_v3 = vpop.eup %5701  ;;  %v1821_v2 = vpack.c.bf16 %v1816_v35, %v1815_v63 }
 0x6e2   :  { %5119 = vmatprep.subr.bf16.mxu0 %v6282_v50  ;;  %v5704_v37 = vpop.eup %5703  ;;  %v1817_v52 = vmul.f32 %v5702_v3, %v6726_v49  ;;  %v5590_v49 = vld [vmem:[%s7683_s4 + $0x48] sm:$0xff]   ;;  %v2749_v61 = vpop.permute.xlu0 %2748 }
 0x6e3   :  { %v6794_v7 = vpop.f32.mrb[48].mxu1  ;;  %v1818_v39 = vmul.f32 %v5704_v37, %v6731_v60  ;;  %v2747_v25 = vpop.permute.xlu1 %2746 }
 0x6e4   :  { %v6798_v18 = vpop.f32.mrb[49].mxu1  ;;  %5200 = vmatpush3.bf16.xpose.msra.mxu1 %v2484_v36  ;;  %v2767_v60 = vsel %vm831_vm1, %v2747_v25, 0  ;;  %v5591_v36 = vld [vmem:[%s7683_s4 + $0x50] sm:$0xff]  }
 0x6e5   :  { %5120 = vmatpush3.bf16.msra.mxu0 %v6282_v50  ;;  %v6801_v56 = vpop.f32.mrb[50].mxu1  ;;  %5527 = vmatprep.subr.msk.bf16.mxu1 %vm831_vm1, %v2465_v40  ;;  %v2134_v58 = vsel %vm164_vm0, %v6798_v18, -inf  ;;  %v1822_v10 = vpack.c.bf16 %v1818_v39, %v1817_v52 }
 0x6e6   :  { %5121 = vmatprep.subr.bf16.mxu0 %v6320_v16  ;;  %v6808_v26 = vpop.f32.mrb[51].mxu1  ;;  %2135 = vmax.xlane.f32.xlu1 %v2134_v58  ;;  %v2143_v0 = vsel %vm164_vm0, %v6801_v56, -inf  ;;  %v2770_v58 = vsel %vm831_vm1, %v2749_v61, 0  ;;  %v2753_v14 = vpop.permute.xlu0 %2752 }
 0x6e7   :  { %v2137_v45 = vsel %vm164_vm0, %v6808_v26, -inf  ;;  %v2751_v29 = vpop.permute.xlu1 %2750  ;;  %v2776_v59 = vsel %vm831_vm1, %v2753_v14, 0 }
 0x6e8   :  { %5098 = vmatmul.mubr.msk.bf16.gmra.mrb[76].mxu0 %vm164_vm0, %v6769_v57  ;;  %2138 = vmax.xlane.f32.xlu0 %v2137_v45  ;;  %v2140_v57 = vsel %vm164_vm0, %v6794_v7, -inf  ;;  %v2773_v32 = vsel %vm831_vm1, %v2751_v29, 0 }
 0x6e9   :  { %5122 = vmatpush3.bf16.msra.mxu0 %v6320_v16  ;;  %5125 = vmatprep.mubr.msk.bf16.mxu0 %vm164_vm0, %v1819_v24 }
 0x6ea   :  { %5123 = vmatprep.subr.bf16.mxu0 %v6318_v15  ;;  %2144 = vmax.xlane.f32.xlu1 %v2143_v0  ;;  %v2741_v45 = vpop.permute.xlu0 %2740 }
 0x6eb   :  { %v6821_v43 = vpop.f32.mrb[52].mxu1  ;;  %v2739_v40 = vpop.permute.xlu1 %2738 }
 0x6ec   :  { %v6826_v12 = vpop.f32.mrb[53].mxu1  ;;  %2141 = vmax.xlane.f32.xlu0 %v2140_v57  ;;  %5202 = vmatpush3.bf16.xpose.msra.mxu1 %v2487_v5  ;;  %v2152_v27 = vsel %vm164_vm0, %v6821_v43, -inf }
 0x6ed   :  { %5124 = vmatpush3.bf16.msra.mxu0 %v6318_v15  ;;  %v6831_v1 = vpop.f32.mrb[54].mxu1  ;;  %5528 = vmatprep.subr.msk.bf16.mxu1 %vm831_vm1, %v2467_v30  ;;  %v2146_v62 = vsel %vm164_vm0, %v6826_v12, -inf }
 0x6ee   :  { %v6834_v4 = vpop.f32.mrb[55].mxu1  ;;  %v2155_v6 = vsel %vm164_vm0, %v6831_v1, -inf  ;;  %5133 = vmatprep.subr.bf16.mxu0 %v5589_v38 }
 0x6ef   :  { %v2149_v8 = vsel %vm164_vm0, %v6834_v4, -inf  ;;  %v2743_v24 = vpop.permute.xlu1 %2742 }
 0x6f0   :  { %2147 = vmax.xlane.f32.xlu0 %v2146_v62  ;;  %2150 = vmax.xlane.f32.xlu1 %v2149_v8 }
 0x6f1   :  { %5126 = vmatmul.mubr.msk.bf16.vlgmr.msra.gmra.mrb[80].mxu0 %vm164_vm0, %v1820_v9 }
 0x6f2   :  { %5129 = vmatprep.mubr.msk.bf16.mxu0 %vm164_vm0, %v1821_v2  ;;  %5134 = vmatpush3.bf16.msra.mxu0 %v5589_v38 }
 0x6f3   :  { %5135 = vmatprep.subr.bf16.mxu0 %v5590_v49 }
 0x6f4   :  { %2153 = vmax.xlane.f32.xlu0 %v2152_v27  ;;  %2156 = vmax.xlane.f32.xlu1 %v2155_v6 }
 0x6f5   :  { %5204 = vmatpush3.bf16.xpose.msra.mxu1 %v2490_v13 }
 0x6f6   :  { %5529 = vmatprep.subr.msk.bf16.mxu1 %vm831_vm1, %v2747_v25  ;;  %5136 = vmatpush3.bf16.msra.mxu0 %v5590_v49 }
 0x6f7   :  { %5137 = vmatprep.subr.bf16.mxu0 %v5591_v36 }
 0x6f9   :  { %5130 = vmatmul.mubr.msk.bf16.gmra.mrb[84].mxu0 %vm164_vm0, %v1822_v10 }
 0x6fa   :  { %5138 = vmatpush3.bf16.msra.mxu0 %v5591_v36 }
 0x6fb   :  { %5139 = vmatprep.subr.bf16.mxu0 %v5592_v46 }
 0x6fc   :  { %5206 = vmatmul.mubr.msk.bf16.vlgmr.msra.gmra.mrb[56].mxu1 %vm831_vm1, %v6380_v42 }
 0x6fd   :  { %5209 = vmatprep.mubr.msk.bf16.mxu1 %vm831_vm1, %v6396_v53  ;;  %5230 = vmatpush3.bf16.xpose.msra.mxu1 %v2767_v60 }
 0x6fe   :  { %5530 = vmatprep.subr.msk.bf16.mxu1 %vm831_vm1, %v2749_v61  ;;  %5140 = vmatpush3.bf16.msra.mxu0 %v5592_v46 }
 0x704   :  { %5210 = vmatmul.mubr.msk.bf16.gmra.mrb[60].mxu1 %vm831_vm1, %v6410_v28 }
 0x705   :  { %5232 = vmatpush3.bf16.xpose.msra.mxu1 %v2770_v58  ;;  %5237 = vmatprep.mubr.msk.bf16.mxu1 %vm831_vm1, %v2739_v40 }
 0x706   :  { %2232 = vrot.lane.b32.xlu1 %v6282_v50, %s5906_s8  ;;  %5531 = vmatprep.subr.msk.bf16.mxu1 %vm831_vm1, %v2751_v29  ;;  %v2745_v50 = vpop.permute.xlu0 %2744 }
 0x70a   :  { %2230 = vrot.lane.b32.xlu0 %v6284_v51, %s5906_s8 }
 0x70d   :  { %5234 = vmatpush3.bf16.xpose.msra.mxu1 %v2773_v32 }
 0x70e   :  { %5532 = vmatprep.subr.msk.bf16.mxu1 %vm831_vm1, %v2753_v14 }
 0x715   :  { %5236 = vmatpush3.bf16.xpose.msra.mxu1 %v2776_v59 }
 0x71c   :  { %5238 = vmatmul.mubr.msk.bf16.vlgmr.msra.gmra.mrb[64].mxu1 %vm831_vm1, %v2741_v45 }
 0x71d   :  { %5241 = vmatprep.mubr.msk.bf16.mxu1 %vm831_vm1, %v2743_v24 }
 0x724   :  { %5242 = vmatmul.mubr.msk.bf16.gmra.mrb[68].mxu1 %vm831_vm1, %v2745_v50 }
 0x773   :  { %v2136_v34 = vpop.xlane.xlu1 %2135 }
 0x774   :  { %v2158_v48 = vsub.f32 %v6798_v18, %v2136_v34 }
 0x775   :  { %v2139_v51 = vpop.xlane.xlu0 %2138 }
 0x776   :  { %v2159_v31 = vsub.f32 %v6808_v26, %v2139_v51  ;;  %v2166_v35 = vmul.f32 1.442695, %v2158_v48 }
 0x777   :  { %v2145_v0 = vpop.xlane.xlu1 %2144 }
 0x778   :  { %v2161_v11 = vsub.f32 %v6801_v56, %v2145_v0  ;;  %v2168_v57 = vmul.f32 1.442695, %v2159_v31 }
 0x779   :  { %v2142_v5 = vpop.xlane.xlu0 %2141 }
 0x77a   :  { %v2172_v30 = vmul.f32 1.442695, %v2161_v11  ;;  %v2160_v63 = vsub.f32 %v6794_v7, %v2142_v5 }
 0x77c   :  { %5705 = vpow2.f32 %v2172_v30  ;;  %v2170_v3 = vmul.f32 1.442695, %v2160_v63 }
 0x77d   :  { %5707 = vpow2.f32 %v2168_v57  ;;  %v2148_v9 = vpop.xlane.xlu0 %2147  ;;  %v2151_v62 = vpop.xlane.xlu1 %2150 }
 0x77e   :  { %5709 = vpow2.f32 %v2170_v3  ;;  %v2162_v26 = vsub.f32 %v6826_v12, %v2148_v9  ;;  %v2163_v8 = vsub.f32 %v6834_v4, %v2151_v62 }
 0x77f   :  { %5711 = vpow2.f32 %v2166_v35 }
 0x780   :  { %v2174_v27 = vmul.f32 1.442695, %v2162_v26  ;;  %v2176_v52 = vmul.f32 1.442695, %v2163_v8 }
 0x781   :  { %v2154_v18 = vpop.xlane.xlu0 %2153  ;;  %v2157_v37 = vpop.xlane.xlu1 %2156 }
 0x782   :  { %v2164_v56 = vsub.f32 %v6821_v43, %v2154_v18  ;;  %v2165_v2 = vsub.f32 %v6831_v1, %v2157_v37 }
 0x784   :  { %v2178_v7 = vmul.f32 1.442695, %v2164_v56  ;;  %v2180_v6 = vmul.f32 1.442695, %v2165_v2 }
 0x785   :  { %v2231_v39 = vpop.permute.xlu0 %2230  ;;  %v2233_v48 = vpop.permute.xlu1 %2232 }
 0x786   :  { %v6892_v13 = vpop.eup %5705  ;;  %5713 = vpow2.f32 %v2178_v7  ;;  %5165 = vmatprep.subr.bf16.mxu0 %v2231_v39 }
 0x787   :  { %v6894_v25 = vpop.eup %5707  ;;  %5715 = vpow2.f32 %v2180_v6  ;;  %v2191_v12 = vsel %vm164_vm0, %v6892_v13, 0.0 }
 0x788   :  { %v6898_v4 = vpop.eup %5709  ;;  %5717 = vpow2.f32 %v2174_v27  ;;  %2192 = vadd.xlane.f32.xlu1 %v2191_v12  ;;  %v2185_v10 = vsel %vm164_vm0, %v6894_v25, 0.0 }
 0x789   :  { %5719 = vpow2.f32 %v2176_v52  ;;  %v2188_v43 = vsel %vm164_vm0, %v6898_v4, 0.0  ;;  %v6902_v1 = vpop.eup %5711 }
 0x78a   :  { %2189 = vadd.xlane.f32.xlu0 %v2188_v43  ;;  %v2182_v38 = vsel %vm164_vm0, %v6902_v1, 0.0 }
 0x78c   :  { %2186 = vadd.xlane.f32.xlu1 %v2185_v10 }
 0x78e   :  { %2183 = vadd.xlane.f32.xlu0 %v2182_v38 }
 0x790   :  { %v6908_v49 = vpop.eup %5713 }
 0x791   :  { %v6910_v60 = vpop.eup %5715  ;;  %v2200_v61 = vsel %vm164_vm0, %v6908_v49, 0.0 }
 0x792   :  { %v6914_v29 = vpop.eup %5717  ;;  %2201 = vadd.xlane.f32.xlu0 %v2200_v61  ;;  %v2203_v36 = vsel %vm164_vm0, %v6910_v60, 0.0 }
 0x793   :  { %v6918_v46 = vpop.eup %5719  ;;  %2204 = vadd.xlane.f32.xlu1 %v2203_v36  ;;  %v2194_v40 = vsel %vm164_vm0, %v6914_v29, 0.0 }
 0x794   :  { %v2197_v58 = vsel %vm164_vm0, %v6918_v46, 0.0 }
 0x796   :  { %2195 = vadd.xlane.f32.xlu0 %v2194_v40 }
 0x797   :  { %2198 = vadd.xlane.f32.xlu1 %v2197_v58 }
 0x7a8   :  { %2234 = vrot.lane.b32.xlu1 %v6320_v16, %s5906_s8 }
 0x7ac   :  { %3206 = vrot.lane.b32.xlu1 %v6359_v17, %s5909_s11  ;;  %2236 = vrot.lane.b32.xlu0 %v6318_v15, %s5906_s8 }
 0x7b0   :  { %3210 = vrot.lane.b32.xlu1 %v6396_v53, %s5909_s11  ;;  %3208 = vrot.lane.b32.xlu0 %v6380_v42, %s5909_s11 }
 0x7b4   :  { %3198 = vrot.lane.b32.xlu1 %v6359_v17, %s5910_s12  ;;  %3212 = vrot.lane.b32.xlu0 %v6410_v28, %s5909_s11 }
 0x7b8   :  { %3200 = vrot.lane.b32.xlu0 %v6380_v42, %s5910_s12 }
 0x7c4   :  { %v5127_v16 = vpop.f32.mrb[80].mxu0 }
 0x7c5   :  { %v1869_v32 = vpop.f32.mrb[81].mxu0  ;;  %v1902_v59 = vmax.f32 %v5127_v16, 0.0 }
 0x7c6   :  { %v5128_v14 = vpop.f32.mrb[82].mxu0  ;;  %v1900_v24 = vmax.f32 %v1869_v32, 0.0 }
 0x7c7   :  { %v1903_v15 = vmax.f32 %v5128_v14, 0.0  ;;  %v1872_v45 = vpop.f32.mrb[83].mxu0 }
 0x7c8   :  { %v1901_v50 = vmax.f32 %v1872_v45, 0.0 }
 0x7c9   :  { %v1909_v34 = vpack.c.bf16 %v1903_v15, %v1902_v59 }
 0x7ca   :  { %v1908_v51 = vpack.c.bf16 %v1901_v50, %v1900_v24 }
 0x7cc   :  { %v5131_v31 = vpop.f32.mrb[84].mxu0  ;;  %5141 = vmatprep.mubr.msk.bf16.mxu0 %vm164_vm0, %v1908_v51 }
 0x7cd   :  { %v1885_v0 = vpop.f32.mrb[85].mxu0  ;;  %5142 = vmatmul.mubr.msk.bf16.vlgmr.msra.gmra.mrb[72].mxu0 %vm164_vm0, %v1909_v34  ;;  %v1906_v57 = vmax.f32 %v5131_v31, 0.0 }
 0x7ce   :  { %5166 = vmatpush3.bf16.msra.mxu0 %v2231_v39  ;;  %v5132_v11 = vpop.f32.mrb[86].mxu0  ;;  %v1904_v35 = vmax.f32 %v1885_v0, 0.0 }
 0x7cf   :  { %v1907_v5 = vmax.f32 %v5132_v11, 0.0  ;;  %5167 = vmatprep.subr.bf16.mxu0 %v2233_v48  ;;  %v1888_v30 = vpop.f32.mrb[87].mxu0  ;;  %v6942_v63 = vpop.f32.mrb[56].mxu1 }
 0x7d0   :  { %v1905_v3 = vmax.f32 %v1888_v30, 0.0  ;;  %v6944_v9 = vpop.f32.mrb[57].mxu1  ;;  %v2563_v52 = vsel %vm164_vm0, %v6942_v63, -inf }
 0x7d1   :  { %v1911_v62 = vpack.c.bf16 %v1907_v5, %v1906_v57  ;;  %v6946_v26 = vpop.f32.mrb[58].mxu1  ;;  %v2557_v2 = vsel %vm164_vm0, %v6944_v9, -inf }
 0x7d2   :  { %v1910_v8 = vpack.c.bf16 %v1905_v3, %v1904_v35  ;;  %5168 = vmatpush3.bf16.msra.mxu0 %v2233_v48  ;;  %v6948_v18 = vpop.f32.mrb[59].mxu1  ;;  %v2566_v39 = vsel %vm164_vm0, %v6946_v26, -inf }
 0x7d3   :  { %v2560_v37 = vsel %vm164_vm0, %v6948_v18, -inf }
 0x7d4   :  { %5145 = vmatprep.mubr.msk.bf16.mxu0 %vm164_vm0, %v1910_v8 }
 0x7d5   :  { %5146 = vmatmul.mubr.msk.bf16.gmra.mrb[76].mxu0 %vm164_vm0, %v1911_v62 }
 0x7d7   :  { %v6954_v56 = vpop.f32.mrb[60].mxu1  ;;  %2561 = vmax.xlane.f32.xlu0 %v2560_v37 }
 0x7d8   :  { %v6958_v27 = vpop.f32.mrb[61].mxu1  ;;  %2558 = vmax.xlane.f32.xlu1 %v2557_v2  ;;  %v2575_v14 = vsel %vm164_vm0, %v6954_v56, -inf }
 0x7d9   :  { %v6960_v7 = vpop.f32.mrb[62].mxu1  ;;  %v2569_v32 = vsel %vm164_vm0, %v6958_v27, -inf }
 0x7da   :  { %v6962_v6 = vpop.f32.mrb[63].mxu1  ;;  %v2578_v59 = vsel %vm164_vm0, %v6960_v7, -inf }
 0x7db   :  { %2564 = vmax.xlane.f32.xlu0 %v2563_v52  ;;  %v2572_v16 = vsel %vm164_vm0, %v6962_v6, -inf }
 0x7dc   :  { %2567 = vmax.xlane.f32.xlu1 %v2566_v39 }
 0x7ed   :  { %3204 = vrot.lane.b32.xlu1 %v6410_v28, %s5910_s12 }
 0x7ef   :  { %v6970_v12 = vpop.f32.mrb[64].mxu1 }
 0x7f0   :  { %v6972_v43 = vpop.f32.mrb[65].mxu1  ;;  %v2849_v31 = vsel %vm164_vm0, %v6970_v12, -inf }
 0x7f1   :  { %v6974_v10 = vpop.f32.mrb[66].mxu1  ;;  %3202 = vrot.lane.b32.xlu0 %v6396_v53, %s5910_s12  ;;  %v2843_v24 = vsel %vm164_vm0, %v6972_v43, -inf }
 0x7f2   :  { %v6978_v38 = vpop.f32.mrb[67].mxu1  ;;  %v2852_v0 = vsel %vm164_vm0, %v6974_v10, -inf }
 0x7f3   :  { %v2846_v50 = vsel %vm164_vm0, %v6978_v38, -inf }
 0x7f7   :  { %v6980_v61 = vpop.f32.mrb[68].mxu1 }
 0x7f8   :  { %v6982_v36 = vpop.f32.mrb[69].mxu1  ;;  %v2861_v35 = vsel %vm164_vm0, %v6980_v61, -inf }
 0x7f9   :  { %v6984_v40 = vpop.f32.mrb[70].mxu1  ;;  %v2855_v11 = vsel %vm164_vm0, %v6982_v36, -inf }
 0x7fa   :  { %v6986_v58 = vpop.f32.mrb[71].mxu1  ;;  %v2864_v8 = vsel %vm164_vm0, %v6984_v40, -inf }
 0x7fb   :  { %v2858_v5 = vsel %vm164_vm0, %v6986_v58, -inf }
 0x810   :  { %2573 = vmax.xlane.f32.xlu0 %v2572_v16 }
 0x811   :  { %2570 = vmax.xlane.f32.xlu1 %v2569_v32 }
 0x814   :  { %2576 = vmax.xlane.f32.xlu0 %v2575_v14 }
 0x815   :  { %2579 = vmax.xlane.f32.xlu1 %v2578_v59  ;;  %v2193_v15 = vpop.xlane.xlu1 %2192 }
 0x817   :  { %v2190_v45 = vpop.xlane.xlu0 %2189 }
 0x818   :  { %2844 = vmax.xlane.f32.xlu0 %v2843_v24 }
 0x819   :  { %2847 = vmax.xlane.f32.xlu1 %v2846_v50  ;;  %v2187_v34 = vpop.xlane.xlu1 %2186 }
 0x81a   :  { %5721 = vrcp.f32 %v2187_v34 }
 0x81b   :  { %v2184_v51 = vpop.xlane.xlu0 %2183 }
 0x81c   :  { %5723 = vrcp.f32 %v2184_v51  ;;  %2850 = vmax.xlane.f32.xlu0 %v2849_v31 }
 0x81d   :  { %2853 = vmax.xlane.f32.xlu1 %v2852_v0  ;;  %5725 = vrcp.f32 %v2190_v45  ;;  %v5593_v45 = vld [vmem:[%s7683_s4 + $0x60] sm:$0xff]  }
 0x81e   :  { %5727 = vrcp.f32 %v2193_v15 }
 0x81f   :  { %v2202_v48 = vpop.xlane.xlu0 %2201 }
 0x820   :  { %v2205_v57 = vpop.xlane.xlu1 %2204  ;;  %2856 = vmax.xlane.f32.xlu0 %v2855_v11  ;;  %5729 = vrcp.f32 %v2202_v48  ;;  %v5594_v48 = vld [vmem:[%s7683_s4 + $0x68] sm:$0xff]  }
 0x821   :  { %2859 = vmax.xlane.f32.xlu1 %v2858_v5 }
 0x823   :  { %v2196_v30 = vpop.xlane.xlu0 %2195 }
 0x824   :  { %v5722_v3 = vpop.eup %5721  ;;  %5731 = vrcp.f32 %v2196_v30  ;;  %v2199_v62 = vpop.xlane.xlu1 %2198  ;;  %2862 = vmax.xlane.f32.xlu0 %v2861_v35 }
 0x825   :  { %5733 = vrcp.f32 %v2199_v62  ;;  %2865 = vmax.xlane.f32.xlu1 %v2864_v8  ;;  %v2215_v52 = vmul.f32 %v5722_v3, %v6894_v25 }
 0x826   :  { %v5724_v37 = vpop.eup %5723  ;;  %5735 = vrcp.f32 %v2205_v57 }
 0x827   :  { %v2214_v2 = vmul.f32 %v5724_v37, %v6902_v1  ;;  %v5726_v39 = vpop.eup %5725  ;;  %v2237_v16 = vpop.permute.xlu0 %2236 }
 0x828   :  { %v2235_v32 = vpop.permute.xlu1 %2234  ;;  %v5728_v59 = vpop.eup %5727  ;;  %v2216_v15 = vmul.f32 %v5726_v39, %v6898_v4 }
 0x829   :  { %5169 = vmatprep.subr.bf16.mxu0 %v2235_v32  ;;  %v2222_v14 = vpack.c.bf16 %v2215_v52, %v2214_v2  ;;  %v2217_v25 = vmul.f32 %v5728_v59, %v6892_v13 }
 0x82a   :  { %5170 = vmatpush3.bf16.msra.mxu0 %v2235_v32  ;;  %v5730_v1 = vpop.eup %5729 }
 0x82b   :  { %5171 = vmatprep.subr.bf16.mxu0 %v2237_v16  ;;  %5173 = vmatprep.mubr.msk.bf16.mxu0 %vm164_vm0, %v2222_v14  ;;  %v3209_v51 = vpop.permute.xlu0 %3208  ;;  %v2223_v31 = vpack.c.bf16 %v2217_v25, %v2216_v15  ;;  %v2220_v30 = vmul.f32 %v5730_v1, %v6908_v49  ;;  %v5596_v49 = vld [vmem:[%s7683_s4 + $0x78] sm:$0xff]  }
 0x82c   :  { %v3207_v24 = vpop.permute.xlu1 %3206 }
 0x82d   :  { %v3227_v50 = vsel %vm831_vm1, %v3207_v24, 0  ;;  %5533 = vmatprep.subr.msk.bf16.mxu1 %vm831_vm1, %v3207_v24 }
 0x82e   :  { %v5732_v34 = vpop.eup %5731  ;;  %5172 = vmatpush3.bf16.msra.mxu0 %v2237_v16  ;;  %5294 = vmatpush3.bf16.xpose.msra.mxu1 %v3227_v50 }
 0x82f   :  { %v5734_v4 = vpop.eup %5733  ;;  %5534 = vmatprep.subr.msk.bf16.mxu1 %vm831_vm1, %v3209_v51  ;;  %5181 = vmatprep.subr.bf16.mxu0 %v5593_v45  ;;  %v2218_v0 = vmul.f32 %v5732_v34, %v6914_v29  ;;  %v5595_v29 = vld [vmem:[%s7683_s4 + $0x70] sm:$0xff]   ;;  %v3213_v8 = vpop.permute.xlu0 %3212 }
 0x830   :  { %v5736_v13 = vpop.eup %5735  ;;  %v3211_v11 = vpop.permute.xlu1 %3210  ;;  %v2219_v57 = vmul.f32 %v5734_v4, %v6918_v46  ;;  %v3230_v46 = vsel %vm831_vm1, %v3209_v51, 0  ;;  %v3236_v37 = vsel %vm831_vm1, %v3213_v8, 0 }
 0x831   :  { %5174 = vmatmul.mubr.msk.bf16.vlgmr.msra.gmra.mrb[88].mxu0 %vm164_vm0, %v2223_v31  ;;  %v2221_v35 = vmul.f32 %v5736_v13, %v6910_v60  ;;  %v3233_v60 = vsel %vm831_vm1, %v3211_v11, 0 }
 0x832   :  { %5182 = vmatpush3.bf16.msra.mxu0 %v5593_v45  ;;  %v2224_v5 = vpack.c.bf16 %v2219_v57, %v2218_v0 }
 0x833   :  { %5183 = vmatprep.subr.bf16.mxu0 %v5594_v48  ;;  %v2225_v62 = vpack.c.bf16 %v2221_v35, %v2220_v30  ;;  %v3201_v2 = vpop.permute.xlu0 %3200 }
 0x834   :  { %5177 = vmatprep.mubr.msk.bf16.mxu0 %vm164_vm0, %v2224_v5  ;;  %v3199_v3 = vpop.permute.xlu1 %3198 }
 0x835   :  { %5301 = vmatprep.mubr.msk.bf16.mxu1 %vm831_vm1, %v3199_v3 }
 0x836   :  { %2941 = vrot.lane.b32.xlu1 %v6382_v55, %s5906_s8  ;;  %5184 = vmatpush3.bf16.msra.mxu0 %v5594_v48 }
 0x837   :  { %5296 = vmatpush3.bf16.xpose.msra.mxu1 %v3230_v46  ;;  %5185 = vmatprep.subr.bf16.mxu0 %v5595_v29 }
 0x838   :  { %5535 = vmatprep.subr.msk.bf16.mxu1 %vm831_vm1, %v3211_v11 }
 0x839   :  { %5178 = vmatmul.mubr.msk.bf16.gmra.mrb[92].mxu0 %vm164_vm0, %v2225_v62 }
 0x83a   :  { %5186 = vmatpush3.bf16.msra.mxu0 %v5595_v29  ;;  %2939 = vrot.lane.b32.xlu0 %v6362_v23, %s5906_s8 }
 0x83b   :  { %5187 = vmatprep.subr.bf16.mxu0 %v5596_v49 }
 0x83e   :  { %5188 = vmatpush3.bf16.msra.mxu0 %v5596_v49 }
 0x83f   :  { %5298 = vmatpush3.bf16.xpose.msra.mxu1 %v3233_v60  ;;  %5213 = vmatprep.subr.bf16.mxu0 %v6362_v23 }
 0x840   :  { %5536 = vmatprep.subr.msk.bf16.mxu1 %vm831_vm1, %v3213_v8 }
 0x847   :  { %5300 = vmatpush3.bf16.xpose.msra.mxu1 %v3236_v37 }
 0x84e   :  { %5302 = vmatmul.mubr.msk.bf16.vlgmr.msra.gmra.mrb[72].mxu1 %vm831_vm1, %v3201_v2 }
 0x864   :  { %v2562_v52 = vpop.xlane.xlu0 %2561 }
 0x865   :  { %v2559_v39 = vpop.xlane.xlu1 %2558  ;;  %v2582_v32 = vsub.f32 %v6948_v18, %v2562_v52 }
 0x866   :  { %v2581_v16 = vsub.f32 %v6944_v9, %v2559_v39 }
 0x867   :  { %v2591_v25 = vmul.f32 1.442695, %v2582_v32 }
 0x868   :  { %v2565_v14 = vpop.xlane.xlu0 %2564  ;;  %v2589_v24 = vmul.f32 1.442695, %v2581_v16 }
 0x869   :  { %v2583_v59 = vsub.f32 %v6942_v63, %v2565_v14  ;;  %v2568_v15 = vpop.xlane.xlu1 %2567 }
 0x86a   :  { %v2584_v45 = vsub.f32 %v6946_v26, %v2568_v15 }
 0x86b   :  { %v2593_v1 = vmul.f32 1.442695, %v2583_v59 }
 0x86c   :  { %v2595_v50 = vmul.f32 1.442695, %v2584_v45  ;;  %v3203_v34 = vpop.permute.xlu0 %3202 }
 0x86d   :  { %5737 = vpow2.f32 %v2593_v1  ;;  %v3205_v51 = vpop.permute.xlu1 %3204  ;;  %5305 = vmatprep.mubr.msk.bf16.mxu1 %vm831_vm1, %v3203_v34 }
 0x86e   :  { %5739 = vpow2.f32 %v2595_v50  ;;  %5306 = vmatmul.mubr.msk.bf16.gmra.mrb[76].mxu1 %vm831_vm1, %v3205_v51 }
 0x86f   :  { %5741 = vpow2.f32 %v2589_v24 }
 0x870   :  { %5743 = vpow2.f32 %v2591_v25 }
 0x877   :  { %v7057_v9 = vpop.eup %5737 }
 0x878   :  { %v7059_v63 = vpop.eup %5739  ;;  %v2611_v26 = vsel %vm164_vm0, %v7057_v9, 0.0 }
 0x879   :  { %v7063_v18 = vpop.eup %5741  ;;  %2612 = vadd.xlane.f32.xlu0 %v2611_v26  ;;  %v2614_v4 = vsel %vm164_vm0, %v7059_v63, 0.0 }
 0x87a   :  { %v7067_v31 = vpop.eup %5743  ;;  %2615 = vadd.xlane.f32.xlu1 %v2614_v4  ;;  %v2605_v0 = vsel %vm164_vm0, %v7063_v18, 0.0 }
 0x87b   :  { %v2608_v48 = vsel %vm164_vm0, %v7067_v31, 0.0 }
 0x87d   :  { %2606 = vadd.xlane.f32.xlu0 %v2605_v0 }
 0x87e   :  { %2609 = vadd.xlane.f32.xlu1 %v2608_v48 }
 0x89d   :  { %v2574_v13 = vpop.xlane.xlu0 %2573 }
 0x89e   :  { %v2571_v11 = vpop.xlane.xlu1 %2570  ;;  %v2586_v5 = vsub.f32 %v6962_v6, %v2574_v13 }
 0x89f   :  { %v2585_v57 = vsub.f32 %v6958_v27, %v2571_v11 }
 0x8a0   :  { %v2599_v49 = vmul.f32 1.442695, %v2586_v5 }
 0x8a1   :  { %v2577_v30 = vpop.xlane.xlu0 %2576  ;;  %v2597_v46 = vmul.f32 1.442695, %v2585_v57 }
 0x8a2   :  { %v2587_v35 = vsub.f32 %v6954_v56, %v2577_v30  ;;  %v2580_v29 = vpop.xlane.xlu1 %2579 }
 0x8a3   :  { %v2588_v3 = vsub.f32 %v6960_v7, %v2580_v29 }
 0x8a4   :  { %v2601_v62 = vmul.f32 1.442695, %v2587_v35 }
 0x8a5   :  { %v2603_v60 = vmul.f32 1.442695, %v2588_v3  ;;  %v2845_v8 = vpop.xlane.xlu0 %2844 }
 0x8a6   :  { %5745 = vpow2.f32 %v2601_v62  ;;  %v2848_v37 = vpop.xlane.xlu1 %2847  ;;  %v2867_v2 = vsub.f32 %v6972_v43, %v2845_v8 }
 0x8a7   :  { %5747 = vpow2.f32 %v2603_v60  ;;  %v2868_v27 = vsub.f32 %v6978_v38, %v2848_v37 }
 0x8a8   :  { %5749 = vpow2.f32 %v2597_v46  ;;  %v2875_v39 = vmul.f32 1.442695, %v2867_v2 }
 0x8a9   :  { %5751 = vpow2.f32 %v2599_v49  ;;  %v2851_v6 = vpop.xlane.xlu0 %2850  ;;  %v2877_v32 = vmul.f32 1.442695, %v2868_v27 }
 0x8aa   :  { %v2869_v56 = vsub.f32 %v6970_v12, %v2851_v6  ;;  %v2854_v52 = vpop.xlane.xlu1 %2853 }
 0x8ab   :  { %v2870_v7 = vsub.f32 %v6974_v10, %v2854_v52 }
 0x8ac   :  { %v2879_v16 = vmul.f32 1.442695, %v2869_v56 }
 0x8ad   :  { %v2881_v14 = vmul.f32 1.442695, %v2870_v7  ;;  %v2857_v59 = vpop.xlane.xlu0 %2856 }
 0x8ae   :  { %5753 = vpow2.f32 %v2879_v16  ;;  %v2860_v15 = vpop.xlane.xlu1 %2859  ;;  %v2871_v43 = vsub.f32 %v6982_v36, %v2857_v59 }
 0x8af   :  { %5755 = vpow2.f32 %v2881_v14  ;;  %v2872_v12 = vsub.f32 %v6986_v58, %v2860_v15 }
 0x8b0   :  { %v7081_v45 = vpop.eup %5745  ;;  %5757 = vpow2.f32 %v2875_v39  ;;  %v2883_v26 = vmul.f32 1.442695, %v2871_v43 }
 0x8b1   :  { %v7084_v38 = vpop.eup %5747  ;;  %5759 = vpow2.f32 %v2877_v32  ;;  %v2863_v24 = vpop.xlane.xlu0 %2862  ;;  %v2623_v10 = vsel %vm164_vm0, %v7081_v45, 0.0  ;;  %v2885_v4 = vmul.f32 1.442695, %v2872_v12 }
 0x8b2   :  { %v7089_v1 = vpop.eup %5749  ;;  %v2873_v25 = vsub.f32 %v6980_v61, %v2863_v24  ;;  %v2866_v50 = vpop.xlane.xlu1 %2865  ;;  %2624 = vadd.xlane.f32.xlu0 %v2623_v10  ;;  %v2626_v34 = vsel %vm164_vm0, %v7084_v38, 0.0 }
 0x8b3   :  { %v7094_v51 = vpop.eup %5751  ;;  %v2874_v36 = vsub.f32 %v6984_v40, %v2866_v50  ;;  %2627 = vadd.xlane.f32.xlu1 %v2626_v34  ;;  %v2617_v48 = vsel %vm164_vm0, %v7089_v1, 0.0 }
 0x8b4   :  { %v2887_v58 = vmul.f32 1.442695, %v2873_v25  ;;  %v2620_v61 = vsel %vm164_vm0, %v7094_v51, 0.0 }
 0x8b5   :  { %v2889_v0 = vmul.f32 1.442695, %v2874_v36  ;;  %v2940_v27 = vpop.permute.xlu0 %2939 }
 0x8b6   :  { %5761 = vpow2.f32 %v2887_v58  ;;  %2618 = vadd.xlane.f32.xlu0 %v2617_v48  ;;  %v2942_v6 = vpop.permute.xlu1 %2941 }
 0x8b7   :  { %5763 = vpow2.f32 %v2889_v0  ;;  %2621 = vadd.xlane.f32.xlu1 %v2620_v61 }
 0x8b8   :  { %v7101_v13 = vpop.eup %5753  ;;  %5765 = vpow2.f32 %v2883_v26 }
 0x8b9   :  { %v7103_v11 = vpop.eup %5755  ;;  %5767 = vpow2.f32 %v2885_v4  ;;  %v2897_v40 = vsel %vm164_vm0, %v7101_v13, 0.0 }
 0x8ba   :  { %v7107_v57 = vpop.eup %5757  ;;  %2898 = vadd.xlane.f32.xlu0 %v2897_v40  ;;  %v2900_v5 = vsel %vm164_vm0, %v7103_v11, 0.0 }
 0x8bb   :  { %v7111_v30 = vpop.eup %5759  ;;  %2901 = vadd.xlane.f32.xlu1 %v2900_v5  ;;  %v2891_v35 = vsel %vm164_vm0, %v7107_v57, 0.0 }
 0x8bc   :  { %v2894_v29 = vsel %vm164_vm0, %v7111_v30, 0.0 }
 0x8be   :  { %2892 = vadd.xlane.f32.xlu0 %v2891_v35 }
 0x8bf   :  { %2895 = vadd.xlane.f32.xlu1 %v2894_v29 }
 0x8c0   :  { %v7117_v3 = vpop.eup %5761 }
 0x8c1   :  { %v7119_v46 = vpop.eup %5763  ;;  %v2909_v62 = vsel %vm164_vm0, %v7117_v3, 0.0 }
 0x8c2   :  { %v7123_v49 = vpop.eup %5765  ;;  %2910 = vadd.xlane.f32.xlu0 %v2909_v62  ;;  %v2912_v60 = vsel %vm164_vm0, %v7119_v46, 0.0 }
 0x8c3   :  { %v7127_v8 = vpop.eup %5767  ;;  %2913 = vadd.xlane.f32.xlu1 %v2912_v60  ;;  %v2903_v37 = vsel %vm164_vm0, %v7123_v49, 0.0 }
 0x8c4   :  { %v2906_v2 = vsel %vm164_vm0, %v7127_v8, 0.0 }
 0x8c6   :  { %2904 = vadd.xlane.f32.xlu0 %v2903_v37 }
 0x8c7   :  { %2907 = vadd.xlane.f32.xlu1 %v2906_v2 }
 0x8d8   :  { %2943 = vrot.lane.b32.xlu1 %v6398_v54, %s5906_s8 }
 0x8dc   :  { %3577 = vrot.lane.b32.xlu1 %v6359_v17, %s5911_s13  ;;  %2945 = vrot.lane.b32.xlu0 %v6412_v33, %s5906_s8 }
 0x8e0   :  { %3581 = vrot.lane.b32.xlu1 %v6396_v53, %s5911_s13  ;;  %3579 = vrot.lane.b32.xlu0 %v6380_v42, %s5911_s13 }
 0x8e4   :  { %3569 = vrot.lane.b32.xlu1 %v6359_v17, %s5912_s14  ;;  %3583 = vrot.lane.b32.xlu0 %v6410_v28, %s5911_s13 }
 0x8e8   :  { %3573 = vrot.lane.b32.xlu1 %v6396_v53, %s5912_s14  ;;  %3571 = vrot.lane.b32.xlu0 %v6380_v42, %s5912_s14 }
 0x8ec   :  { %3575 = vrot.lane.b32.xlu0 %v6410_v28, %s5912_s14 }
 0x904   :  { %v5175_v56 = vpop.f32.mrb[88].mxu0 }
 0x905   :  { %v2288_v52 = vpop.f32.mrb[89].mxu0  ;;  %v2321_v16 = vmax.f32 %v5175_v56, 0.0 }
 0x906   :  { %v5176_v7 = vpop.f32.mrb[90].mxu0  ;;  %v2613_v39 = vpop.xlane.xlu0 %2612  ;;  %v2319_v59 = vmax.f32 %v2288_v52, 0.0 }
 0x907   :  { %v2322_v17 = vmax.f32 %v5176_v7, 0.0  ;;  %v2291_v32 = vpop.f32.mrb[91].mxu0  ;;  %v2616_v14 = vpop.xlane.xlu1 %2615  ;;  %5769 = vrcp.f32 %v2613_v39 }
 0x908   :  { %v2320_v15 = vmax.f32 %v2291_v32, 0.0  ;;  %5771 = vrcp.f32 %v2616_v14 }
 0x909   :  { %v2328_v43 = vpack.c.bf16 %v2322_v17, %v2321_v16 }
 0x90a   :  { %v2327_v53 = vpack.c.bf16 %v2320_v15, %v2319_v59  ;;  %v2607_v42 = vpop.xlane.xlu0 %2606 }
 0x90b   :  { %5773 = vrcp.f32 %v2607_v42  ;;  %v2610_v12 = vpop.xlane.xlu1 %2609 }
 0x90c   :  { %5775 = vrcp.f32 %v2610_v12  ;;  %v5179_v28 = vpop.f32.mrb[92].mxu0  ;;  %5189 = vmatprep.mubr.msk.bf16.mxu0 %vm164_vm0, %v2327_v53 }
 0x90d   :  { %v2304_v24 = vpop.f32.mrb[93].mxu0  ;;  %5190 = vmatmul.mubr.msk.bf16.vlgmr.msra.gmra.mrb[72].mxu0 %vm164_vm0, %v2328_v43  ;;  %v2325_v25 = vmax.f32 %v5179_v28, 0.0 }
 0x90e   :  { %5214 = vmatpush3.bf16.msra.mxu0 %v6362_v23  ;;  %v5180_v10 = vpop.f32.mrb[94].mxu0  ;;  %v2323_v36 = vmax.f32 %v2304_v24, 0.0 }
 0x90f   :  { %v2326_v50 = vmax.f32 %v5180_v10, 0.0  ;;  %5215 = vmatprep.subr.bf16.mxu0 %v6382_v55  ;;  %v2307_v34 = vpop.f32.mrb[95].mxu0 }
 0x910   :  { %v2324_v26 = vmax.f32 %v2307_v34, 0.0 }
 0x911   :  { %v2330_v58 = vpack.c.bf16 %v2326_v50, %v2325_v25  ;;  %v5770_v0 = vpop.eup %5769 }
 0x912   :  { %v2329_v4 = vpack.c.bf16 %v2324_v26, %v2323_v36  ;;  %5216 = vmatpush3.bf16.msra.mxu0 %v6382_v55  ;;  %v5772_v48 = vpop.eup %5771  ;;  %v2639_v5 = vmul.f32 %v5770_v0, %v7057_v9 }
 0x913   :  { %5217 = vmatprep.subr.bf16.mxu0 %v6398_v54  ;;  %v2640_v35 = vmul.f32 %v5772_v48, %v7059_v63 }
 0x914   :  { %5193 = vmatprep.mubr.msk.bf16.mxu0 %vm164_vm0, %v2329_v4 }
 0x915   :  { %v5774_v61 = vpop.eup %5773  ;;  %5194 = vmatmul.mubr.msk.bf16.gmra.mrb[76].mxu0 %vm164_vm0, %v2330_v58  ;;  %v2646_v62 = vpack.c.bf16 %v2640_v35, %v2639_v5 }
 0x916   :  { %v5776_v23 = vpop.eup %5775  ;;  %5218 = vmatpush3.bf16.msra.mxu0 %v6398_v54  ;;  %v2637_v40 = vmul.f32 %v5774_v61, %v7063_v18 }
 0x917   :  { %5219 = vmatprep.subr.bf16.mxu0 %v6412_v33  ;;  %v2638_v55 = vmul.f32 %v5776_v23, %v7067_v31 }
 0x919   :  { %v2645_v29 = vpack.c.bf16 %v2638_v55, %v2637_v40 }
 0x91a   :  { %5220 = vmatpush3.bf16.msra.mxu0 %v6412_v33 }
 0x91b   :  { %5245 = vmatprep.subr.bf16.mxu0 %v2940_v27  ;;  %5221 = vmatprep.mubr.msk.bf16.mxu0 %vm164_vm0, %v2645_v29 }
 0x91d   :  { %5222 = vmatmul.mubr.msk.bf16.vlgmr.msra.gmra.mrb[96].mxu0 %vm164_vm0, %v2646_v62 }
 0x91e   :  { %5246 = vmatpush3.bf16.msra.mxu0 %v2940_v27 }
 0x91f   :  { %5247 = vmatprep.subr.bf16.mxu0 %v2942_v6 }
 0x921   :  { %v7170_v54 = vpop.f32.mrb[72].mxu1 }
 0x922   :  { %5248 = vmatpush3.bf16.msra.mxu0 %v2942_v6  ;;  %v7172_v9 = vpop.f32.mrb[73].mxu1  ;;  %v3309_v37 = vsel %vm164_vm0, %v7170_v54, -inf }
 0x923   :  { %v7174_v63 = vpop.f32.mrb[74].mxu1  ;;  %v3303_v18 = vsel %vm164_vm0, %v7172_v9, -inf }
 0x924   :  { %v7178_v31 = vpop.f32.mrb[75].mxu1  ;;  %3304 = vmax.xlane.f32.xlu1 %v3303_v18  ;;  %v3312_v60 = vsel %vm164_vm0, %v7174_v63, -inf }
 0x925   :  { %v3306_v33 = vsel %vm164_vm0, %v7178_v31, -inf }
 0x926   :  { %3307 = vmax.xlane.f32.xlu0 %v3306_v33 }
 0x928   :  { %3313 = vmax.xlane.f32.xlu1 %v3312_v60 }
 0x92a   :  { %3310 = vmax.xlane.f32.xlu0 %v3309_v37 }
 0x93f   :  { %v2625_v2 = vpop.xlane.xlu0 %2624 }
 0x940   :  { %v2628_v27 = vpop.xlane.xlu1 %2627  ;;  %5777 = vrcp.f32 %v2625_v2 }
 0x941   :  { %v7186_v6 = vpop.f32.mrb[76].mxu1  ;;  %5779 = vrcp.f32 %v2628_v27 }
 0x942   :  { %v7188_v56 = vpop.f32.mrb[77].mxu1  ;;  %v3321_v59 = vsel %vm164_vm0, %v7186_v6, -inf }
 0x943   :  { %v7190_v52 = vpop.f32.mrb[78].mxu1  ;;  %v2619_v7 = vpop.xlane.xlu0 %2618  ;;  %v3315_v39 = vsel %vm164_vm0, %v7188_v56, -inf }
 0x944   :  { %5781 = vrcp.f32 %v2619_v7  ;;  %v2622_v16 = vpop.xlane.xlu1 %2621  ;;  %v7194_v17 = vpop.f32.mrb[79].mxu1  ;;  %3316 = vmax.xlane.f32.xlu0 %v3315_v39  ;;  %v3324_v43 = vsel %vm164_vm0, %v7190_v52, -inf }
 0x945   :  { %5783 = vrcp.f32 %v2622_v16  ;;  %v3318_v32 = vsel %vm164_vm0, %v7194_v17, -inf }
 0x946   :  { %3319 = vmax.xlane.f32.xlu1 %v3318_v32 }
 0x947   :  { %v2899_v14 = vpop.xlane.xlu0 %2898 }
 0x948   :  { %v2902_v15 = vpop.xlane.xlu1 %2901  ;;  %3322 = vmax.xlane.f32.xlu0 %v3321_v59  ;;  %5785 = vrcp.f32 %v2899_v14 }
 0x94a   :  { %3325 = vmax.xlane.f32.xlu1 %v3324_v43  ;;  %v5778_v53 = vpop.eup %5777 }
 0x94b   :  { %v2893_v42 = vpop.xlane.xlu0 %2892  ;;  %v5780_v12 = vpop.eup %5779  ;;  %v2643_v34 = vmul.f32 %v5778_v53, %v7081_v45 }
 0x94c   :  { %5787 = vrcp.f32 %v2893_v42  ;;  %v2896_v28 = vpop.xlane.xlu1 %2895  ;;  %v2644_v36 = vmul.f32 %v5780_v12, %v7084_v38  ;;  %v7243_v42 = vld [vmem:[%s7683_s4] sm:$0xff]  }
 0x94d   :  { %5789 = vrcp.f32 %v2896_v28  ;;  %v5597_v12 = vld [vmem:[%s7680_s1 + $0x20] sm:$0xff]  }
 0x94e   :  { %v5782_v24 = vpop.eup %5781  ;;  %5791 = vrcp.f32 %v2902_v15  ;;  %v2648_v48 = vpack.c.bf16 %v2644_v36, %v2643_v34  ;;  %v5600_v34 = vld [vmem:[%s7680_s1 + $0x38] sm:$0xff]  }
 0x94f   :  { %v5784_v10 = vpop.eup %5783  ;;  %v2911_v25 = vpop.xlane.xlu0 %2910  ;;  %v2641_v50 = vmul.f32 %v5782_v24, %v7089_v1  ;;  %v5598_v24 = vld [vmem:[%s7680_s1 + $0x28] sm:$0xff]  }
 0x950   :  { %v2914_v26 = vpop.xlane.xlu1 %2913  ;;  %v2642_v58 = vmul.f32 %v5784_v10, %v7094_v51  ;;  %5793 = vrcp.f32 %v2911_v25 }
 0x952   :  { %v2647_v4 = vpack.c.bf16 %v2642_v58, %v2641_v50  ;;  %v5786_v23 = vpop.eup %5785  ;;  %v5599_v50 = vld [vmem:[%s7680_s1 + $0x30] sm:$0xff]  }
 0x953   :  { %v2905_v0 = vpop.xlane.xlu0 %2904  ;;  %v2925_v29 = vmul.f32 %v5786_v23, %v7101_v13 }
 0x954   :  { %5795 = vrcp.f32 %v2905_v0  ;;  %5225 = vmatprep.mubr.msk.bf16.mxu0 %vm164_vm0, %v2647_v4  ;;  %v2908_v61 = vpop.xlane.xlu1 %2907 }
 0x955   :  { %5797 = vrcp.f32 %v2908_v61  ;;  %5226 = vmatmul.mubr.msk.bf16.gmra.mrb[100].mxu0 %vm164_vm0, %v2648_v48 }
 0x956   :  { %v5788_v1 = vpop.eup %5787  ;;  %5799 = vrcp.f32 %v2914_v26 }
 0x957   :  { %v5790_v45 = vpop.eup %5789  ;;  %v2923_v38 = vmul.f32 %v5788_v1, %v7107_v57  ;;  %v2946_v5 = vpop.permute.xlu0 %2945 }
 0x958   :  { %v5792_v40 = vpop.eup %5791  ;;  %v2944_v51 = vpop.permute.xlu1 %2943  ;;  %v2924_v35 = vmul.f32 %v5790_v45, %v7111_v30 }
 0x959   :  { %5249 = vmatprep.subr.bf16.mxu0 %v2944_v51  ;;  %v2926_v62 = vmul.f32 %v5792_v40, %v7103_v11  ;;  %v5865_v11 = vld [vmem:[%s7683_s4 + $0x20] sm:$0xff]  }
 0x95a   :  { %5250 = vmatpush3.bf16.msra.mxu0 %v2944_v51  ;;  %v2931_v55 = vpack.c.bf16 %v2924_v35, %v2923_v38  ;;  %v5794_v33 = vpop.eup %5793 }
 0x95b   :  { %5251 = vmatprep.subr.bf16.mxu0 %v2946_v5  ;;  %v3580_v37 = vpop.permute.xlu0 %3579  ;;  %v2932_v2 = vpack.c.bf16 %v2926_v62, %v2925_v29  ;;  %v2929_v32 = vmul.f32 %v5794_v33, %v7117_v3  ;;  %v5867_v3 = vld [vmem:[%s7683_s4 + $0x30] sm:$0xff]  }
 0x95c   :  { %5253 = vmatprep.mubr.msk.bf16.mxu0 %vm164_vm0, %v2931_v55  ;;  %v3578_v18 = vpop.permute.xlu1 %3577  ;;  %v3601_v15 = vsel %vm831_vm1, %v3580_v37, 0 }
 0x95d   :  { %v3598_v60 = vsel %vm831_vm1, %v3578_v18, 0  ;;  %5537 = vmatprep.subr.msk.bf16.mxu1 %vm831_vm1, %v3578_v18 }
 0x95e   :  { %v5796_v57 = vpop.eup %5795  ;;  %5252 = vmatpush3.bf16.msra.mxu0 %v2946_v5  ;;  %5342 = vmatpush3.bf16.xpose.msra.mxu1 %v3598_v60 }
 0x95f   :  { %v5798_v30 = vpop.eup %5797  ;;  %5538 = vmatprep.subr.msk.bf16.mxu1 %vm831_vm1, %v3580_v37  ;;  %v2927_v13 = vmul.f32 %v5796_v57, %v7123_v49  ;;  %5261 = vmatprep.subr.bf16.mxu0 %v5865_v11  ;;  %v5866_v49 = vld [vmem:[%s7683_s4 + $0x28] sm:$0xff]   ;;  %v3584_v53 = vpop.permute.xlu0 %3583 }
 0x960   :  { %v5800_v27 = vpop.eup %5799  ;;  %v3582_v7 = vpop.permute.xlu1 %3581  ;;  %v2928_v39 = vmul.f32 %v5798_v30, %v7127_v8  ;;  %v3607_v28 = vsel %vm831_vm1, %v3584_v53, 0 }
 0x961   :  { %5254 = vmatmul.mubr.msk.bf16.vlgmr.msra.gmra.mrb[104].mxu0 %vm164_vm0, %v2932_v2  ;;  %v2930_v14 = vmul.f32 %v5800_v27, %v7119_v46  ;;  %v5868_v46 = vld [vmem:[%s7683_s4 + $0x38] sm:$0xff]   ;;  %v3604_v43 = vsel %vm831_vm1, %v3582_v7, 0 }
 0x962   :  { %v2933_v16 = vpack.c.bf16 %v2928_v39, %v2927_v13  ;;  %5262 = vmatpush3.bf16.msra.mxu0 %v5865_v11 }
 0x963   :  { %5263 = vmatprep.subr.bf16.mxu0 %v5866_v49  ;;  %v2934_v8 = vpack.c.bf16 %v2930_v14, %v2929_v32  ;;  %v3572_v10 = vpop.permute.xlu0 %3571 }
 0x964   :  { %5257 = vmatprep.mubr.msk.bf16.mxu0 %vm164_vm0, %v2933_v16  ;;  %v3570_v59 = vpop.permute.xlu1 %3569 }
 0x965   :  { %5349 = vmatprep.mubr.msk.bf16.mxu1 %vm831_vm1, %v3570_v59 }
 0x966   :  { %5344 = vmatpush3.bf16.xpose.msra.mxu1 %v3601_v15  ;;  %5264 = vmatpush3.bf16.msra.mxu0 %v5866_v49 }
 0x967   :  { %5539 = vmatprep.subr.msk.bf16.mxu1 %vm831_vm1, %v3582_v7  ;;  %5265 = vmatprep.subr.bf16.mxu0 %v5867_v3  ;;  %v3576_v36 = vpop.permute.xlu0 %3575 }
 0x968   :  { %v3574_v25 = vpop.permute.xlu1 %3573 }
 0x969   :  { %5258 = vmatmul.mubr.msk.bf16.gmra.mrb[108].mxu0 %vm164_vm0, %v2934_v8 }
 0x96a   :  { %5266 = vmatpush3.bf16.msra.mxu0 %v5867_v3 }
 0x96b   :  { %5267 = vmatprep.subr.bf16.mxu0 %v5868_v46 }
 0x96e   :  { %5346 = vmatpush3.bf16.xpose.msra.mxu1 %v3604_v43  ;;  %5268 = vmatpush3.bf16.msra.mxu0 %v5868_v46 }
 0x96f   :  { %5540 = vmatprep.subr.msk.bf16.mxu1 %vm831_vm1, %v3584_v53  ;;  %5277 = vmatprep.subr.bf16.mxu0 %v7243_v42 }
 0x976   :  { %5348 = vmatpush3.bf16.xpose.msra.mxu1 %v3607_v28 }
 0x977   :  { %5389 = vmatprep.subr.bf16.mxu1 %v5597_v12 }
 0x97d   :  { %5350 = vmatmul.mubr.msk.bf16.vlgmr.msra.gmra.mrb[80].mxu1 %vm831_vm1, %v3572_v10 }
 0x97e   :  { %5353 = vmatprep.mubr.msk.bf16.mxu1 %vm831_vm1, %v3574_v25  ;;  %5390 = vmatpush3.bf16.msra.mxu1 %v5597_v12 }
 0x97f   :  { %5391 = vmatprep.subr.bf16.mxu1 %v5598_v24 }
 0x982   :  { %5392 = vmatpush3.bf16.msra.mxu1 %v5598_v24 }
 0x983   :  { %5393 = vmatprep.subr.bf16.mxu1 %v5599_v50 }
 0x985   :  { %5354 = vmatmul.mubr.msk.bf16.gmra.mrb[84].mxu1 %vm831_vm1, %v3576_v36 }
 0x986   :  { %5394 = vmatpush3.bf16.msra.mxu1 %v5599_v50 }
 0x987   :  { %5395 = vmatprep.subr.bf16.mxu1 %v5600_v34 }
 0x98a   :  { %5396 = vmatpush3.bf16.msra.mxu1 %v5600_v34 }
 0x9b1   :  { %v3305_v26 = vpop.xlane.xlu1 %3304 }
 0x9b2   :  { %v3327_v58 = vsub.f32 %v7172_v9, %v3305_v26 }
 0x9b3   :  { %v3308_v4 = vpop.xlane.xlu0 %3307 }
 0x9b4   :  { %v3335_v0 = vmul.f32 1.442695, %v3327_v58  ;;  %v3328_v48 = vsub.f32 %v7178_v31, %v3308_v4  ;;  %v7712_v4 = vld [vmem:[#allocation5_spill] sm:$0xff] }
 0x9b5   :  { %v3314_v61 = vpop.xlane.xlu1 %3313 }
 0x9b6   :  { %5801 = vpow2.f32 %v3335_v0  ;;  %v3337_v23 = vmul.f32 1.442695, %v3328_v48  ;;  %v3330_v1 = vsub.f32 %v7174_v63, %v3314_v61 }
 0x9b7   :  { %v3311_v45 = vpop.xlane.xlu0 %3310 }
 0x9b8   :  { %5803 = vpow2.f32 %v3337_v23  ;;  %v3341_v38 = vmul.f32 1.442695, %v3330_v1  ;;  %v3329_v40 = vsub.f32 %v7170_v54, %v3311_v45 }
 0x9ba   :  { %5805 = vpow2.f32 %v3341_v38  ;;  %v3339_v5 = vmul.f32 1.442695, %v3329_v40 }
 0x9bc   :  { %5807 = vpow2.f32 %v3339_v5 }
 0x9c0   :  { %v7266_v51 = vpop.eup %5801 }
 0x9c1   :  { %v3351_v9 = vsel %vm164_vm0, %v7266_v51, 0.0 }
 0x9c2   :  { %v7270_v35 = vpop.eup %5803  ;;  %3352 = vadd.xlane.f32.xlu0 %v3351_v9 }
 0x9c3   :  { %v3354_v31 = vsel %vm164_vm0, %v7270_v35, 0.0 }
 0x9c4   :  { %v7274_v63 = vpop.eup %5805  ;;  %3355 = vadd.xlane.f32.xlu1 %v3354_v31 }
 0x9c5   :  { %v3360_v29 = vsel %vm164_vm0, %v7274_v63, 0.0 }
 0x9c6   :  { %v7276_v55 = vpop.eup %5807 }
 0x9c7   :  { %v3357_v54 = vsel %vm164_vm0, %v7276_v55, 0.0 }
 0x9c8   :  { %3358 = vadd.xlane.f32.xlu0 %v3357_v54  ;;  %3361 = vadd.xlane.f32.xlu1 %v3360_v29 }
 0x9d1   :  { %v3317_v62 = vpop.xlane.xlu0 %3316 }
 0x9d2   :  { %v3331_v18 = vsub.f32 %v7188_v56, %v3317_v62 }
 0x9d3   :  { %v3320_v33 = vpop.xlane.xlu1 %3319 }
 0x9d4   :  { %v3343_v60 = vmul.f32 1.442695, %v3331_v18  ;;  %v3332_v57 = vsub.f32 %v7194_v17, %v3320_v33 }
 0x9d5   :  { %v3323_v37 = vpop.xlane.xlu0 %3322 }
 0x9d6   :  { %5809 = vpow2.f32 %v3343_v60  ;;  %v3345_v30 = vmul.f32 1.442695, %v3332_v57  ;;  %v3333_v2 = vsub.f32 %v7186_v6, %v3323_v37 }
 0x9d7   :  { %v3326_v13 = vpop.xlane.xlu1 %3325 }
 0x9d8   :  { %5811 = vpow2.f32 %v3345_v30  ;;  %v3347_v11 = vmul.f32 1.442695, %v3333_v2  ;;  %v3334_v27 = vsub.f32 %v7190_v52, %v3326_v13  ;;  %v7297_v52 = vld [vmem:[%s7684_s5 + $0x3] ss:$0 sm:$0xff] }
 0x9da   :  { %5813 = vpow2.f32 %v3347_v11  ;;  %v3349_v7 = vmul.f32 1.442695, %v3334_v27 }
 0x9dc   :  { %5815 = vpow2.f32 %v3349_v7 }
 0x9e0   :  { %v7286_v39 = vpop.eup %5809  ;;  %v5191_v56 = vpop.f32.mrb[72].mxu0 }
 0x9e1   :  { %v2409_v16 = vpop.f32.mrb[73].mxu0  ;;  %v3363_v17 = vsel %vm164_vm0, %v7286_v39, 0.0  ;;  %v3958_v49 = vadd.f32 %v5191_v56, %v6172_v22 }
 0x9e2   :  { %v7290_v32 = vpop.eup %5811  ;;  %v3956_v14 = vadd.f32 %v2409_v16, %v6166_v20  ;;  %v5192_v6 = vpop.f32.mrb[74].mxu0  ;;  %3364 = vadd.xlane.f32.xlu0 %v3363_v17 }
 0x9e3   :  { %v3959_v59 = vadd.f32 %v5192_v6, %v6163_v19  ;;  %v2412_v15 = vpop.f32.mrb[75].mxu0  ;;  %v3366_v8 = vsel %vm164_vm0, %v7290_v32, 0.0  ;;  %v7319_v12 = vadd.f32 %v7297_v52, %v3958_v49 }
 0x9e4   :  { %v7302_v3 = vpop.eup %5813  ;;  %v3957_v46 = vadd.f32 %v2412_v15, %v6169_v21  ;;  %3367 = vadd.xlane.f32.xlu1 %v3366_v8  ;;  %v7313_v53 = vadd.f32 %v7297_v52, %v3956_v14 }
 0x9e5   :  { %v7306_v20 = vadd.f32 %v7297_v52, %v3959_v59  ;;  %v3369_v22 = vsel %vm164_vm0, %v7302_v3, 0.0 }
 0x9e6   :  { %v7310_v43 = vpop.eup %5815  ;;  %v7316_v19 = vadd.f32 %v7297_v52, %v3957_v46  ;;  %3370 = vadd.xlane.f32.xlu0 %v3369_v22 }
 0x9e7   :  { %v3372_v21 = vsel %vm164_vm0, %v7310_v43, 0.0  ;;  %v4018_v10 = vpack.c.bf16 %v7306_v20, %v7319_v12 }
 0x9e8   :  { %v4017_v28 = vpack.c.bf16 %v7316_v19, %v7313_v53  ;;  %v5195_v24 = vpop.f32.mrb[76].mxu0  ;;  %3373 = vadd.xlane.f32.xlu1 %v3372_v21 }
 0x9e9   :  { %v2425_v25 = vpop.f32.mrb[77].mxu0  ;;  %v3962_v36 = vadd.f32 %v5195_v24, %v6198_v47 }
 0x9ea   :  { %v3960_v50 = vadd.f32 %v2425_v25, %v6192_v44  ;;  %v5196_v34 = vpop.f32.mrb[78].mxu0  ;;  %5397 = vmatprep.mubr.msk.bf16.mxu1 %vm164_vm0, %v4017_v28  ;;  %v5870_v25 = vld [vmem:[%s7683_s4 + $0x8] sm:$0xff]  }
 0x9eb   :  { %v3963_v26 = vadd.f32 %v5196_v34, %v6189_v41  ;;  %v2428_v58 = vpop.f32.mrb[79].mxu0  ;;  %5398 = vmatmul.mubr.msk.bf16.vlgmr.msra.gmra.mrb[88].mxu1 %vm164_vm0, %v4018_v10  ;;  %v7343_v23 = vadd.f32 %v7297_v52, %v3962_v36 }
 0x9ec   :  { %v3961_v0 = vadd.f32 %v2428_v58, %v7712_v4  ;;  %v7337_v61 = vadd.f32 %v7297_v52, %v3960_v50  ;;  %v5871_v58 = vld [vmem:[%s7683_s4 + $0x10] sm:$0xff]  }
 0x9ed   :  { %v7334_v48 = vadd.f32 %v7297_v52, %v3963_v26  ;;  %v7713_v4 = vld [vmem:[#allocation15_spill] sm:$0xff] }
 0x9ee   :  { %v7340_v44 = vadd.f32 %v7297_v52, %v3961_v0  ;;  %v7714_v0 = vld [vmem:[#allocation14_spill] sm:$0xff] }
 0x9ef   :  { %v4020_v1 = vpack.c.bf16 %v7334_v48, %v7343_v23 }
 0x9f0   :  { %v4019_v41 = vpack.c.bf16 %v7340_v44, %v7337_v61  ;;  %v5223_v47 = vpop.f32.mrb[96].mxu0 }
 0x9f1   :  { %v2695_v45 = vpop.f32.mrb[97].mxu0  ;;  %v2728_v40 = vmax.f32 %v5223_v47, 0.0 }
 0x9f2   :  { %v5224_v38 = vpop.f32.mrb[98].mxu0  ;;  %5401 = vmatprep.mubr.msk.bf16.mxu1 %vm164_vm0, %v4019_v41  ;;  %v2726_v31 = vmax.f32 %v2695_v45, 0.0 }
 0x9f3   :  { %v2729_v5 = vmax.f32 %v5224_v38, 0.0  ;;  %v2698_v9 = vpop.f32.mrb[99].mxu0  ;;  %5402 = vmatmul.mubr.msk.bf16.gmra.mrb[92].mxu1 %vm164_vm0, %v4020_v1 }
 0x9f4   :  { %v2727_v54 = vmax.f32 %v2698_v9, 0.0 }
 0x9f5   :  { %v2735_v29 = vpack.c.bf16 %v2729_v5, %v2728_v40  ;;  %v7715_v5 = vld [vmem:[#allocation17_spill] sm:$0xff] }
 0x9f6   :  { %v2734_v62 = vpack.c.bf16 %v2727_v54, %v2726_v31 }
 0xa28   :  { %v5227_v18 = vpop.f32.mrb[100].mxu0 }
 0xa29   :  { %v2711_v33 = vpop.f32.mrb[101].mxu0  ;;  %v2732_v57 = vmax.f32 %v5227_v18, 0.0  ;;  %v7716_v18 = vld [vmem:[#allocation16_spill] sm:$0xff] }
 0xa2a   :  { %v5228_v60 = vpop.f32.mrb[102].mxu0  ;;  %v2730_v2 = vmax.f32 %v2711_v33, 0.0 }
 0xa2b   :  { %v2733_v37 = vmax.f32 %v5228_v60, 0.0  ;;  %v2714_v30 = vpop.f32.mrb[103].mxu0 }
 0xa2c   :  { %v2731_v13 = vmax.f32 %v2714_v30, 0.0 }
 0xa2d   :  { %v2737_v11 = vpack.c.bf16 %v2733_v37, %v2732_v57 }
 0xa2e   :  { %v2736_v27 = vpack.c.bf16 %v2731_v13, %v2730_v2 }
 0xa34   :  { %v5255_v7 = vpop.f32.mrb[104].mxu0 }
 0xa35   :  { %v2997_v56 = vpop.f32.mrb[105].mxu0  ;;  %v3030_v17 = vmax.f32 %v5255_v7, 0.0 }
 0xa36   :  { %v5256_v16 = vpop.f32.mrb[106].mxu0  ;;  %v3028_v49 = vmax.f32 %v2997_v56, 0.0 }
 0xa37   :  { %v3031_v14 = vmax.f32 %v5256_v16, 0.0  ;;  %v3000_v6 = vpop.f32.mrb[107].mxu0 }
 0xa38   :  { %v3029_v59 = vmax.f32 %v3000_v6, 0.0 }
 0xa39   :  { %v3037_v15 = vpack.c.bf16 %v3031_v14, %v3030_v17 }
 0xa3a   :  { %v3036_v8 = vpack.c.bf16 %v3029_v59, %v3028_v49 }
 0xa3c   :  { %v5259_v46 = vpop.f32.mrb[108].mxu0  ;;  %5269 = vmatprep.mubr.msk.bf16.mxu0 %vm164_vm0, %v3036_v8 }
 0xa3d   :  { %v3013_v22 = vpop.f32.mrb[109].mxu0  ;;  %5270 = vmatmul.mubr.msk.bf16.vlgmr.msra.gmra.mrb[112].mxu0 %vm164_vm0, %v3037_v15  ;;  %v3034_v28 = vmax.f32 %v5259_v46, 0.0  ;;  %v5875_v46 = vld [vmem:[%s7683_s4 + $0x50] sm:$0xff]  }
 0xa3e   :  { %5278 = vmatpush3.bf16.msra.mxu0 %v7243_v42  ;;  %v5260_v21 = vpop.f32.mrb[110].mxu0  ;;  %v3032_v50 = vmax.f32 %v3013_v22, 0.0  ;;  %v5872_v42 = vld [vmem:[%s7683_s4 + $0x18] sm:$0xff]  }
 0xa3f   :  { %v3035_v24 = vmax.f32 %v5260_v21, 0.0  ;;  %v3016_v10 = vpop.f32.mrb[111].mxu0  ;;  %5279 = vmatprep.subr.bf16.mxu0 %v5870_v25 }
 0xa40   :  { %v3033_v34 = vmax.f32 %v3016_v10, 0.0 }
 0xa41   :  { %v3039_v36 = vpack.c.bf16 %v3035_v24, %v3034_v28 }
 0xa42   :  { %v3038_v26 = vpack.c.bf16 %v3033_v34, %v3032_v50  ;;  %5280 = vmatpush3.bf16.msra.mxu0 %v5870_v25 }
 0xa43   :  { %5281 = vmatprep.subr.bf16.mxu0 %v5871_v58 }
 0xa44   :  { %5273 = vmatprep.mubr.msk.bf16.mxu0 %vm164_vm0, %v3038_v26 }
 0xa45   :  { %5274 = vmatmul.mubr.msk.bf16.gmra.mrb[116].mxu0 %vm164_vm0, %v3039_v36 }
 0xa46   :  { %5282 = vmatpush3.bf16.msra.mxu0 %v5871_v58  ;;  %5285 = vmatprep.mubr.msk.bf16.mxu0 %vm164_vm0, %v2734_v62 }
 0xa47   :  { %5283 = vmatprep.subr.bf16.mxu0 %v5872_v42 }
 0xa4a   :  { %5284 = vmatpush3.bf16.msra.mxu0 %v5872_v42 }
 0xa4b   :  { %5309 = vmatprep.subr.bf16.mxu0 %v7713_v4 }
 0xa4d   :  { %5286 = vmatmul.mubr.msk.bf16.vlgmr.msra.gmra.mrb[112].mxu0 %vm164_vm0, %v2735_v29 }
 0xa4e   :  { %5310 = vmatpush3.bf16.msra.mxu0 %v7713_v4  ;;  %5289 = vmatprep.mubr.msk.bf16.mxu0 %vm164_vm0, %v2736_v27 }
 0xa4f   :  { %5311 = vmatprep.subr.bf16.mxu0 %v7714_v0  ;;  %v3353_v41 = vpop.xlane.xlu0 %3352 }
 0xa50   :  { %5817 = vrcp.f32 %v3353_v41  ;;  %v7371_v47 = vpop.f32.mrb[80].mxu1 }
 0xa51   :  { %v3356_v1 = vpop.xlane.xlu1 %3355  ;;  %v7373_v45 = vpop.f32.mrb[81].mxu1  ;;  %v3680_v62 = vsel %vm164_vm0, %v7371_v47, -inf }
 0xa52   :  { %5819 = vrcp.f32 %v3356_v1  ;;  %5312 = vmatpush3.bf16.msra.mxu0 %v7714_v0  ;;  %v7376_v38 = vpop.f32.mrb[82].mxu1  ;;  %v3674_v40 = vsel %vm164_vm0, %v7373_v45, -inf }
 0xa53   :  { %5313 = vmatprep.subr.bf16.mxu0 %v7715_v5  ;;  %v7381_v9 = vpop.f32.mrb[83].mxu1  ;;  %3675 = vmax.xlane.f32.xlu0 %v3674_v40  ;;  %v3683_v60 = vsel %vm164_vm0, %v7376_v38, -inf }
 0xa54   :  { %v3677_v31 = vsel %vm164_vm0, %v7381_v9, -inf }
 0xa55   :  { %v3359_v54 = vpop.xlane.xlu0 %3358  ;;  %v3362_v29 = vpop.xlane.xlu1 %3361  ;;  %5290 = vmatmul.mubr.msk.bf16.gmra.mrb[116].mxu0 %vm164_vm0, %v2737_v11  ;;  %3678 = vmax.xlane.f32.xlu1 %v3677_v31  ;;  %v5873_v11 = vld [vmem:[%s7683_s4 + $0x40] sm:$0xff]  }
 0xa56   :  { %5821 = vrcp.f32 %v3359_v54  ;;  %5314 = vmatpush3.bf16.msra.mxu0 %v7715_v5 }
 0xa57   :  { %5823 = vrcp.f32 %v3362_v29  ;;  %5315 = vmatprep.subr.bf16.mxu0 %v7716_v18  ;;  %3681 = vmax.xlane.f32.xlu0 %v3680_v62 }
 0xa58   :  { %v7390_v33 = vpop.f32.mrb[84].mxu1 }
 0xa59   :  { %v7394_v57 = vpop.f32.mrb[85].mxu1  ;;  %3684 = vmax.xlane.f32.xlu1 %v3683_v60  ;;  %v3692_v17 = vsel %vm164_vm0, %v7390_v33, -inf }
 0xa5a   :  { %v5818_v37 = vpop.eup %5817  ;;  %5316 = vmatpush3.bf16.msra.mxu0 %v7716_v18  ;;  %v7397_v30 = vpop.f32.mrb[86].mxu1  ;;  %v3686_v2 = vsel %vm164_vm0, %v7394_v57, -inf }
 0xa5b   :  { %v7401_v13 = vpop.f32.mrb[87].mxu1  ;;  %3687 = vmax.xlane.f32.xlu0 %v3686_v2  ;;  %5325 = vmatprep.subr.bf16.mxu0 %v5873_v11  ;;  %v3383_v56 = vmul.f32 %v5818_v37, %v7266_v51  ;;  %v3695_v49 = vsel %vm164_vm0, %v7397_v30, -inf }
 0xa5c   :  { %v5820_v27 = vpop.eup %5819  ;;  %v3689_v7 = vsel %vm164_vm0, %v7401_v13, -inf }
 0xa5d   :  { %3690 = vmax.xlane.f32.xlu1 %v3689_v7  ;;  %v3384_v16 = vmul.f32 %v5820_v27, %v7270_v35  ;;  %v5874_v35 = vld [vmem:[%s7683_s4 + $0x48] sm:$0xff]  }
 0xa5f   :  { %3693 = vmax.xlane.f32.xlu0 %v3692_v17  ;;  %v3391_v14 = vpack.c.bf16 %v3384_v16, %v3383_v56 }
 0xa60   :  { %v5822_v6 = vpop.eup %5821 }
 0xa61   :  { %v5824_v59 = vpop.eup %5823  ;;  %v3385_v15 = vmul.f32 %v5822_v6, %v7276_v55  ;;  %5317 = vmatprep.mubr.msk.bf16.mxu0 %vm164_vm0, %v3391_v14  ;;  %3696 = vmax.xlane.f32.xlu1 %v3695_v49 }
 0xa62   :  { %v3386_v8 = vmul.f32 %v5824_v59, %v7274_v63  ;;  %v5876_v63 = vld [vmem:[%s7683_s4 + $0x58] sm:$0xff]  }
 0xa64   :  { %v3392_v51 = vpack.c.bf16 %v3386_v8, %v3385_v15 }
 0xa66   :  { %5318 = vmatmul.mubr.msk.bf16.vlgmr.msra.gmra.mrb[120].mxu0 %vm164_vm0, %v3392_v51 }
 0xa67   :  { %5326 = vmatpush3.bf16.msra.mxu0 %v5873_v11 }
 0xa68   :  { %5327 = vmatprep.subr.bf16.mxu0 %v5874_v35 }
 0xa6b   :  { %5328 = vmatpush3.bf16.msra.mxu0 %v5874_v35 }
 0xa6c   :  { %5329 = vmatprep.subr.bf16.mxu0 %v5875_v46 }
 0xa6f   :  { %v3365_v55 = vpop.xlane.xlu0 %3364  ;;  %5330 = vmatpush3.bf16.msra.mxu0 %v5875_v46 }
 0xa70   :  { %5825 = vrcp.f32 %v3365_v55  ;;  %5331 = vmatprep.subr.bf16.mxu0 %v5876_v63 }
 0xa71   :  { %v3368_v22 = vpop.xlane.xlu1 %3367 }
 0xa72   :  { %3772 = vrot.lane.b32.xlu1 %v7714_v0, %s5906_s8  ;;  %5827 = vrcp.f32 %v3368_v22 }
 0xa73   :  { %v3371_v21 = vpop.xlane.xlu0 %3370  ;;  %5332 = vmatpush3.bf16.msra.mxu0 %v5876_v63 }
 0xa74   :  { %5829 = vrcp.f32 %v3371_v21 }
 0xa75   :  { %3770 = vrot.lane.b32.xlu0 %v7713_v4, %s5906_s8  ;;  %v3374_v28 = vpop.xlane.xlu1 %3373  ;;  %v7440_v4 = vld [vmem:[%s7684_s5 + $0x4] ss:$0 sm:$0xff] }
 0xa76   :  { %5831 = vrcp.f32 %v3374_v28 }
 0xa7a   :  { %v5826_v24 = vpop.eup %5825 }
 0xa7b   :  { %v3387_v25 = vmul.f32 %v5826_v24, %v7286_v39 }
 0xa7c   :  { %v5828_v10 = vpop.eup %5827 }
 0xa7d   :  { %v3388_v50 = vmul.f32 %v5828_v10, %v7290_v32 }
 0xa7e   :  { %v5830_v34 = vpop.eup %5829 }
 0xa7f   :  { %v3393_v36 = vpack.c.bf16 %v3388_v50, %v3387_v25  ;;  %v3389_v58 = vmul.f32 %v5830_v34, %v7302_v3 }
 0xa80   :  { %v5832_v26 = vpop.eup %5831 }
 0xa81   :  { %5321 = vmatprep.mubr.msk.bf16.mxu0 %vm164_vm0, %v3393_v36  ;;  %v3390_v42 = vmul.f32 %v5832_v26, %v7310_v43 }
 0xa83   :  { %v3394_v0 = vpack.c.bf16 %v3390_v42, %v3389_v58 }
 0xa85   :  { %5322 = vmatmul.mubr.msk.bf16.gmra.mrb[124].mxu0 %vm164_vm0, %v3394_v0 }
 0xabe   :  { %v5399_v39 = vpop.f32.mrb[88].mxu1 }
 0xabf   :  { %v4116_v32 = vadd.f32 %v5399_v39, %v7440_v4  ;;  %v4107_v41 = vpop.f32.mrb[89].mxu1 }
 0xac0   :  { %v4108_v1 = vadd.f32 %v4107_v41, %v7440_v4  ;;  %v5400_v40 = vpop.f32.mrb[90].mxu1 }
 0xac1   :  { %v4119_v31 = vadd.f32 %v5400_v40, %v7440_v4  ;;  %v4110_v3 = vpop.f32.mrb[91].mxu1  ;;  %v4172_v54 = vmax.f32 %v4116_v32, 0.0 }
 0xac2   :  { %v4111_v43 = vadd.f32 %v4110_v3, %v7440_v4  ;;  %v4170_v62 = vmax.f32 %v4108_v1, 0.0 }
 0xac3   :  { %v4173_v29 = vmax.f32 %v4119_v31, 0.0 }
 0xac4   :  { %v4171_v60 = vmax.f32 %v4111_v43, 0.0 }
 0xac5   :  { %v7446_v37 = vpack.c.bf16 %v4173_v29, %v4172_v54 }
 0xac6   :  { %v7448_v2 = vpack.c.bf16 %v4171_v60, %v4170_v62  ;;  %v5403_v11 = vpop.f32.mrb[92].mxu1 }
 0xac7   :  { %v4132_v27 = vadd.f32 %v5403_v11, %v7440_v4  ;;  %v4123_v7 = vpop.f32.mrb[93].mxu1 }
 0xac8   :  { %v4124_v56 = vadd.f32 %v4123_v7, %v7440_v4  ;;  %v5404_v16 = vpop.f32.mrb[94].mxu1 }
 0xac9   :  { %v4135_v17 = vadd.f32 %v5404_v16, %v7440_v4  ;;  %v4126_v14 = vpop.f32.mrb[95].mxu1  ;;  %v4176_v49 = vmax.f32 %v4132_v27, 0.0 }
 0xaca   :  { %v4127_v6 = vadd.f32 %v4126_v14, %v7440_v4  ;;  %v4174_v15 = vmax.f32 %v4124_v56, 0.0 }
 0xacb   :  { %v4177_v59 = vmax.f32 %v4135_v17, 0.0 }
 0xacc   :  { %v4175_v8 = vmax.f32 %v4127_v6, 0.0 }
 0xacd   :  { %v7454_v51 = vpack.c.bf16 %v4177_v59, %v4176_v49 }
 0xace   :  { %v7456_v35 = vpack.c.bf16 %v4175_v8, %v4174_v15 }
 0xae0   :  { %v3676_v46 = vpop.xlane.xlu0 %3675 }
 0xae1   :  { %v3698_v55 = vsub.f32 %v7373_v45, %v3676_v46 }
 0xae2   :  { %v3679_v63 = vpop.xlane.xlu1 %3678 }
 0xae3   :  { %v3699_v21 = vsub.f32 %v7381_v9, %v3679_v63  ;;  %v3706_v24 = vmul.f32 1.442695, %v3698_v55 }
 0xae4   :  { %v3682_v22 = vpop.xlane.xlu0 %3681 }
 0xae5   :  { %v3700_v28 = vsub.f32 %v7371_v47, %v3682_v22  ;;  %v3708_v36 = vmul.f32 1.442695, %v3699_v21 }
 0xae6   :  { %v3685_v10 = vpop.xlane.xlu1 %3684 }
 0xae7   :  { %v3710_v25 = vmul.f32 1.442695, %v3700_v28  ;;  %v3701_v50 = vsub.f32 %v7376_v38, %v3685_v10 }
 0xae8   :  { %v3688_v34 = vpop.xlane.xlu0 %3687 }
 0xae9   :  { %5833 = vpow2.f32 %v3710_v25  ;;  %v3712_v26 = vmul.f32 1.442695, %v3701_v50  ;;  %v3702_v58 = vsub.f32 %v7394_v57, %v3688_v34 }
 0xaea   :  { %5835 = vpow2.f32 %v3706_v24  ;;  %v3691_v42 = vpop.xlane.xlu1 %3690 }
 0xaeb   :  { %5837 = vpow2.f32 %v3712_v26  ;;  %v3703_v9 = vsub.f32 %v7401_v13, %v3691_v42  ;;  %v3714_v0 = vmul.f32 1.442695, %v3702_v58 }
 0xaec   :  { %v3694_v45 = vpop.xlane.xlu0 %3693  ;;  %5839 = vpow2.f32 %v3708_v36 }
 0xaed   :  { %v3704_v47 = vsub.f32 %v7390_v33, %v3694_v45  ;;  %v3716_v1 = vmul.f32 1.442695, %v3703_v9 }
 0xaee   :  { %v3697_v39 = vpop.xlane.xlu1 %3696 }
 0xaef   :  { %v3718_v32 = vmul.f32 1.442695, %v3704_v47  ;;  %v3705_v38 = vsub.f32 %v7397_v30, %v3697_v39 }
 0xaf0   :  { %v3771_v41 = vpop.permute.xlu0 %3770 }
 0xaf1   :  { %5841 = vpow2.f32 %v3718_v32  ;;  %v3720_v40 = vmul.f32 1.442695, %v3705_v38  ;;  %5357 = vmatprep.subr.bf16.mxu0 %v3771_v41 }
 0xaf2   :  { %5843 = vpow2.f32 %v3714_v0  ;;  %v3773_v22 = vpop.permute.xlu1 %3772 }
 0xaf3   :  { %v7466_v57 = vpop.eup %5833  ;;  %5845 = vpow2.f32 %v3720_v40 }
 0xaf4   :  { %v7468_v31 = vpop.eup %5835  ;;  %v3728_v13 = vsel %vm164_vm0, %v7466_v57, 0.0  ;;  %5847 = vpow2.f32 %v3716_v1 }
 0xaf5   :  { %v7472_v33 = vpop.eup %5837  ;;  %3729 = vadd.xlane.f32.xlu0 %v3728_v13  ;;  %v3722_v43 = vsel %vm164_vm0, %v7468_v31, 0.0 }
 0xaf6   :  { %v3731_v30 = vsel %vm164_vm0, %v7472_v33, 0.0  ;;  %v7476_v3 = vpop.eup %5839 }
 0xaf7   :  { %3732 = vadd.xlane.f32.xlu1 %v3731_v30  ;;  %v3725_v54 = vsel %vm164_vm0, %v7476_v3, 0.0 }
 0xaf9   :  { %3723 = vadd.xlane.f32.xlu0 %v3722_v43 }
 0xafb   :  { %v7482_v29 = vpop.eup %5841  ;;  %3726 = vadd.xlane.f32.xlu1 %v3725_v54 }
 0xafc   :  { %v7484_v62 = vpop.eup %5843  ;;  %v3740_v60 = vsel %vm164_vm0, %v7482_v29, 0.0 }
 0xafd   :  { %v7488_v11 = vpop.eup %5845  ;;  %3741 = vadd.xlane.f32.xlu0 %v3740_v60  ;;  %v3734_v56 = vsel %vm164_vm0, %v7484_v62, 0.0 }
 0xafe   :  { %v3743_v27 = vsel %vm164_vm0, %v7488_v11, 0.0  ;;  %v7492_v7 = vpop.eup %5847 }
 0xaff   :  { %3744 = vadd.xlane.f32.xlu1 %v3743_v27  ;;  %v3737_v16 = vsel %vm164_vm0, %v7492_v7, 0.0 }
 0xb01   :  { %3735 = vadd.xlane.f32.xlu0 %v3734_v56 }
 0xb03   :  { %3738 = vadd.xlane.f32.xlu1 %v3737_v16 }
 0xb14   :  { %3774 = vrot.lane.b32.xlu1 %v7715_v5, %s5906_s8 }
 0xb17   :  { %3776 = vrot.lane.b32.xlu0 %v7716_v18, %s5906_s8 }
 0xb39   :  { %v5319_v17 = vpop.f32.mrb[120].mxu0 }
 0xb3a   :  { %v3441_v14 = vpop.f32.mrb[121].mxu0  ;;  %v3474_v49 = vmax.f32 %v5319_v17, 0.0 }
 0xb3b   :  { %v5320_v6 = vpop.f32.mrb[122].mxu0  ;;  %v3472_v8 = vmax.f32 %v3441_v14, 0.0 }
 0xb3c   :  { %v3475_v59 = vmax.f32 %v5320_v6, 0.0  ;;  %v3444_v15 = vpop.f32.mrb[123].mxu0 }
 0xb3d   :  { %v3473_v46 = vmax.f32 %v3444_v15, 0.0 }
 0xb3e   :  { %v3481_v55 = vpack.c.bf16 %v3475_v59, %v3474_v49  ;;  %v5878_v59 = vld [vmem:[%s7683_s4 + $0x68] sm:$0xff]  }
 0xb3f   :  { %v3480_v63 = vpack.c.bf16 %v3473_v46, %v3472_v8  ;;  %v5602_v8 = vld [vmem:[%s7681_s2 + $0x48] sm:$0xff]  }
 0xb41   :  { %5333 = vmatprep.mubr.msk.bf16.mxu0 %vm164_vm0, %v3480_v63 }
 0xb42   :  { %5334 = vmatmul.mubr.msk.bf16.vlgmr.msra.gmra.mrb[112].mxu0 %vm164_vm0, %v3481_v55 }
 0xb43   :  { %5358 = vmatpush3.bf16.msra.mxu0 %v3771_v41 }
 0xb44   :  { %5359 = vmatprep.subr.bf16.mxu0 %v3773_v22 }
 0xb47   :  { %5360 = vmatpush3.bf16.msra.mxu0 %v3773_v22 }
 0xb58   :  { %v5323_v5 = vpop.f32.mrb[124].mxu0 }
 0xb59   :  { %v3457_v18 = vpop.f32.mrb[125].mxu0  ;;  %v3478_v28 = vmax.f32 %v5323_v5, 0.0 }
 0xb5a   :  { %v5324_v21 = vpop.f32.mrb[126].mxu0  ;;  %v3476_v25 = vmax.f32 %v3457_v18, 0.0 }
 0xb5b   :  { %v3479_v24 = vmax.f32 %v5324_v21, 0.0  ;;  %v3460_v10 = vpop.f32.mrb[127].mxu0 }
 0xb5c   :  { %v3477_v50 = vmax.f32 %v3460_v10, 0.0 }
 0xb5d   :  { %v3483_v34 = vpack.c.bf16 %v3479_v24, %v3478_v28 }
 0xb5e   :  { %v3482_v36 = vpack.c.bf16 %v3477_v50, %v3476_v25 }
 0xb60   :  { %5337 = vmatprep.mubr.msk.bf16.mxu0 %vm164_vm0, %v3482_v36 }
 0xb61   :  { %5338 = vmatmul.mubr.msk.bf16.gmra.mrb[116].mxu0 %vm164_vm0, %v3483_v34 }
 0xb82   :  { %v3730_v26 = vpop.xlane.xlu0 %3729 }
 0xb84   :  { %v3733_v58 = vpop.xlane.xlu1 %3732 }
 0xb86   :  { %v3724_v42 = vpop.xlane.xlu0 %3723 }
 0xb87   :  { %5849 = vrcp.f32 %v3724_v42 }
 0xb88   :  { %v3727_v45 = vpop.xlane.xlu1 %3726 }
 0xb89   :  { %5851 = vrcp.f32 %v3727_v45 }
 0xb8a   :  { %5853 = vrcp.f32 %v3733_v58  ;;  %v3742_v9 = vpop.xlane.xlu0 %3741 }
 0xb8b   :  { %5855 = vrcp.f32 %v3730_v26 }
 0xb8c   :  { %v3745_v47 = vpop.xlane.xlu1 %3744 }
 0xb8e   :  { %v3736_v0 = vpop.xlane.xlu0 %3735 }
 0xb8f   :  { %5857 = vrcp.f32 %v3736_v0  ;;  %v5603_v0 = vld [vmem:[%s7681_s2 + $0x50] sm:$0xff]  }
 0xb90   :  { %v3739_v39 = vpop.xlane.xlu1 %3738 }
 0xb91   :  { %v5850_v32 = vpop.eup %5849  ;;  %5859 = vrcp.f32 %v3739_v39  ;;  %v5604_v39 = vld [vmem:[%s7681_s2 + $0x58] sm:$0xff]  }
 0xb92   :  { %5861 = vrcp.f32 %v3745_v47  ;;  %v3754_v40 = vmul.f32 %v5850_v32, %v7468_v31  ;;  %v3777_v43 = vpop.permute.xlu0 %3776  ;;  %v5877_v31 = vld [vmem:[%s7683_s4 + $0x60] sm:$0xff]  }
 0xb93   :  { %v5852_v38 = vpop.eup %5851  ;;  %5863 = vrcp.f32 %v3742_v9  ;;  %v5605_v32 = vld [vmem:[%s7681_s2 + $0x60] sm:$0xff]  }
 0xb94   :  { %v5854_v41 = vpop.eup %5853  ;;  %v3775_v1 = vpop.permute.xlu1 %3774  ;;  %v3755_v13 = vmul.f32 %v5852_v38, %v7476_v3  ;;  %v5606_v38 = vld [vmem:[%s7681_s2 + $0x68] sm:$0xff]  }
 0xb95   :  { %5361 = vmatprep.subr.bf16.mxu0 %v3775_v1  ;;  %v5856_v30 = vpop.eup %5855  ;;  %v3757_v60 = vmul.f32 %v5854_v41, %v7472_v33  ;;  %v5607_v41 = vld [vmem:[%s7681_s2 + $0x70] sm:$0xff]  }
 0xb96   :  { %5362 = vmatpush3.bf16.msra.mxu0 %v3775_v1  ;;  %v3762_v54 = vpack.c.bf16 %v3755_v13, %v3754_v40  ;;  %v3756_v56 = vmul.f32 %v5856_v30, %v7466_v57  ;;  %v5608_v1 = vld [vmem:[%s7681_s2 + $0x78] sm:$0xff]   ;;  %v7717_v30 = vld [vmem:[#allocation7_spill] sm:$0xff] }
 0xb97   :  { %5363 = vmatprep.subr.bf16.mxu0 %v3777_v43 }
 0xb98   :  { %5365 = vmatprep.mubr.msk.bf16.mxu0 %vm164_vm0, %v3762_v54  ;;  %v3763_v17 = vpack.c.bf16 %v3757_v60, %v3756_v56  ;;  %v7718_v60 = vld [vmem:[#allocation9_spill] sm:$0xff]  ;;  %v7719_v56 = vld [vmem:[#allocation6_spill] sm:$0xff] }
 0xb99   :  { %v5858_v27 = vpop.eup %5857 }
 0xb9a   :  { %5364 = vmatpush3.bf16.msra.mxu0 %v3777_v43  ;;  %v3758_v14 = vmul.f32 %v5858_v27, %v7484_v62 }
 0xb9b   :  { %v5860_v16 = vpop.eup %5859  ;;  %5373 = vmatprep.subr.bf16.mxu0 %v5877_v31 }
 0xb9c   :  { %v5862_v3 = vpop.eup %5861  ;;  %v3759_v6 = vmul.f32 %v5860_v16, %v7492_v7  ;;  %v5879_v7 = vld [vmem:[%s7683_s4 + $0x70] sm:$0xff]  }
 0xb9d   :  { %5366 = vmatmul.mubr.msk.bf16.vlgmr.msra.gmra.mrb[128].mxu0 %vm164_vm0, %v3763_v17  ;;  %v5864_v33 = vpop.eup %5863  ;;  %v3761_v57 = vmul.f32 %v5862_v3, %v7488_v11  ;;  %v5880_v11 = vld [vmem:[%s7683_s4 + $0x78] sm:$0xff]  }
 0xb9e   :  { %v3764_v49 = vpack.c.bf16 %v3759_v6, %v3758_v14  ;;  %5374 = vmatpush3.bf16.msra.mxu0 %v5877_v31  ;;  %v3760_v15 = vmul.f32 %v5864_v33, %v7482_v29  ;;  %v5601_v29 = vld [vmem:[%s7681_s2 + $0x40] sm:$0xff]   ;;  %v7720_v31 = vld [vmem:[#allocation8_spill] sm:$0xff] }
 0xb9f   :  { %5375 = vmatprep.subr.bf16.mxu0 %v5878_v59  ;;  %5413 = vmatprep.subr.bf16.mxu1 %v5601_v29 }
 0xba0   :  { %5369 = vmatprep.mubr.msk.bf16.mxu0 %vm164_vm0, %v3764_v49  ;;  %v3765_v62 = vpack.c.bf16 %v3761_v57, %v3760_v15  ;;  %5414 = vmatpush3.bf16.msra.mxu1 %v5601_v29 }
 0xba1   :  { %5415 = vmatprep.subr.bf16.mxu1 %v5602_v8 }
 0xba2   :  { %5376 = vmatpush3.bf16.msra.mxu0 %v5878_v59 }
 0xba3   :  { %5377 = vmatprep.subr.bf16.mxu0 %v5879_v7 }
 0xba4   :  { %5416 = vmatpush3.bf16.msra.mxu1 %v5602_v8  ;;  %v7722_v8 = vld [vmem:[#allocation13_spill] sm:$0xff] }
 0xba5   :  { %5370 = vmatmul.mubr.msk.bf16.gmra.mrb[132].mxu0 %vm164_vm0, %v3765_v62  ;;  %5417 = vmatprep.subr.bf16.mxu1 %v5603_v0 }
 0xba6   :  { %5378 = vmatpush3.bf16.msra.mxu0 %v5879_v7  ;;  %v7721_v7 = vld [vmem:[#allocation11_spill] sm:$0xff] }
 0xba7   :  { %5379 = vmatprep.subr.bf16.mxu0 %v5880_v11 }
 0xba8   :  { %5418 = vmatpush3.bf16.msra.mxu1 %v5603_v0 }
 0xba9   :  { %5419 = vmatprep.subr.bf16.mxu1 %v5604_v39 }
 0xbaa   :  { %5380 = vmatpush3.bf16.msra.mxu0 %v5880_v11 }
 0xbac   :  { %5420 = vmatpush3.bf16.msra.mxu1 %v5604_v39 }
 0xbad   :  { %5421 = vmatprep.subr.bf16.mxu1 %v5605_v32 }
 0xbb0   :  { %5422 = vmatpush3.bf16.msra.mxu1 %v5605_v32 }
 0xbb1   :  { %5423 = vmatprep.subr.bf16.mxu1 %v5606_v38 }
 0xbb4   :  { %5424 = vmatpush3.bf16.msra.mxu1 %v5606_v38 }
 0xbb5   :  { %5425 = vmatprep.subr.bf16.mxu1 %v5607_v41 }
 0xbb8   :  { %5426 = vmatpush3.bf16.msra.mxu1 %v5607_v41 }
 0xbb9   :  { %5427 = vmatprep.subr.bf16.mxu1 %v5608_v1 }
 0xbbc   :  { %5428 = vmatpush3.bf16.msra.mxu1 %v5608_v1 }
 0xc70   :  { %v5367_v46 = vpop.f32.mrb[128].mxu0 }
 0xc71   :  { %v3828_v55 = vpop.f32.mrb[129].mxu0  ;;  %v3861_v22 = vmax.f32 %v5367_v46, 0.0 }
 0xc72   :  { %v5368_v63 = vpop.f32.mrb[130].mxu0  ;;  %v3859_v21 = vmax.f32 %v3828_v55, 0.0  ;;  %v7723_v55 = vld [vmem:[#allocation10_spill] sm:$0xff] }
 0xc73   :  { %v3862_v5 = vmax.f32 %v5368_v63, 0.0  ;;  %v3831_v18 = vpop.f32.mrb[131].mxu0 }
 0xc74   :  { %v3860_v28 = vmax.f32 %v3831_v18, 0.0 }
 0xc75   :  { %v3868_v24 = vpack.c.bf16 %v3862_v5, %v3861_v22  ;;  %v7724_v5 = vld [vmem:[#allocation12_spill] sm:$0xff] }
 0xc76   :  { %v3867_v10 = vpack.c.bf16 %v3860_v28, %v3859_v21 }
 0xc78   :  { %v5371_v25 = vpop.f32.mrb[132].mxu0  ;;  %5381 = vmatprep.mubr.msk.bf16.mxu0 %vm164_vm0, %v3867_v10 }
 0xc79   :  { %v3844_v50 = vpop.f32.mrb[133].mxu0  ;;  %5382 = vmatmul.mubr.msk.bf16.vlgmr.msra.gmra.mrb[112].mxu0 %vm164_vm0, %v3868_v24  ;;  %v3865_v36 = vmax.f32 %v5371_v25, 0.0 }
 0xc7a   :  { %v5372_v34 = vpop.f32.mrb[134].mxu0  ;;  %v3863_v42 = vmax.f32 %v3844_v50, 0.0 }
 0xc7b   :  { %v3866_v26 = vmax.f32 %v5372_v34, 0.0  ;;  %v3847_v58 = vpop.f32.mrb[135].mxu0 }
 0xc7c   :  { %v3864_v45 = vmax.f32 %v3847_v58, 0.0 }
 0xc7d   :  { %v3870_v9 = vpack.c.bf16 %v3866_v26, %v3865_v36 }
 0xc7e   :  { %v3869_v47 = vpack.c.bf16 %v3864_v45, %v3863_v42 }
 0xc80   :  { %5385 = vmatprep.mubr.msk.bf16.mxu0 %vm164_vm0, %v3869_v47 }
 0xc81   :  { %5386 = vmatmul.mubr.msk.bf16.gmra.mrb[116].mxu0 %vm164_vm0, %v3870_v9 }
 0xd4c   :  { %v5383_v40 = vpop.f32.mrb[112].mxu0 }
 0xd4d   :  { %v3917_v13 = vpop.f32.mrb[113].mxu0  ;;  %v3966_v27 = vadd.f32 %v5383_v40, %v7718_v60 }
 0xd4e   :  { %v3964_v43 = vadd.f32 %v3917_v13, %v7717_v30  ;;  %v5384_v54 = vpop.f32.mrb[114].mxu0 }
 0xd4f   :  { %v3967_v16 = vadd.f32 %v5384_v54, %v7719_v56  ;;  %v3920_v17 = vpop.f32.mrb[115].mxu0  ;;  %v7572_v49 = vadd.f32 %v7297_v52, %v3966_v27 }
 0xd50   :  { %v3965_v3 = vadd.f32 %v3920_v17, %v7720_v31  ;;  %v7566_v6 = vadd.f32 %v7297_v52, %v3964_v43 }
 0xd51   :  { %v7563_v14 = vadd.f32 %v7297_v52, %v3967_v16  ;;  %v7617_v16 = vld [vmem:[%s7684_s5 + $0x5] ss:$0 sm:$0xff]  ;;  %s5913_s5 = smov [#allocation2]  }
 0xd52   :  { %v7569_v33 = vadd.f32 %v7297_v52, %v3965_v3  ;;  %s4441_s28 = sshll.u32 %s5913_s5, 4  ;;  %s4442_s28 = int_to_ptr.vmem [resolvable:$true] %s4441_s28 }
 0xd53   :  { %v4022_v15 = vpack.c.bf16 %v7563_v14, %v7572_v49  ;;  %s5881_s29 = scalar_lea.vmem %s4442_s28, 2048  ;;  %p5886_p1 = scmp.lt.s32.totalorder %s4442_s28, %s4442_s28 }
 0xd54   :  { %v4021_v57 = vpack.c.bf16 %v7569_v33, %v7566_v6  ;;  %v5387_v59 = vpop.f32.mrb[116].mxu0  ;;  %p5882_p0 = scmp.ne.s32.totalorder %s4442_s28, %s5881_s29  ;;  %p5887_p2 = scmp.lt.s32.totalorder %s5881_s29, %s5881_s29 }
 0xd55   :  { %v3933_v62 = vpop.f32.mrb[117].mxu0  ;;  %v3970_v46 = vadd.f32 %v5387_v59, %v7722_v8 }
 0xd56   :  { %v3968_v11 = vadd.f32 %v3933_v62, %v7721_v7  ;;  %v5388_v29 = vpop.f32.mrb[118].mxu0  ;;  %5405 = vmatprep.mubr.msk.bf16.mxu1 %vm164_vm0, %v4021_v57  ;;  %p5888_p3 = por %p5887_p2, %p5886_p1 }
 0xd57   :  { %v3971_v63 = vadd.f32 %v5388_v29, %v7723_v55  ;;  %v3936_v22 = vpop.f32.mrb[119].mxu0  ;;  %5406 = vmatmul.mubr.msk.bf16.gmra.mrb[96].mxu1 %vm164_vm0, %v4022_v15  ;;  %v7594_v10 = vadd.f32 %v7297_v52, %v3970_v46 }
 0xd58   :  { %v3969_v18 = vadd.f32 %v3936_v22, %v7724_v5  ;;  %v7588_v28 = vadd.f32 %v7297_v52, %v3968_v11  ;;  %p5889_p4 = pnand %p5888_p3, %p5882_p0 }
 0xd59   :  { %v7585_v21 = vadd.f32 %v7297_v52, %v3971_v63 }
 0xd5a   :  { %v7591_v24 = vadd.f32 %v7297_v52, %v3969_v18 }
 0xd5b   :  { %v4024_v50 = vpack.c.bf16 %v7585_v21, %v7594_v10 }
 0xd5c   :  { %v4023_v25 = vpack.c.bf16 %v7591_v24, %v7588_v28 }
 0xd5e   :  { %5409 = vmatprep.mubr.msk.bf16.mxu1 %vm164_vm0, %v4023_v25 }
 0xd5f   :  { %5410 = vmatmul.mubr.msk.bf16.gmra.mrb[100].mxu1 %vm164_vm0, %v4024_v50 }
 0xd60   :  { %5429 = vmatprep.mubr.bf16.mxu1 %v7448_v2 }
 0xd67   :  { %5430 = vmatmul.mubr.bf16.vlgmr.msra.gmra.mrb[104].mxu1 %v7446_v37 }
 0xd68   :  { %5433 = vmatprep.mubr.bf16.mxu1 %v7456_v35 }
 0xd6f   :  { %5434 = vmatmul.mubr.bf16.gmra.mrb[108].mxu1 %v7454_v51 }
 0xe2a   :  { %v5407_v52 = vpop.f32.mrb[96].mxu1 }
 0xe2b   :  { %v4148_v34 = vadd.f32 %v5407_v52, %v7440_v4  ;;  %v4139_v36 = vpop.f32.mrb[97].mxu1 }
 0xe2c   :  { %v4140_v26 = vadd.f32 %v4139_v36, %v7440_v4  ;;  %v5408_v58 = vpop.f32.mrb[98].mxu1 }
 0xe2d   :  { %v4151_v42 = vadd.f32 %v5408_v58, %v7440_v4  ;;  %v4142_v45 = vpop.f32.mrb[99].mxu1  ;;  %v4180_v47 = vmax.f32 %v4148_v34, 0.0 }
 0xe2e   :  { %v4143_v9 = vadd.f32 %v4142_v45, %v7440_v4  ;;  %v4178_v0 = vmax.f32 %v4140_v26, 0.0 }
 0xe2f   :  { %v4181_v2 = vmax.f32 %v4151_v42, 0.0 }
 0xe30   :  { %v4179_v37 = vmax.f32 %v4143_v9, 0.0 }
 0xe31   :  { %v4191_v39 = vpack.c.bf16 %v4181_v2, %v4180_v47 }
 0xe32   :  { %v4190_v35 = vpack.c.bf16 %v4179_v37, %v4178_v0  ;;  %v5411_v32 = vpop.f32.mrb[100].mxu1 }
 0xe33   :  { %v4164_v51 = vadd.f32 %v5411_v32, %v7440_v4  ;;  %v4155_v38 = vpop.f32.mrb[101].mxu1 }
 0xe34   :  { %v4156_v41 = vadd.f32 %v4155_v38, %v7440_v4  ;;  %v5412_v1 = vpop.f32.mrb[102].mxu1  ;;  %5437 = vmatprep.mubr.bf16.mxu1 %v4190_v35 }
 0xe35   :  { %v4167_v40 = vadd.f32 %v5412_v1, %v7440_v4  ;;  %v4158_v13 = vpop.f32.mrb[103].mxu1  ;;  %5438 = vmatmul.mubr.bf16.gmra.mrb[112].mxu1 %v4191_v39  ;;  %v4184_v43 = vmax.f32 %v4164_v51, 0.0 }
 0xe36   :  { %v4159_v30 = vadd.f32 %v4158_v13, %v7440_v4  ;;  %v4182_v60 = vmax.f32 %v4156_v41, 0.0 }
 0xe37   :  { %v4185_v54 = vmax.f32 %v4167_v40, 0.0 }
 0xe38   :  { %v4183_v27 = vmax.f32 %v4159_v30, 0.0 }
 0xe39   :  { %v4193_v56 = vpack.c.bf16 %v4185_v54, %v4184_v43 }
 0xe3a   :  { %v4192_v17 = vpack.c.bf16 %v4183_v27, %v4182_v60  ;;  %v5431_v31 = vpop.f32.mrb[104].mxu1 }
 0xe3b   :  { %v4276_v3 = vpop.f32.mrb[105].mxu1  ;;  %v4285_v7 = vadd.f32 %v5431_v31, %v7617_v16 }
 0xe3c   :  { %v4277_v57 = vadd.f32 %v4276_v3, %v7617_v16  ;;  %v5432_v59 = vpop.f32.mrb[106].mxu1  ;;  %5441 = vmatprep.mubr.bf16.mxu1 %v4192_v17 }
 0xe3d   :  { %v4279_v15 = vpop.f32.mrb[107].mxu1  ;;  %5442 = vmatmul.mubr.bf16.gmra.mrb[116].mxu1 %v4193_v56  ;;  %v4341_v63 = vadd.f32 %v4285_v7, %v7319_v12  ;;  %v4288_v22 = vadd.f32 %v5432_v59, %v7617_v16 }
 0xe3e   :  { %v4339_v4 = vadd.f32 %v4277_v57, %v7313_v53  ;;  %v4280_v62 = vadd.f32 %v4279_v15, %v7617_v16 }
 0xe3f   :  { %v4342_v5 = vadd.f32 %v4288_v22, %v7306_v20 }
 0xe40   :  { %4355 = vxpose.xlu1.b32.start [1/8] (short) (narrow) %v4339_v4, 64  ;;  %v4340_v11 = vadd.f32 %v4280_v62, %v7316_v19 }
 0xe42   :  { %v5435_v29 = vpop.f32.mrb[108].mxu1 }
 0xe43   :  { %v4292_v8 = vpop.f32.mrb[109].mxu1  ;;  %v4301_v19 = vadd.f32 %v5435_v29, %v7617_v16 }
 0xe44   :  { %v5436_v46 = vpop.f32.mrb[110].mxu1  ;;  %4356 = vxpose.xlu1.b32.cont [2/8] (short) (narrow) %v4340_v11, 64  ;;  %v4293_v53 = vadd.f32 %v4292_v8, %v7617_v16 }
 0xe45   :  { %v4295_v55 = vpop.f32.mrb[111].mxu1  ;;  %v4345_v12 = vadd.f32 %v4301_v19, %v7343_v23  ;;  %v4304_v52 = vadd.f32 %v5436_v46, %v7617_v16 }
 0xe46   :  { %v4343_v18 = vadd.f32 %v4293_v53, %v7337_v61  ;;  %v4296_v25 = vadd.f32 %v4295_v55, %v7617_v16 }
 0xe47   :  { %v4346_v20 = vadd.f32 %v4304_v52, %v7334_v48 }
 0xe48   :  { %4357 = vxpose.xlu1.b32.cont [3/8] (short) (narrow) %v4341_v63, 64  ;;  %v4344_v50 = vadd.f32 %v4296_v25, %v7340_v44 }
 0xe4c   :  { %4358 = vxpose.xlu1.b32.cont [4/8] (short) (narrow) %v4342_v5, 64 }
 0xe50   :  { %4359 = vxpose.xlu1.b32.cont [5/8] (short) (narrow) %v4343_v18, 64 }
 0xe54   :  { %4360 = vxpose.xlu1.b32.cont [6/8] (short) (narrow) %v4344_v50, 64 }
 0xe58   :  { %4361 = vxpose.xlu1.b32.cont [7/8] (short) (narrow) %v4345_v12, 64 }
 0xe5c   :  { %4362 = vxpose.xlu1.b32.end [8/8] (short) (narrow) %v4346_v20, 64 }
 0xec0   :  { %v4371_v34 = vpop.trf.xlu1 }
 0xec1   :  { %4387 = vst.msk [vmem:[#allocation2] sm:$0xff] %vm164_vm0, %v4371_v34 }
 0xec4   :  { %v4372_v23 = vpop.trf.xlu1 }
 0xec5   :  { %4388 = vst.msk [vmem:[#allocation2 + $0x8] sm:$0xff] %vm164_vm0, %v4372_v23 }
 0xec8   :  { %v4373_v39 = vpop.trf.xlu1 }
 0xec9   :  { %4389 = vst.msk [vmem:[#allocation2 + $0x10] sm:$0xff] %vm164_vm0, %v4373_v39 }
 0xecc   :  { %v4374_v32 = vpop.trf.xlu1 }
 0xecd   :  { %4390 = vst.msk [vmem:[#allocation2 + $0x18] sm:$0xff] %vm164_vm0, %v4374_v32 }
 0xed0   :  { %v4375_v38 = vpop.trf.xlu1 }
 0xed1   :  { %4391 = vst.msk [vmem:[#allocation2 + $0x20] sm:$0xff] %vm164_vm0, %v4375_v38 }
 0xf08   :  { %v5439_v61 = vpop.f32.mrb[112].mxu1 }
 0xf09   :  { %v4308_v36 = vpop.f32.mrb[113].mxu1  ;;  %v4317_v9 = vadd.f32 %v5439_v61, %v7617_v16 }
 0xf0a   :  { %v4309_v26 = vadd.f32 %v4308_v36, %v7617_v16  ;;  %v5440_v58 = vpop.f32.mrb[114].mxu1 }
 0xf0b   :  { %v4311_v42 = vpop.f32.mrb[115].mxu1  ;;  %v4349_v35 = vadd.f32 %v4317_v9, %v7572_v49  ;;  %v4376_v49 = vpop.trf.xlu1 }
 0xf0c   :  { %v4347_v44 = vadd.f32 %v4309_v26, %v7566_v6  ;;  %v4312_v45 = vadd.f32 %v4311_v42, %v7617_v16  ;;  %v4320_v6 = vadd.f32 %v5440_v58, %v7617_v16  ;;  %4392 = vst.msk [vmem:[#allocation2 + $0x28] sm:$0xff] %vm164_vm0, %v4376_v49 }
 0xf0e   :  { %4395 = vxpose.xlu0.b32.start [1/8] (short) (narrow) %v4347_v44, 64  ;;  %v4348_v48 = vadd.f32 %v4312_v45, %v7569_v33  ;;  %v4350_v51 = vadd.f32 %v4320_v6, %v7563_v14 }
 0xf0f   :  { %v4377_v14 = vpop.trf.xlu1 }
 0xf10   :  { %v5443_v47 = vpop.f32.mrb[116].mxu1  ;;  %4393 = vst.msk [vmem:[#allocation2 + $0x30] sm:$0xff] %vm164_vm0, %v4377_v14 }
 0xf11   :  { %v4324_v2 = vpop.f32.mrb[117].mxu1  ;;  %v4333_v40 = vadd.f32 %v5443_v47, %v7617_v16 }
 0xf12   :  { %4396 = vxpose.xlu0.b32.cont [2/8] (short) (narrow) %v4348_v48, 64  ;;  %v5444_v0 = vpop.f32.mrb[118].mxu1  ;;  %v4325_v33 = vadd.f32 %v4324_v2, %v7617_v16 }
 0xf13   :  { %v4327_v37 = vpop.f32.mrb[119].mxu1  ;;  %v4353_v30 = vadd.f32 %v4333_v40, %v7594_v10  ;;  %v4336_v43 = vadd.f32 %v5444_v0, %v7617_v16 }
 0xf14   :  { %v4351_v41 = vadd.f32 %v4325_v33, %v7588_v28  ;;  %v4328_v1 = vadd.f32 %v4327_v37, %v7617_v16  ;;  %v4378_v28 = vpop.trf.xlu1 }
 0xf15   :  { %v4354_v54 = vadd.f32 %v4336_v43, %v7585_v21  ;;  %4394 = vst.msk [vmem:[#allocation2 + $0x38] sm:$0xff] %vm164_vm0, %v4378_v28 }
 0xf16   :  { %4397 = vxpose.xlu0.b32.cont [3/8] (short) (narrow) %v4349_v35, 64  ;;  %v4352_v13 = vadd.f32 %v4328_v1, %v7591_v24 }
 0xf1a   :  { %4398 = vxpose.xlu0.b32.cont [4/8] (short) (narrow) %v4350_v51, 64 }
 0xf1e   :  { %4399 = vxpose.xlu0.b32.cont [5/8] (short) (narrow) %v4351_v41, 64 }
 0xf22   :  { %4400 = vxpose.xlu0.b32.cont [6/8] (short) (narrow) %v4352_v13, 64 }
 0xf26   :  { %4401 = vxpose.xlu0.b32.cont [7/8] (short) (narrow) %v4353_v30, 64 }
 0xf2a   :  { %4402 = vxpose.xlu0.b32.end [8/8] (short) (narrow) %v4354_v54, 64 }
 0xf8e   :  { %v4411_v60 = vpop.trf.xlu0 }
 0xf8f   :  { %4428 = vst.msk [vmem:[#allocation2 + $0x40] sm:$0xff] %vm164_vm0, %v4411_v60 }
 0xf92   :  { %v4412_v24 = vpop.trf.xlu0 }
 0xf93   :  { %4429 = vst.msk [vmem:[#allocation2 + $0x48] sm:$0xff] %vm164_vm0, %v4412_v24 }
 0xf96   :  { %v4413_v27 = vpop.trf.xlu0 }
 0xf97   :  { %4430 = vst.msk [vmem:[#allocation2 + $0x50] sm:$0xff] %vm164_vm0, %v4413_v27 }
 0xf9a   :  { %v4414_v10 = vpop.trf.xlu0 }
 0xf9b   :  { %4431 = vst.msk [vmem:[#allocation2 + $0x58] sm:$0xff] %vm164_vm0, %v4414_v10 }
 0xf9e   :  { %v4415_v56 = vpop.trf.xlu0 }
 0xf9f   :  { %4432 = vst.msk [vmem:[#allocation2 + $0x60] sm:$0xff] %vm164_vm0, %v4415_v56 }
 0xfa2   :  { %v4416_v16 = vpop.trf.xlu0 }
 0xfa3   :  { %4433 = vst.msk [vmem:[#allocation2 + $0x68] sm:$0xff] %vm164_vm0, %v4416_v16 }
 0xfa6   :  { %v4417_v21 = vpop.trf.xlu0 }
 0xfa7   :  { %4434 = vst.msk [vmem:[#allocation2 + $0x70] sm:$0xff] %vm164_vm0, %v4417_v21 }
 0xfaa   :  { %v4418_v17 = vpop.trf.xlu0 }
 0xfab   :  { %4435 = vst.msk [vmem:[#allocation2 + $0x78] sm:$0xff] %vm164_vm0, %v4418_v17 }
 0xfac   :  { %5892 = shalt.err (!%p5889_p4)
}
 0xfad   :  { %s5893_s3 = scalar_lea.hbm %s7685_s6, 2048 }
 0xfae   :  { %p5894_p5 = scmp.ne.s32.totalorder %s7685_s6, %s5893_s3  ;;  %p5897_p6 = scmp.lt.u32.totalorder %s5893_s3, %s7685_s6 }
 0xfb0   :  { %p5899_p7 = pnand %p5897_p6, %p5894_p5 }
 0xfb2   :  { %5902 = shalt.err (!%p5899_p7)
}
 0xfb3   :  { %s5914_s16 = smov 128   ;;  %s5915_s17 = smov 8  }
 0xfb4   :  { %4447 = dma.vmem_to_hbm [thread:$0]  %s4442_s28, 2048, %s7685_s6, [#allocation3], %s5914_s16, %s5914_s16, %s5915_s17  }
 0xfb5   :  { %5903 = dma.done.wait [#allocation3], 2048  }
 0xfb6   :  { %5904 = vsyncadd [#allocation3], 4294965248 }
 0xfb7   :  { %4451 = vsyncpa [#allocation3], 1 }

</bundles_post_ra>
